<compile_context>
chip_gen: v7x
topology: tpu7x:2x2x1
jax: 0.10.0
libtpu: 0.0.40
codegen_flags: <defaults>
</compile_context>

<pallas_src>
import functools

import jax
import jax.numpy as jnp
from jax.experimental import pallas as pl
from jax.experimental.pallas import tpu as pltpu


VMEM_LIMIT = 48 * 1024 * 1024  # safe on v5e/v6e (128 MiB phys) and v7x (64 MiB phys)


# ----------------------------------------------------------------------------
# Small helpers
# ----------------------------------------------------------------------------
def _round_up(x, m):
    return ((x + m - 1) // m) * m


def _choose_tm(M, max_tm=512):
    """Largest row tile (multiple of 8) that still leaves >= 2 grid steps."""
    if M <= 8:
        return 8
    tm = min(max_tm, _round_up((M + 1) // 2, 8))
    return max(8, tm)


def _pad_rows(x, tm):
    M = x.shape[0]
    Mp = _round_up(M, tm)
    if Mp != M:
        x = jnp.pad(x, ((0, Mp - M), (0, 0)))
    return x, M


def bn_fold(gamma, beta, mean, var, eps=1e-5):
    scale = gamma / jnp.sqrt(var + eps)
    bias = beta - mean * scale
    return scale, bias


def grouped_to_dense(w_torch, groups):
    """Torch grouped weight (Cout, Cin//g, 3, 3) -> dense block-diag (3,3,Cin,Cout)."""
    Cout, cpg_in, KH, KW = w_torch.shape
    Cin = cpg_in * groups
    cpg_out = Cout // groups
    dense = jnp.zeros((KH, KW, Cin, Cout), w_torch.dtype)
    for g in range(groups):
        wg = w_torch[g * cpg_out:(g + 1) * cpg_out]          # (cpg_out, cpg_in, 3, 3)
        wg = jnp.transpose(wg, (2, 3, 1, 0))                  # (3, 3, cpg_in, cpg_out)
        dense = dense.at[:, :, g * cpg_in:(g + 1) * cpg_in,
                               g * cpg_out:(g + 1) * cpg_out].set(wg)
    return dense


# ----------------------------------------------------------------------------
# Kernel A: fused conv1(1x1)+BN1+ReLU -> VMEM zero-pad -> conv2(3x3, groups)+BN2+ReLU
#           (per image; 3x3 gather via 9 shifted VMEM reads, H-stride in-kernel)
# ----------------------------------------------------------------------------
def _conv12_kernel(x_ref, w1_ref, b1_ref, w2_ref, b2_ref, o_ref, pad_ref, *,
                   h_stride, depthwise):
    # x_ref:   (H, W, Cin)      input image (any float dtype)
    # w1_ref:  (Cin, Cp) bf16   conv1 weight with BN1 scale folded
    # b1_ref:  (1, Cp)   f32    BN1 bias
    # w2_ref:  (9, Cp)   f32    depthwise taps (scale folded)    [depthwise path]
    #          (9, Cp, Cp) bf16 block-diag per-tap dense weight  [grouped path]
    # b2_ref:  (1, Cp)   f32    BN2 bias
    # o_ref:   (Hk, W, Cp) bf16 conv2 output (rows already strided, cols full)
    # pad_ref: (H+2, W+2, Cp) bf16 VMEM scratch for the zero-padded conv1 output
    H, W, Cin = x_ref.shape
    Hk, _, Cp = o_ref.shape

    # ---- conv1 (1x1) + bn1 + relu (BN scale folded into the weight) ----
    x = x_ref[...].astype(jnp.bfloat16).reshape(H * W, Cin)
    out1 = jnp.dot(x, w1_ref[...], preferred_element_type=jnp.float32) + b1_ref[...]
    out1 = jnp.maximum(out1, 0.0).astype(jnp.bfloat16)

    # ---- zero-padded activation lives only in VMEM (no HBM round-trip) ----
    pad_ref[...] = jnp.zeros_like(pad_ref)
    pad_ref[1:H + 1, 1:W + 1, :] = out1.reshape(H, W, Cp)

    # ---- conv2: accumulate 9 shifted VMEM reads (f32 accumulator) ----
    acc = jnp.zeros((Hk * W, Cp), jnp.float32)
    for t in range(9):
        kh, kw = divmod(t, 3)
        xt = pad_ref[kh:kh + H, kw:kw + W, :]
        if h_stride > 1:
            # keep every h_stride-th output row (major-dim split + slice: cheap)
            xt = xt.reshape(Hk, h_stride, W, Cp)[:, 0]
        xt = xt.reshape(Hk * W, Cp)
        if depthwise:
            acc = acc + xt.astype(jnp.float32) * w2_ref[t:t + 1, :]
        else:
            acc = acc + jnp.dot(xt, w2_ref[t], preferred_element_type=jnp.float32)

    y = jnp.maximum(acc + b2_ref[...], 0.0)
    o_ref[...] = y.reshape(Hk, W, Cp).astype(o_ref.dtype)


def fused_conv1_conv2_bn_relu(x_nhwc, w1f, b1, w2_torch, s2, b2, *, groups, stride):
    """relu(bn2(conv2_3x3_grouped(relu(bn1(conv1_1x1(x)))))) -> bf16 NHWC, strided."""
    N, H, W, Cin = x_nhwc.shape
    Cp = w1f.shape[1]
    assert Cp % groups == 0
    cpg = Cp // groups
    depthwise = (cpg == 1)

    # In-kernel row subsample when H divides evenly; otherwise fall back to XLA.
    h_stride = stride if (stride == 1 or H % stride == 0) else 1
    Hk = H // h_stride

    w1_bf = w1f.astype(jnp.bfloat16)
    b1r = b1.reshape(1, Cp).astype(jnp.float32)
    b2r = b2.reshape(1, Cp).astype(jnp.float32)

    if depthwise:  # pure VPU path, no densified weight
        w_dw = jnp.transpose(w2_torch[:, 0, :, :], (1, 2, 0)).reshape(9, Cp)
        w2_arg = (w_dw * s2[None, :]).astype(jnp.float32)
        w2_spec = pl.BlockSpec((9, Cp), lambda n: (0, 0))
    else:
        w_dense = grouped_to_dense(w2_torch, groups) * s2[None, None, None, :]
        w2_arg = w_dense.reshape(9, Cp, Cp).astype(jnp.bfloat16)
        w2_spec = pl.BlockSpec((9, Cp, Cp), lambda n: (0, 0, 0))

    out = pl.pallas_call(
        functools.partial(_conv12_kernel, h_stride=h_stride, depthwise=depthwise),
        out_shape=jax.ShapeDtypeStruct((N, Hk, W, Cp), jnp.bfloat16),
        grid_spec=pltpu.PrefetchScalarGridSpec(
            num_scalar_prefetch=0,
            grid=(N,),
            in_specs=[
                pl.BlockSpec((None, H, W, Cin), lambda n: (n, 0, 0, 0)),
                pl.BlockSpec((Cin, Cp), lambda n: (0, 0)),
                pl.BlockSpec((1, Cp), lambda n: (0, 0)),
                w2_spec,
                pl.BlockSpec((1, Cp), lambda n: (0, 0)),
            ],
            out_specs=pl.BlockSpec((None, Hk, W, Cp), lambda n: (n, 0, 0, 0)),
            scratch_shapes=[pltpu.VMEM((H + 2, W + 2, Cp), jnp.bfloat16)],
        ),
        compiler_params=pltpu.CompilerParams(
            dimension_semantics=("parallel",),
            vmem_limit_bytes=VMEM_LIMIT),
    )(x_nhwc, w1_bf, b1r, w2_arg, b2r)

    # TODO(synk): move the W subsample into the kernel (sublane-strided reads) so
    # stride-2 blocks write only the strided columns.
    if h_stride != stride:                 # non-divisible H fallback
        out = out[:, ::stride, :, :]
    if stride > 1:
        out = out[:, :, ::stride, :]
    return out


# ----------------------------------------------------------------------------
# Kernel B: fused conv3(1x1)+BN3 + shortcut (conv1x1+BN or identity) + DPN merge + ReLU
# ----------------------------------------------------------------------------
def _tail_first_kernel(out2_ref, xsc_ref, w3_ref, b3_ref, wsc_ref, bsc_ref, o_ref, *, d):
    out3 = jnp.dot(out2_ref[...].astype(jnp.bfloat16), w3_ref[...],
                   preferred_element_type=jnp.float32) + b3_ref[...]
    xsc = jnp.dot(xsc_ref[...].astype(jnp.bfloat16), wsc_ref[...],
                  preferred_element_type=jnp.float32) + bsc_ref[...]
    merged = jnp.concatenate(
        [xsc[:, :d] + out3[:, :d], xsc[:, d:], out3[:, d:]], axis=1)
    o_ref[...] = jnp.maximum(merged, 0.0).astype(o_ref.dtype)


def _tail_identity_kernel(out2_ref, x_ref, w3_ref, b3_ref, o_ref, *, d):
    out3 = jnp.dot(out2_ref[...].astype(jnp.bfloat16), w3_ref[...],
                   preferred_element_type=jnp.float32) + b3_ref[...]
    xsc = x_ref[...].astype(jnp.float32)
    merged = jnp.concatenate(
        [xsc[:, :d] + out3[:, :d], xsc[:, d:], out3[:, d:]], axis=1)
    o_ref[...] = jnp.maximum(merged, 0.0).astype(o_ref.dtype)


def fused_tail(out2, x_sc, w3f, b3, *, d, wscf=None, bsc=None, max_tm=512):
    """relu(cat([sc(x)[:, :d] + (out2@w3f+b3)[:, :d], sc(x)[:, d:], out3[:, d:]]))."""
    M, Cin = out2.shape
    M2, Cx = x_sc.shape
    assert M == M2
    C3 = w3f.shape[1]
    first = wscf is not None
    Cx_eff = C3 if first else Cx
    Cout = Cx_eff + (C3 - d)

    tm = _choose_tm(M, max_tm)
    out2p, M0 = _pad_rows(out2, tm)
    xscp, _ = _pad_rows(x_sc, tm)
    Mp = out2p.shape[0]
    b3r = b3.reshape(1, C3).astype(jnp.float32)

    if first:
        bscr = bsc.reshape(1, C3).astype(jnp.float32)
        kern = functools.partial(_tail_first_kernel, d=d)
        in_specs = [
            pl.BlockSpec((tm, Cin), lambda i: (i, 0)),
            pl.BlockSpec((tm, Cx), lambda i: (i, 0)),
            pl.BlockSpec((Cin, C3), lambda i: (0, 0)),
            pl.BlockSpec((1, C3), lambda i: (0, 0)),
            pl.BlockSpec((Cx, C3), lambda i: (0, 0)),
            pl.BlockSpec((1, C3), lambda i: (0, 0)),
        ]
        args = (out2p, xscp, w3f.astype(jnp.bfloat16), b3r,
                wscf.astype(jnp.bfloat16), bscr)
    else:
        kern = functools.partial(_tail_identity_kernel, d=d)
        in_specs = [
            pl.BlockSpec((tm, Cin), lambda i: (i, 0)),
            pl.BlockSpec((tm, Cx), lambda i: (i, 0)),
            pl.BlockSpec((Cin, C3), lambda i: (0, 0)),
            pl.BlockSpec((1, C3), lambda i: (0, 0)),
        ]
        args = (out2p, xscp, w3f.astype(jnp.bfloat16), b3r)

    out = pl.pallas_call(
        kern,
        out_shape=jax.ShapeDtypeStruct((Mp, Cout), jnp.float32),
        grid_spec=pltpu.PrefetchScalarGridSpec(
            num_scalar_prefetch=0,
            grid=(Mp // tm,),
            in_specs=in_specs,
            out_specs=pl.BlockSpec((tm, Cout), lambda i: (i, 0)),
        ),
        compiler_params=pltpu.CompilerParams(
            dimension_semantics=("parallel",),
            vmem_limit_bytes=VMEM_LIMIT),
    )(*args)
    return out[:M0]


# ----------------------------------------------------------------------------
# Full Bottleneck forward (NHWC)
# ----------------------------------------------------------------------------
def bottleneck_forward(x_nhwc, params, *, out_planes, dense_depth, stride,
                       first_layer, groups=32):
    N, H, W, Cin = x_nhwc.shape
    in_planes = params["w1"].shape[0]
    C3 = out_planes + dense_depth

    # conv1 (1x1)+bn1+relu -> conv2 (3x3, groups, stride, pad=1)+bn2+relu: one kernel
    s1, b1 = bn_fold(*params["bn1"])
    w1 = jnp.transpose(params["w1"][:, :, 0, 0]) * s1[None, :]      # (Cin, in_planes)
    s2, b2 = bn_fold(*params["bn2"])
    out2 = fused_conv1_conv2_bn_relu(x_nhwc, w1, b1, params["w2"], s2, b2,
                                     groups=groups, stride=stride)
    _, Ho, Wo, _ = out2.shape
    out2_flat = out2.reshape(N * Ho * Wo, in_planes)

    # conv3 + shortcut + DPN merge + relu — single fused kernel
    s3, b3 = bn_fold(*params["bn3"])
    w3 = jnp.transpose(params["w3"][:, :, 0, 0]) * s3[None, :]      # (in_planes, C3)
    if first_layer:
        ssc, bsc = bn_fold(*params["bn_sc"])
        wsc = jnp.transpose(params["w_sc"][:, :, 0, 0]) * ssc[None, :]  # (Cin, C3)
        # TODO(synk): fold this strided subsample into the tail kernel's index_map.
        x_sc = x_nhwc[:, ::stride, ::stride, :].reshape(N * Ho * Wo, Cin)
        merged = fused_tail(out2_flat, x_sc, w3, b3, d=out_planes,
                            wscf=wsc, bsc=bsc)
    else:
        assert stride == 1, "identity shortcut requires stride == 1"
        x_sc = x_nhwc.reshape(N * H * W, Cin)
        merged = fused_tail(out2_flat, x_sc, w3, b3, d=out_planes)

    return merged.reshape(N, Ho, Wo, merged.shape[1])


# ----------------------------------------------------------------------------
# Pure-JAX reference (lax convs, f32) for correctness check
# ----------------------------------------------------------------------------
def reference_forward(x_nhwc, params, *, out_planes, dense_depth, stride,
                      first_layer, groups=32):
    dn = ("NHWC", "HWIO", "NHWC")

    def conv1x1(x, w_torch, s=1):
        w = jnp.transpose(w_torch, (2, 3, 1, 0))
        return jax.lax.conv_general_dilated(x, w, (s, s), "VALID",
                                            dimension_numbers=dn)

    def bn(x, p):
        scale, bias = bn_fold(*p)
        return x * scale + bias

    out = jax.nn.relu(bn(conv1x1(x_nhwc, params["w1"]), params["bn1"]))
    w2 = jnp.transpose(params["w2"], (2, 3, 1, 0))
    out = jax.lax.conv_general_dilated(out, w2, (stride, stride),
                                       ((1, 1), (1, 1)), dimension_numbers=dn,
                                       feature_group_count=groups)
    out = jax.nn.relu(bn(out, params["bn2"]))
    out = bn(conv1x1(out, params["w3"]), params["bn3"])
    if first_layer:
        xsc = bn(conv1x1(x_nhwc, params["w_sc"], s=stride), params["bn_sc"])
    else:
        xsc = x_nhwc
    d = out_planes
    merged = jnp.concatenate(
        [xsc[..., :d] + out[..., :d], xsc[..., d:], out[..., d:]], axis=-1)
    return jax.nn.relu(merged)


# ----------------------------------------------------------------------------
# Deterministic parameter init (shapes from Bottleneck.__init__)
# ----------------------------------------------------------------------------
def init_params(key, last_planes, in_planes, out_planes, dense_depth, groups=32):
    C3 = out_planes + dense_depth
    ks = jax.random.split(key, 8)

    def w(k, shape):
        return jax.random.normal(k, shape, jnp.float32) * 0.1

    def bn(k, c):
        k1, k2, k3, k4 = jax.random.split(k, 4)
        gamma = jax.random.uniform(k1, (c,), jnp.float32, 0.5, 1.5)
        beta = jax.random.normal(k2, (c,), jnp.float32) * 0.1
        mean = jax.random.normal(k3, (c,), jnp.float32) * 0.1
        var = jax.random.uniform(k4, (c,), jnp.float32, 0.5, 1.5)
        return (gamma, beta, mean, var)

    return dict(
        w1=w(ks[0], (in_planes, last_planes, 1, 1)),
        bn1=bn(ks[1], in_planes),
        w2=w(ks[2], (in_planes, in_planes // groups, 3, 3)),
        bn2=bn(ks[3], in_planes),
        w3=w(ks[4], (C3, in_planes, 1, 1)),
        bn3=bn(ks[5], C3),
        w_sc=w(ks[6], (C3, last_planes, 1, 1)),
        bn_sc=bn(ks[7], C3),
    )


if __name__ == "__main__":
    key = jax.random.PRNGKey(0)

    # (name, N, H, W, last_planes, in_planes, out_planes, dense_depth, stride, first_layer)
    configs = [
        ("first_stride1",      2, 16, 16, 16, 32, 16, 8, 1, True),
        ("identity_shortcut",  2, 16, 16, 32, 32, 16, 8, 1, False),
        ("first_stride2",      2, 16, 16, 16, 32, 16, 8, 2, True),
        ("first_cpg2",         2,  8,  8, 16, 64, 16, 8, 1, True),
    ]

    for cfg_i, (name, N, H, W, lp, ip, op, dd, stride, first) in enumerate(configs):
        kx, kp = jax.random.split(jax.random.fold_in(key, cfg_i))
        x_nchw = jax.random.normal(kx, (N, lp, H, W), jnp.float32)
        x_nhwc = jnp.transpose(x_nchw, (0, 2, 3, 1))
        params = init_params(kp, lp, ip, op, dd)

        fwd = jax.jit(functools.partial(
            bottleneck_forward, out_planes=op, dense_depth=dd,
            stride=stride, first_layer=first))
        ref_fn = jax.jit(functools.partial(
            reference_forward, out_planes=op, dense_depth=dd,
            stride=stride, first_layer=first))

        out = jax.block_until_ready(fwd(x_nhwc, params))
        ref = jax.block_until_ready(ref_fn(x_nhwc, params))

        Ho, Wo = H // stride, W // stride
        Cout = (op + 2 * dd) if first else (lp + dd)
        assert out.shape == (N, Ho, Wo, Cout), (name, out.shape)
        err = float(jnp.max(jnp.abs(out - ref)))
        assert err < 5e-2, f"{name}: max abs err {err}"

    print("KERNEL_OK")
</pallas_src>

<mosaic_0001>
module attributes {stable_mosaic.version = 11 : i64} {
  func.func @_tail_first_kernel(%arg0: i32, %arg1: memref<256x32xbf16, #tpu.memory_space<vmem>>, %arg2: memref<256x16xf32, #tpu.memory_space<vmem>>, %arg3: memref<32x24xbf16, #tpu.memory_space<vmem>>, %arg4: memref<1x24xf32, #tpu.memory_space<vmem>>, %arg5: memref<16x24xbf16, #tpu.memory_space<vmem>>, %arg6: memref<1x24xf32, #tpu.memory_space<vmem>>, %arg7: memref<256x32xf32, #tpu.memory_space<vmem>>) attributes {dimension_semantics = [#tpu.dimension_semantics<parallel>], iteration_bounds = array<i64: 2>, scalar_prefetch = 0 : i64, scratch_operands = 0 : i64, tpu.core_type = #tpu.core_type<tc>, window_params = [{transform_indices = @transform_0, window_bounds = array<i64: 256, 32>}, {transform_indices = @transform_1, window_bounds = array<i64: 256, 16>}, {pipeline_mode = #tpu.pipeline_mode<synchronous>, transform_indices = @transform_2, window_bounds = array<i64: 32, 24>}, {pipeline_mode = #tpu.pipeline_mode<synchronous>, transform_indices = @transform_3, window_bounds = array<i64: 1, 24>}, {pipeline_mode = #tpu.pipeline_mode<synchronous>, transform_indices = @transform_4, window_bounds = array<i64: 16, 24>}, {pipeline_mode = #tpu.pipeline_mode<synchronous>, transform_indices = @transform_5, window_bounds = array<i64: 1, 24>}, {transform_indices = @transform_6, window_bounds = array<i64: 256, 32>}]} {
    %c0 = arith.constant 0 : index
    %c0_0 = arith.constant 0 : index
    %0 = vector.load %arg1[%c0, %c0_0] : memref<256x32xbf16, #tpu.memory_space<vmem>>, vector<256x32xbf16>
    %c0_1 = arith.constant 0 : index
    %c0_2 = arith.constant 0 : index
    %1 = vector.load %arg3[%c0_1, %c0_2] : memref<32x24xbf16, #tpu.memory_space<vmem>>, vector<32x24xbf16>
    %cst = arith.constant dense<0.000000e+00> : vector<256x24xf32>
    %2 = tpu.matmul %0, %1, %cst {dimension_numbers = #tpu.dot_dimension_numbers<[1], [0], [0], [1], [0, 0, 1, 1], [], []>} : vector<256x32xbf16>, vector<32x24xbf16>, vector<256x24xf32> -> vector<256x24xf32>
    %c0_3 = arith.constant 0 : index
    %c0_4 = arith.constant 0 : index
    %3 = vector.load %arg4[%c0_3, %c0_4] : memref<1x24xf32, #tpu.memory_space<vmem>>, vector<1x24xf32>
    %4 = vector.broadcast %3 : vector<1x24xf32> to vector<256x24xf32>
    %5 = arith.addf %2, %4 : vector<256x24xf32>
    %c0_5 = arith.constant 0 : index
    %c0_6 = arith.constant 0 : index
    %6 = vector.load %arg2[%c0_5, %c0_6] : memref<256x16xf32, #tpu.memory_space<vmem>>, vector<256x16xf32>
    %7 = arith.truncf %6 : vector<256x16xf32> to vector<256x16xbf16>
    %c0_7 = arith.constant 0 : index
    %c0_8 = arith.constant 0 : index
    %8 = vector.load %arg5[%c0_7, %c0_8] : memref<16x24xbf16, #tpu.memory_space<vmem>>, vector<16x24xbf16>
    %cst_9 = arith.constant dense<0.000000e+00> : vector<256x24xf32>
    %9 = tpu.matmul %7, %8, %cst_9 {dimension_numbers = #tpu.dot_dimension_numbers<[1], [0], [0], [1], [0, 0, 1, 1], [], []>} : vector<256x16xbf16>, vector<16x24xbf16>, vector<256x24xf32> -> vector<256x24xf32>
    %c0_10 = arith.constant 0 : index
    %c0_11 = arith.constant 0 : index
    %10 = vector.load %arg6[%c0_10, %c0_11] : memref<1x24xf32, #tpu.memory_space<vmem>>, vector<1x24xf32>
    %11 = vector.broadcast %10 : vector<1x24xf32> to vector<256x24xf32>
    %12 = arith.addf %9, %11 : vector<256x24xf32>
    %13 = vector.extract_strided_slice %12 {offsets = [0, 0], sizes = [256, 16], strides = [1, 1]} : vector<256x24xf32> to vector<256x16xf32>
    %14 = vector.extract_strided_slice %5 {offsets = [0, 0], sizes = [256, 16], strides = [1, 1]} : vector<256x24xf32> to vector<256x16xf32>
    %15 = arith.addf %13, %14 : vector<256x16xf32>
    %16 = vector.extract_strided_slice %12 {offsets = [0, 16], sizes = [256, 8], strides = [1, 1]} : vector<256x24xf32> to vector<256x8xf32>
    %17 = vector.extract_strided_slice %5 {offsets = [0, 16], sizes = [256, 8], strides = [1, 1]} : vector<256x24xf32> to vector<256x8xf32>
    %18 = tpu.concatenate %15, %16, %17 in 1 : vector<256x16xf32>, vector<256x8xf32>, vector<256x8xf32> -> vector<256x32xf32>
    %cst_12 = arith.constant 0.000000e+00 : f32
    %19 = vector.broadcast %cst_12 : f32 to vector<256x32xf32>
    %20 = arith.maximumf %18, %19 : vector<256x32xf32>
    %c0_13 = arith.constant 0 : index
    %c0_14 = arith.constant 0 : index
    %21 = vector.load %arg7[%c0_13, %c0_14] : memref<256x32xf32, #tpu.memory_space<vmem>>, vector<256x32xf32>
    tpu.vector_store %arg7[%c0_13, %c0_14], %20 {strides = array<i32>} : memref<256x32xf32, #tpu.memory_space<vmem>>, vector<256x32xf32>,
    return
  }
  func.func @transform_0(%arg0: i32) -> (i32, i32) {
    %c0_i32 = arith.constant 0 : i32
    %c0_i32_0 = arith.constant 0 : i32
    return %arg0, %c0_i32 : i32, i32
  }
  func.func @transform_1(%arg0: i32) -> (i32, i32) {
    %c0_i32 = arith.constant 0 : i32
    %c0_i32_0 = arith.constant 0 : i32
    return %arg0, %c0_i32 : i32, i32
  }
  func.func @transform_2(%arg0: i32) -> (i32, i32) {
    %c0_i32 = arith.constant 0 : i32
    %c0_i32_0 = arith.constant 0 : i32
    %c0_i32_1 = arith.constant 0 : i32
    return %c0_i32, %c0_i32_0 : i32, i32
  }
  func.func @transform_3(%arg0: i32) -> (i32, i32) {
    %c0_i32 = arith.constant 0 : i32
    %c0_i32_0 = arith.constant 0 : i32
    %c0_i32_1 = arith.constant 0 : i32
    return %c0_i32, %c0_i32_0 : i32, i32
  }
  func.func @transform_4(%arg0: i32) -> (i32, i32) {
    %c0_i32 = arith.constant 0 : i32
    %c0_i32_0 = arith.constant 0 : i32
    %c0_i32_1 = arith.constant 0 : i32
    return %c0_i32, %c0_i32_0 : i32, i32
  }
  func.func @transform_5(%arg0: i32) -> (i32, i32) {
    %c0_i32 = arith.constant 0 : i32
    %c0_i32_0 = arith.constant 0 : i32
    %c0_i32_1 = arith.constant 0 : i32
    return %c0_i32, %c0_i32_0 : i32, i32
  }
  func.func @transform_6(%arg0: i32) -> (i32, i32) {
    %c0_i32 = arith.constant 0 : i32
    %c0_i32_0 = arith.constant 0 : i32
    return %arg0, %c0_i32 : i32, i32
  }
}

module attributes {stable_mosaic.version = 11 : i64} {
  func.func @_conv12_kernel(%arg0: i32, %arg1: memref<1x16x16x16xf32, #tpu.memory_space<vmem>>, %arg2: memref<16x32xbf16, #tpu.memory_space<vmem>>, %arg3: memref<1x32xf32, #tpu.memory_space<vmem>>, %arg4: memref<9x32xf32, #tpu.memory_space<vmem>>, %arg5: memref<1x32xf32, #tpu.memory_space<vmem>>, %arg6: memref<1x16x16x32xbf16, #tpu.memory_space<vmem>>, %arg7: memref<18x18x32xbf16, #tpu.memory_space<vmem>>) attributes {dimension_semantics = [#tpu.dimension_semantics<parallel>], iteration_bounds = array<i64: 2>, scalar_prefetch = 0 : i64, scratch_operands = 1 : i64, tpu.core_type = #tpu.core_type<tc>, window_params = [{transform_indices = @transform_0, window_bounds = array<i64: 1, 16, 16, 16>}, {pipeline_mode = #tpu.pipeline_mode<synchronous>, transform_indices = @transform_1, window_bounds = array<i64: 16, 32>}, {pipeline_mode = #tpu.pipeline_mode<synchronous>, transform_indices = @transform_2, window_bounds = array<i64: 1, 32>}, {pipeline_mode = #tpu.pipeline_mode<synchronous>, transform_indices = @transform_3, window_bounds = array<i64: 9, 32>}, {pipeline_mode = #tpu.pipeline_mode<synchronous>, transform_indices = @transform_4, window_bounds = array<i64: 1, 32>}, {transform_indices = @transform_5, window_bounds = array<i64: 1, 16, 16, 32>}]} {
    %c0 = arith.constant 0 : index
    %c0_0 = arith.constant 0 : index
    %c0_1 = arith.constant 0 : index
    %c0_2 = arith.constant 0 : index
    %0 = vector.load %arg1[%c0, %c0_0, %c0_1, %c0_2] : memref<1x16x16x16xf32, #tpu.memory_space<vmem>>, vector<1x16x16x16xf32>
    %1 = vector.shape_cast %0 : vector<1x16x16x16xf32> to vector<16x16x16xf32>
    %2 = arith.truncf %1 : vector<16x16x16xf32> to vector<16x16x16xbf16>
    %3 = vector.shape_cast %2 : vector<16x16x16xbf16> to vector<256x16xbf16>
    %c0_3 = arith.constant 0 : index
    %c0_4 = arith.constant 0 : index
    %4 = vector.load %arg2[%c0_3, %c0_4] : memref<16x32xbf16, #tpu.memory_space<vmem>>, vector<16x32xbf16>
    %cst = arith.constant dense<0.000000e+00> : vector<256x32xf32>
    %5 = tpu.matmul %3, %4, %cst {dimension_numbers = #tpu.dot_dimension_numbers<[1], [0], [0], [1], [0, 0, 1, 1], [], []>} : vector<256x16xbf16>, vector<16x32xbf16>, vector<256x32xf32> -> vector<256x32xf32>
    %c0_5 = arith.constant 0 : index
    %c0_6 = arith.constant 0 : index
    %6 = vector.load %arg3[%c0_5, %c0_6] : memref<1x32xf32, #tpu.memory_space<vmem>>, vector<1x32xf32>
    %7 = vector.broadcast %6 : vector<1x32xf32> to vector<256x32xf32>
    %8 = arith.addf %5, %7 : vector<256x32xf32>
    %cst_7 = arith.constant 0.000000e+00 : f32
    %9 = vector.broadcast %cst_7 : f32 to vector<256x32xf32>
    %10 = arith.maximumf %8, %9 : vector<256x32xf32>
    %11 = arith.truncf %10 : vector<256x32xf32> to vector<256x32xbf16>
    %cst_8 = arith.constant 0.000000e+00 : bf16
    %12 = vector.broadcast %cst_8 : bf16 to vector<18x18x32xbf16>
    %c0_9 = arith.constant 0 : index
    %c0_10 = arith.constant 0 : index
    %c0_11 = arith.constant 0 : index
    %13 = vector.load %arg7[%c0_9, %c0_10, %c0_11] : memref<18x18x32xbf16, #tpu.memory_space<vmem>>, vector<18x18x32xbf16>
    tpu.vector_store %arg7[%c0_9, %c0_10, %c0_11], %12 {strides = array<i32>} : memref<18x18x32xbf16, #tpu.memory_space<vmem>>, vector<18x18x32xbf16>,
    %14 = vector.shape_cast %11 : vector<256x32xbf16> to vector<16x16x32xbf16>
    %c1 = arith.constant 1 : index
    %c1_12 = arith.constant 1 : index
    %c0_13 = arith.constant 0 : index
    %15 = vector.load %arg7[%c1, %c1_12, %c0_13] : memref<18x18x32xbf16, #tpu.memory_space<vmem>>, vector<16x16x32xbf16>
    tpu.vector_store %arg7[%c1, %c1_12, %c0_13], %14 {strides = array<i32>} : memref<18x18x32xbf16, #tpu.memory_space<vmem>>, vector<16x16x32xbf16>,
    %cst_14 = arith.constant 0.000000e+00 : f32
    %16 = vector.broadcast %cst_14 : f32 to vector<256x32xf32>
    %c0_15 = arith.constant 0 : index
    %c0_16 = arith.constant 0 : index
    %c0_17 = arith.constant 0 : index
    %17 = vector.load %arg7[%c0_15, %c0_16, %c0_17] : memref<18x18x32xbf16, #tpu.memory_space<vmem>>, vector<16x16x32xbf16>
    %18 = vector.shape_cast %17 : vector<16x16x32xbf16> to vector<256x32xbf16>
    %19 = arith.extf %18 : vector<256x32xbf16> to vector<256x32xf32>
    %c0_18 = arith.constant 0 : index
    %c0_19 = arith.constant 0 : index
    %20 = vector.load %arg4[%c0_18, %c0_19] : memref<9x32xf32, #tpu.memory_space<vmem>>, vector<1x32xf32>
    %21 = vector.broadcast %20 : vector<1x32xf32> to vector<256x32xf32>
    %22 = arith.mulf %19, %21 : vector<256x32xf32>
    %23 = arith.addf %16, %22 : vector<256x32xf32>
    %c0_20 = arith.constant 0 : index
    %c1_21 = arith.constant 1 : index
    %c0_22 = arith.constant 0 : index
    %24 = vector.load %arg7[%c0_20, %c1_21, %c0_22] : memref<18x18x32xbf16, #tpu.memory_space<vmem>>, vector<16x16x32xbf16>
    %25 = vector.shape_cast %24 : vector<16x16x32xbf16> to vector<256x32xbf16>
    %26 = arith.extf %25 : vector<256x32xbf16> to vector<256x32xf32>
    %c1_23 = arith.constant 1 : index
    %c0_24 = arith.constant 0 : index
    %27 = vector.load %arg4[%c1_23, %c0_24] : memref<9x32xf32, #tpu.memory_space<vmem>>, vector<1x32xf32>
    %28 = vector.broadcast %27 : vector<1x32xf32> to vector<256x32xf32>
    %29 = arith.mulf %26, %28 : vector<256x32xf32>
    %30 = arith.addf %23, %29 : vector<256x32xf32>
    %c0_25 = arith.constant 0 : index
    %c2 = arith.constant 2 : index
    %c0_26 = arith.constant 0 : index
    %31 = vector.load %arg7[%c0_25, %c2, %c0_26] : memref<18x18x32xbf16, #tpu.memory_space<vmem>>, vector<16x16x32xbf16>
    %32 = vector.shape_cast %31 : vector<16x16x32xbf16> to vector<256x32xbf16>
    %33 = arith.extf %32 : vector<256x32xbf16> to vector<256x32xf32>
    %c2_27 = arith.constant 2 : index
    %c0_28 = arith.constant 0 : index
    %34 = vector.load %arg4[%c2_27, %c0_28] : memref<9x32xf32, #tpu.memory_space<vmem>>, vector<1x32xf32>
    %35 = vector.broadcast %34 : vector<1x32xf32> to vector<256x32xf32>
    %36 = arith.mulf %33, %35 : vector<256x32xf32>
    %37 = arith.addf %30, %36 : vector<256x32xf32>
    %c1_29 = arith.constant 1 : index
    %c0_30 = arith.constant 0 : index
    %c0_31 = arith.constant 0 : index
    %38 = vector.load %arg7[%c1_29, %c0_30, %c0_31] : memref<18x18x32xbf16, #tpu.memory_space<vmem>>, vector<16x16x32xbf16>
    %39 = vector.shape_cast %38 : vector<16x16x32xbf16> to vector<256x32xbf16>
    %40 = arith.extf %39 : vector<256x32xbf16> to vector<256x32xf32>
    %c3 = arith.constant 3 : index
    %c0_32 = arith.constant 0 : index
    %41 = vector.load %arg4[%c3, %c0_32] : memref<9x32xf32, #tpu.memory_space<vmem>>, vector<1x32xf32>
    %42 = vector.broadcast %41 : vector<1x32xf32> to vector<256x32xf32>
    %43 = arith.mulf %40, %42 : vector<256x32xf32>
    %44 = arith.addf %37, %43 : vector<256x32xf32>
    %c1_33 = arith.constant 1 : index
    %c1_34 = arith.constant 1 : index
    %c0_35 = arith.constant 0 : index
    %45 = vector.load %arg7[%c1_33, %c1_34, %c0_35] : memref<18x18x32xbf16, #tpu.memory_space<vmem>>, vector<16x16x32xbf16>
    %46 = vector.shape_cast %45 : vector<16x16x32xbf16> to vector<256x32xbf16>
    %47 = arith.extf %46 : vector<256x32xbf16> to vector<256x32xf32>
    %c4 = arith.constant 4 : index
    %c0_36 = arith.constant 0 : index
    %48 = vector.load %arg4[%c4, %c0_36] : memref<9x32xf32, #tpu.memory_space<vmem>>, vector<1x32xf32>
    %49 = vector.broadcast %48 : vector<1x32xf32> to vector<256x32xf32>
    %50 = arith.mulf %47, %49 : vector<256x32xf32>
    %51 = arith.addf %44, %50 : vector<256x32xf32>
    %c1_37 = arith.constant 1 : index
    %c2_38 = arith.constant 2 : index
    %c0_39 = arith.constant 0 : index
    %52 = vector.load %arg7[%c1_37, %c2_38, %c0_39] : memref<18x18x32xbf16, #tpu.memory_space<vmem>>, vector<16x16x32xbf16>
    %53 = vector.shape_cast %52 : vector<16x16x32xbf16> to vector<256x32xbf16>
    %54 = arith.extf %53 : vector<256x32xbf16> to vector<256x32xf32>
    %c5 = arith.constant 5 : index
    %c0_40 = arith.constant 0 : index
    %55 = vector.load %arg4[%c5, %c0_40] : memref<9x32xf32, #tpu.memory_space<vmem>>, vector<1x32xf32>
    %56 = vector.broadcast %55 : vector<1x32xf32> to vector<256x32xf32>
    %57 = arith.mulf %54, %56 : vector<256x32xf32>
    %58 = arith.addf %51, %57 : vector<256x32xf32>
    %c2_41 = arith.constant 2 : index
    %c0_42 = arith.constant 0 : index
    %c0_43 = arith.constant 0 : index
    %59 = vector.load %arg7[%c2_41, %c0_42, %c0_43] : memref<18x18x32xbf16, #tpu.memory_space<vmem>>, vector<16x16x32xbf16>
    %60 = vector.shape_cast %59 : vector<16x16x32xbf16> to vector<256x32xbf16>
    %61 = arith.extf %60 : vector<256x32xbf16> to vector<256x32xf32>
    %c6 = arith.constant 6 : index
    %c0_44 = arith.constant 0 : index
    %62 = vector.load %arg4[%c6, %c0_44] : memref<9x32xf32, #tpu.memory_space<vmem>>, vector<1x32xf32>
    %63 = vector.broadcast %62 : vector<1x32xf32> to vector<256x32xf32>
    %64 = arith.mulf %61, %63 : vector<256x32xf32>
    %65 = arith.addf %58, %64 : vector<256x32xf32>
    %c2_45 = arith.constant 2 : index
    %c1_46 = arith.constant 1 : index
    %c0_47 = arith.constant 0 : index
    %66 = vector.load %arg7[%c2_45, %c1_46, %c0_47] : memref<18x18x32xbf16, #tpu.memory_space<vmem>>, vector<16x16x32xbf16>
    %67 = vector.shape_cast %66 : vector<16x16x32xbf16> to vector<256x32xbf16>
    %68 = arith.extf %67 : vector<256x32xbf16> to vector<256x32xf32>
    %c7 = arith.constant 7 : index
    %c0_48 = arith.constant 0 : index
    %69 = vector.load %arg4[%c7, %c0_48] : memref<9x32xf32, #tpu.memory_space<vmem>>, vector<1x32xf32>
    %70 = vector.broadcast %69 : vector<1x32xf32> to vector<256x32xf32>
    %71 = arith.mulf %68, %70 : vector<256x32xf32>
    %72 = arith.addf %65, %71 : vector<256x32xf32>
    %c2_49 = arith.constant 2 : index
    %c2_50 = arith.constant 2 : index
    %c0_51 = arith.constant 0 : index
    %73 = vector.load %arg7[%c2_49, %c2_50, %c0_51] : memref<18x18x32xbf16, #tpu.memory_space<vmem>>, vector<16x16x32xbf16>
    %74 = vector.shape_cast %73 : vector<16x16x32xbf16> to vector<256x32xbf16>
    %75 = arith.extf %74 : vector<256x32xbf16> to vector<256x32xf32>
    %c8 = arith.constant 8 : index
    %c0_52 = arith.constant 0 : index
    %76 = vector.load %arg4[%c8, %c0_52] : memref<9x32xf32, #tpu.memory_space<vmem>>, vector<1x32xf32>
    %77 = vector.broadcast %76 : vector<1x32xf32> to vector<256x32xf32>
    %78 = arith.mulf %75, %77 : vector<256x32xf32>
    %79 = arith.addf %72, %78 : vector<256x32xf32>
    %c0_53 = arith.constant 0 : index
    %c0_54 = arith.constant 0 : index
    %80 = vector.load %arg5[%c0_53, %c0_54] : memref<1x32xf32, #tpu.memory_space<vmem>>, vector<1x32xf32>
    %81 = vector.broadcast %80 : vector<1x32xf32> to vector<256x32xf32>
    %82 = arith.addf %79, %81 : vector<256x32xf32>
    %cst_55 = arith.constant 0.000000e+00 : f32
    %83 = vector.broadcast %cst_55 : f32 to vector<256x32xf32>
    %84 = arith.maximumf %82, %83 : vector<256x32xf32>
    %85 = vector.shape_cast %84 : vector<256x32xf32> to vector<16x16x32xf32>
    %86 = arith.truncf %85 : vector<16x16x32xf32> to vector<16x16x32xbf16>
    %c0_56 = arith.constant 0 : index
    %c0_57 = arith.constant 0 : index
    %c0_58 = arith.constant 0 : index
    %c0_59 = arith.constant 0 : index
    %87 = vector.load %arg6[%c0_56, %c0_57, %c0_58, %c0_59] : memref<1x16x16x32xbf16, #tpu.memory_space<vmem>>, vector<1x16x16x32xbf16>
    %88 = vector.shape_cast %87 : vector<1x16x16x32xbf16> to vector<16x16x32xbf16>
    %89 = vector.shape_cast %86 : vector<16x16x32xbf16> to vector<1x16x16x32xbf16>
    tpu.vector_store %arg6[%c0_56, %c0_57, %c0_58, %c0_59], %89 {strides = array<i32>} : memref<1x16x16x32xbf16, #tpu.memory_space<vmem>>, vector<1x16x16x32xbf16>,
    return
  }
  func.func @transform_0(%arg0: i32) -> (i32, i32, i32, i32) {
    %c0_i32 = arith.constant 0 : i32
    %c0_i32_0 = arith.constant 0 : i32
    %c0_i32_1 = arith.constant 0 : i32
    %c0_i32_2 = arith.constant 0 : i32
    return %arg0, %c0_i32, %c0_i32_0, %c0_i32_1 : i32, i32, i32, i32
  }
  func.func @transform_1(%arg0: i32) -> (i32, i32) {
    %c0_i32 = arith.constant 0 : i32
    %c0_i32_0 = arith.constant 0 : i32
    %c0_i32_1 = arith.constant 0 : i32
    return %c0_i32, %c0_i32_0 : i32, i32
  }
  func.func @transform_2(%arg0: i32) -> (i32, i32) {
    %c0_i32 = arith.constant 0 : i32
    %c0_i32_0 = arith.constant 0 : i32
    %c0_i32_1 = arith.constant 0 : i32
    return %c0_i32, %c0_i32_0 : i32, i32
  }
  func.func @transform_3(%arg0: i32) -> (i32, i32) {
    %c0_i32 = arith.constant 0 : i32
    %c0_i32_0 = arith.constant 0 : i32
    %c0_i32_1 = arith.constant 0 : i32
    return %c0_i32, %c0_i32_0 : i32, i32
  }
  func.func @transform_4(%arg0: i32) -> (i32, i32) {
    %c0_i32 = arith.constant 0 : i32
    %c0_i32_0 = arith.constant 0 : i32
    %c0_i32_1 = arith.constant 0 : i32
    return %c0_i32, %c0_i32_0 : i32, i32
  }
  func.func @transform_5(%arg0: i32) -> (i32, i32, i32, i32) {
    %c0_i32 = arith.constant 0 : i32
    %c0_i32_0 = arith.constant 0 : i32
    %c0_i32_1 = arith.constant 0 : i32
    %c0_i32_2 = arith.constant 0 : i32
    return %arg0, %c0_i32, %c0_i32_0, %c0_i32_1 : i32, i32, i32, i32
  }
}

</mosaic_0001>

<bundles_post_ra>
// kernel: bottleneck_forward.3
= control target key start
LH: loop header
LB: loop body
LE: loop exit
PB: predicated region body
PF: predicated region fallthrough
CT: control target
= control target key end

     0   :  { %11 = vsyncpa [#allocation3], 0  ;;  %s2142_s0 = inlined_call_operand.vmem [shape: bf16[512,32], index: 0, kind: input, shape index: {}]   ;;  %s2143_s1 = inlined_call_operand.vmem [shape: f32[512,16], index: 1, kind: input, shape index: {}]   ;;  %s2144_s2 = inlined_call_operand.vmem [shape: bf16[32,24], index: 2, kind: input, shape index: {}]   ;;  %s2145_s3 = inlined_call_operand.vmem [shape: f32[1,24], index: 3, kind: input, shape index: {}]   ;;  %s2146_s4 = inlined_call_operand.vmem [shape: bf16[16,24], index: 4, kind: input, shape index: {}]   ;;  %s2147_s5 = inlined_call_operand.vmem [shape: f32[1,24], index: 5, kind: input, shape index: {}]   ;;  %s2148_s6 = inlined_call_operand.hbm [shape: f32[512,32], index: 6, kind: output, shape index: {}]  }
   0x1   :  { %13 = vsyncpa [#allocation3 + $0x1], 0  ;;  %s1606_s21 = smov 0   ;;  %s1608_s22 = smov 0  }
   0x2   :  { %s1610_s23 = smov 0   ;;  %s1612_s24 = smov 0  }
   0x3 LB: > { %s1627_s25 = sadd.s32 4294967295, %s1566_s24   ;;  %s1271_s26 = sadd.s32 4294967294, %s1566_s24   ;;  %s1566_s24 = sphi %s1612_s24, %s2154_s24   ;;  %s1562_s23 = sphi %s1610_s23, %s2153_s23   ;;  %s1558_s22 = sphi %s1608_s22, %s2152_s22   ;;  %s1554_s21 = sphi %s1606_s21, %s2151_s21  }
   0x4   : > { %s1631_s27 = sadd.s32 1, %s1566_s24   ;;  %s162_s28 = sadd.s32 1, %s1562_s23 }
   0x5   : > { %s159_s29 = ssub.s32 %s1566_s24, %s1631_s27  ;;  %p172_p0 = scmp.ne.s32.totalorder %s1562_s23, %s1558_s22 }
   0x6   : > { %p160_p1 = scmp.eq.s32.totalorder %s159_s29, 0  ;;  %p173_p2 = scmp.eq.s32.totalorder %s1627_s25, 1 }
   0x7   : > { %p178_p3 = scmp.ne.s32.totalorder %s1558_s22, %s1554_s21  ;;  %p179_p4 = scmp.eq.s32.totalorder %s1271_s26, 1 }
   0x8   : > { %s1642_s30 = scalar_select %p160_p1, %s1562_s23, %s162_s28  }
   0x9   : > { %p1644_p5 = por %p173_p2, %p172_p0  ;;  %p1648_p6 = por %p179_p4, %p178_p3 }
   0xa   : > { %p1274_p7 = scmp.ge.s32.totalorder %s1566_s24, 1  ;;  %p227_p8 = scmp.lt.s32.totalorder %s1566_s24, 3 }
   0xc   : > { %p228_p9 = pnand %p1274_p7, %p227_p8 }
   0xd   : > { %v1485_v0 = vld [vmem:[%s2144_s2] sm:$0xff] (!%p228_p9)   ;;  %s1276_s11 = sshll.u32 (!%p228_p9), %s1627_s25, 5  ;;  %v1486_v1 = vld [vmem:[%s2144_s2 + $0x8] sm:$0xff] (!%p228_p9)   ;;  %vm411_vm0 = vcmask (!%p228_p9), 261120   ;;  %vm684_vm1 = vcmask (!%p228_p9), 130048   ;;  %s1568_s13 = smov (!%p228_p9), 8  }
   0xe   : > { %231 = sbr.rel (%p228_p9) target bundleno = 436 (0x1b4), region = 44  ;;  %p263_p10 = scmp.lt.s32.totalorder (!%p228_p9), %s1276_s11, 63  ;;  %1374 = vmatprep.subr.bf16.mxu0 (!%p228_p9), %v1485_v0  ;;  %v1487_v2 = vld [vmem:[%s2146_s4] sm:$0xff] (!%p228_p9)   ;;  %vm1086_vm2 = vcmask (!%p228_p9), 195584  }
   0xf   : > { %1375 = vmatpush3.bf16.msra.mxu0 (!%p228_p9), %v1485_v0  ;;  %1410 = vmatprep.subr.bf16.mxu1 (!%p228_p9), %v1487_v2  ;;  %s259_s14 = sand.u32 (!%p228_p9), 1, %s1558_s22  }
  0x10   : > { %1376 = vmatprep.subr.bf16.mxu0 (!%p228_p9), %v1486_v1  ;;  %1411 = vmatpush3.bf16.msra.mxu1 (!%p228_p9), %v1487_v2  ;;  %s1275_s15 = sshll.u32 (!%p228_p9), %s259_s14, 8 }
  0x13   : > { %1377 = vmatpush3.bf16.msra.mxu0 (!%p228_p9), %v1486_v1 }
  0x15   : > { %s2156_s11 = smov (!%p263_p10, %s1276_s11), 63 }
  0x16   : > { %s1277_s16 = sshll.u32 %s2156_s11, 2  ;;  %s1279_s17 = sshll.u32 %s2156_s11, 3 }
  0x17   : > { %s1667_s20 = scalar_lea.vmem %s2142_s0, %s1277_s16  ;;  %s1672_s29 = scalar_lea.vmem %s2143_s1, %s1279_s17 }
  0x18   : > { %v1488_v3 = vld [vmem:[%s1667_s20] sm:$0xff]   ;;  %v622_v5 = vld [vmem:[%s1672_s29 + $0x8] sm:$0xff]  ;;  %v623_v8 = vld [vmem:[%s1672_s29 + $0x10] sm:$0xff]  ;;  %s1963_s16 = scalar_lea.vmem [#allocation2], %s1275_s15  ;;  %s1338_s17 = sshll.u32 %s1627_s25, 12 }
  0x19   : > { %v621_v4 = vld [vmem:[%s1672_s29] sm:$0xff]  ;;  %1378 = vmatprep.mubr.msk.bf16.mxu0 %vm411_vm0, %v1488_v3  ;;  %v1489_v7 = vld [vmem:[%s1667_s20 + $0x8] sm:$0xff]   ;;  %v624_v9 = vld [vmem:[%s1672_s29 + $0x18] sm:$0xff]  ;;  %s1197_s18 = sshll.u32 %s1963_s16, 4  ;;  %s2090_s26 = scalar_lea.hbm %s2148_s6, %s1338_s17  ;;  %s2094_s18 = int_to_ptr.vmem [resolvable:$true] %s1197_s18 }
  0x1a   : > { %v653_v6 = vpack.c.bf16 %v622_v5, %v621_v4  ;;  %1379 = vmatmul.mubr.msk.bf16.vlgmr.msra.gmra.mrb[0].mxu0 %vm411_vm0, %v1489_v7  ;;  %v654_v10 = vpack.c.bf16 %v624_v9, %v623_v8  ;;  %v1490_v11 = vld [vmem:[%s1667_s20 + $0x10] sm:$0xff]   ;;  %v625_v12 = vld [vmem:[%s1672_s29 + $0x20] sm:$0xff]  ;;  %v626_v13 = vld [vmem:[%s1672_s29 + $0x28] sm:$0xff]  ;;  %s2100_s25 = scalar_lea.sflag [#allocation3], %s259_s14  ;;  %s1504_s28 = scalar_lea.vmem %s2094_s18, 4096 }
  0x1b   : > { %v655_v14 = vpack.c.bf16 %v626_v13, %v625_v12  ;;  %1382 = vmatprep.mubr.msk.bf16.mxu0 %vm411_vm0, %v1490_v11  ;;  %v1491_v15 = vld [vmem:[%s1667_s20 + $0x18] sm:$0xff]   ;;  %v627_v16 = vld [vmem:[%s1672_s29 + $0x30] sm:$0xff]  ;;  %v629_v18 = vld [vmem:[%s1672_s29 + $0x40] sm:$0xff]  ;;  %p1505_p11 = scmp.ne.s32.totalorder %s2094_s18, %s1504_s28 }
  0x1c   : > { %1412 = vmatprep.mubr.msk.bf16.mxu1 %vm684_vm1, %v653_v6  ;;  %v628_v17 = vld [vmem:[%s1672_s29 + $0x38] sm:$0xff]  ;;  %v630_v19 = vld [vmem:[%s1672_s29 + $0x48] sm:$0xff]  ;;  %v1492_v20 = vld [vmem:[%s1667_s20 + $0x20] sm:$0xff]  }
  0x1d   : > { %1413 = vmatmul.mubr.msk.bf16.vlgmr.msra.gmra.mrb[0].mxu1 %vm684_vm1, %v654_v10  ;;  %v656_v21 = vpack.c.bf16 %v628_v17, %v627_v16  ;;  %v657_v22 = vpack.c.bf16 %v630_v19, %v629_v18  ;;  %v1493_v23 = vld [vmem:[%s1667_s20 + $0x28] sm:$0xff]   ;;  %v631_v24 = vld [vmem:[%s1672_s29 + $0x50] sm:$0xff]  ;;  %v632_v25 = vld [vmem:[%s1672_s29 + $0x58] sm:$0xff]  ;;  %p1506_p12 = pnand %p1505_p11, %p1644_p5 }
  0x1e   : > { %1416 = vmatprep.mubr.msk.bf16.mxu1 %vm684_vm1, %v655_v14  ;;  %v633_v26 = vld [vmem:[%s1672_s29 + $0x60] sm:$0xff]  ;;  %v634_v27 = vld [vmem:[%s1672_s29 + $0x68] sm:$0xff]  ;;  %v1494_v28 = vld [vmem:[%s1667_s20 + $0x30] sm:$0xff]   ;;  %v658_v29 = vpack.c.bf16 %v632_v25, %v631_v24 }
  0x1f   : > { %v659_v30 = vpack.c.bf16 %v634_v27, %v633_v26  ;;  %v635_v31 = vld [vmem:[%s1672_s29 + $0x70] sm:$0xff]  ;;  %v636_v32 = vld [vmem:[%s1672_s29 + $0x78] sm:$0xff]  ;;  %v637_v34 = vld [vmem:[%s1672_s29 + $0x80] sm:$0xff]  ;;  %p1507_p13 = pneg %p1506_p12 }
  0x20   : > { %v1495_v33 = vld [vmem:[%s1667_s20 + $0x38] sm:$0xff]   ;;  %v638_v35 = vld [vmem:[%s1672_s29 + $0x88] sm:$0xff]  ;;  %v1496_v36 = vld [vmem:[%s1667_s20 + $0x40] sm:$0xff]   ;;  %v660_v37 = vpack.c.bf16 %v636_v32, %v635_v31 }
  0x21   : > { %v661_v38 = vpack.c.bf16 %v638_v35, %v637_v34  ;;  %v639_v39 = vld [vmem:[%s1672_s29 + $0x90] sm:$0xff]  ;;  %v640_v40 = vld [vmem:[%s1672_s29 + $0x98] sm:$0xff]  ;;  %v1497_v41 = vld [vmem:[%s1667_s20 + $0x48] sm:$0xff]  }
  0x22   : > { %1383 = vmatmul.mubr.msk.bf16.gmra.mrb[4].mxu0 %vm411_vm0, %v1491_v15  ;;  %v641_v42 = vld [vmem:[%s1672_s29 + $0xa0] sm:$0xff]  ;;  %v642_v43 = vld [vmem:[%s1672_s29 + $0xa8] sm:$0xff]  ;;  %v1498_v44 = vld [vmem:[%s1667_s20 + $0x50] sm:$0xff]   ;;  %v662_v45 = vpack.c.bf16 %v640_v40, %v639_v39 }
  0x23   : > { %1386 = vmatprep.mubr.msk.bf16.mxu0 %vm411_vm0, %v1492_v20  ;;  %v663_v46 = vpack.c.bf16 %v642_v43, %v641_v42  ;;  %v643_v47 = vld [vmem:[%s1672_s29 + $0xb0] sm:$0xff]  ;;  %v644_v48 = vld [vmem:[%s1672_s29 + $0xb8] sm:$0xff]  ;;  %v645_v50 = vld [vmem:[%s1672_s29 + $0xc0] sm:$0xff] }
  0x24   : > { %v1499_v49 = vld [vmem:[%s1667_s20 + $0x58] sm:$0xff]   ;;  %v646_v51 = vld [vmem:[%s1672_s29 + $0xc8] sm:$0xff]  ;;  %v1500_v52 = vld [vmem:[%s1667_s20 + $0x60] sm:$0xff]   ;;  %v664_v53 = vpack.c.bf16 %v644_v48, %v643_v47 }
  0x25   : > { %1417 = vmatmul.mubr.msk.bf16.gmra.mrb[4].mxu1 %vm684_vm1, %v656_v21  ;;  %v665_v54 = vpack.c.bf16 %v646_v51, %v645_v50  ;;  %v647_v55 = vld [vmem:[%s1672_s29 + $0xd0] sm:$0xff]  ;;  %v648_v56 = vld [vmem:[%s1672_s29 + $0xd8] sm:$0xff]  ;;  %v1501_v57 = vld [vmem:[%s1667_s20 + $0x68] sm:$0xff]  }
  0x26   : > { %1420 = vmatprep.mubr.msk.bf16.mxu1 %vm684_vm1, %v657_v22  ;;  %v649_v58 = vld [vmem:[%s1672_s29 + $0xe0] sm:$0xff]  ;;  %v650_v59 = vld [vmem:[%s1672_s29 + $0xe8] sm:$0xff]  ;;  %v1502_v60 = vld [vmem:[%s1667_s20 + $0x70] sm:$0xff]   ;;  %v666_v61 = vpack.c.bf16 %v648_v56, %v647_v55 }
  0x27   : > { %v667_v62 = vpack.c.bf16 %v650_v59, %v649_v58  ;;  %v651_v63 = vld [vmem:[%s1672_s29 + $0xf0] sm:$0xff]  ;;  %v652_v0 = vld [vmem:[%s1672_s29 + $0xf8] sm:$0xff]  ;;  %v1757_v3 = vld [vmem:[%s2145_s3] ss:$0 sm:$0xff]  ;;  %s1569_s29 = smov [#allocation2]  }
  0x28   : > { %v1503_v1 = vld [vmem:[%s1667_s20 + $0x78] sm:$0xff]   ;;  %v668_v2 = vpack.c.bf16 %v652_v0, %v651_v63  ;;  %v1762_v5 = vld [vmem:[%s2147_s5] ss:$0 sm:$0xff]  ;;  %s1508_s9 = sshll.u32 %s1569_s29, 4  ;;  %s1509_s9 = int_to_ptr.vmem [resolvable:$false] %s1508_s9 }
  0x29   : > { %s1510_s10 = scalar_lea.vmem %s1509_s9, 8192  ;;  %p1511_p0 = scmp.lt.s32.totalorder %s2094_s18, %s1509_s9 }
  0x2a   : > { %1387 = vmatmul.mubr.msk.bf16.gmra.mrb[8].mxu0 %vm411_vm0, %v1493_v23  ;;  %p1512_p1 = scmp.lt.s32.totalorder %s1510_s10, %s1504_s28 }
  0x2b   : > { %1390 = vmatprep.mubr.msk.bf16.mxu0 %vm411_vm0, %v1494_v28 }
  0x2c   : > { %p1513_p2 = por %p1512_p1, %p1511_p0 }
  0x2d   : > { %1421 = vmatmul.mubr.msk.bf16.gmra.mrb[8].mxu1 %vm684_vm1, %v658_v29 }
  0x2e   : > { %1424 = vmatprep.mubr.msk.bf16.mxu1 %vm684_vm1, %v659_v30  ;;  %p1514_p3 = pnand %p1513_p2, %p1507_p13 }
  0x32   : > { %1391 = vmatmul.mubr.msk.bf16.gmra.mrb[12].mxu0 %vm411_vm0, %v1495_v33 }
  0x33   : > { %1394 = vmatprep.mubr.msk.bf16.mxu0 %vm411_vm0, %v1496_v36 }
  0x35   : > { %1425 = vmatmul.mubr.msk.bf16.gmra.mrb[12].mxu1 %vm684_vm1, %v660_v37 }
  0x36   : > { %1428 = vmatprep.mubr.msk.bf16.mxu1 %vm684_vm1, %v661_v38 }
  0x3a   : > { %1395 = vmatmul.mubr.msk.bf16.gmra.mrb[16].mxu0 %vm411_vm0, %v1497_v41 }
  0x3b   : > { %1398 = vmatprep.mubr.msk.bf16.mxu0 %vm411_vm0, %v1498_v44 }
  0x3d   : > { %1429 = vmatmul.mubr.msk.bf16.gmra.mrb[16].mxu1 %vm684_vm1, %v662_v45 }
  0x3e   : > { %1432 = vmatprep.mubr.msk.bf16.mxu1 %vm684_vm1, %v663_v46 }
  0x42   : > { %1399 = vmatmul.mubr.msk.bf16.gmra.mrb[20].mxu0 %vm411_vm0, %v1499_v49 }
  0x43   : > { %1402 = vmatprep.mubr.msk.bf16.mxu0 %vm411_vm0, %v1500_v52 }
  0x45   : > { %1433 = vmatmul.mubr.msk.bf16.gmra.mrb[20].mxu1 %vm684_vm1, %v664_v53 }
  0x46   : > { %1436 = vmatprep.mubr.msk.bf16.mxu1 %vm684_vm1, %v665_v54 }
  0x4a   : > { %1403 = vmatmul.mubr.msk.bf16.gmra.mrb[24].mxu0 %vm411_vm0, %v1501_v57 }
  0x4b   : > { %1406 = vmatprep.mubr.msk.bf16.mxu0 %vm411_vm0, %v1502_v60 }
  0x4d   : > { %1437 = vmatmul.mubr.msk.bf16.gmra.mrb[24].mxu1 %vm684_vm1, %v666_v61 }
  0x4e   : > { %1440 = vmatprep.mubr.msk.bf16.mxu1 %vm684_vm1, %v667_v62 }
  0x52   : > { %1407 = vmatmul.mubr.msk.bf16.gmra.mrb[28].mxu0 %vm411_vm0, %v1503_v1 }
  0x55   : > { %1441 = vmatmul.mubr.msk.bf16.gmra.mrb[28].mxu1 %vm684_vm1, %v668_v2 }
  0xed   : > { %v1380_v4 = vpop.f32.mrb[0].mxu0 }
  0xee   : > { %v503_v6 = vadd.f32 %v1380_v4, %v1757_v3  ;;  %v494_v7 = vpop.f32.mrb[1].mxu0 }
  0xef   : > { %v495_v9 = vadd.f32 %v1757_v3, %v494_v7  ;;  %v1381_v10 = vpop.f32.mrb[2].mxu0 }
  0xf0   : > { %v1414_v8 = vpop.f32.mrb[0].mxu1  ;;  %v506_v13 = vadd.f32 %v1381_v10, %v1757_v3  ;;  %962 = vrot.lane.b32.xlu1 %v503_v6, %s1568_s13  ;;  %v497_v14 = vpop.f32.mrb[3].mxu0 }
  0xf1   : > { %v776_v11 = vadd.f32 %v1414_v8, %v1762_v5  ;;  %v767_v12 = vpop.f32.mrb[1].mxu1  ;;  %v498_v17 = vadd.f32 %v1757_v3, %v497_v14  ;;  %958 = vrot.lane.b32.xlu0 %v495_v9, %s1568_s13 }
  0xf2   : > { %v768_v15 = vadd.f32 %v1762_v5, %v767_v12  ;;  %v1415_v16 = vpop.f32.mrb[2].mxu1 }
  0xf3   : > { %v896_v18 = vadd.f32 %v776_v11, %v503_v6  ;;  %v779_v19 = vadd.f32 %v1415_v16, %v1762_v5  ;;  %v770_v20 = vpop.f32.mrb[3].mxu1 }
  0xf4   : > { %v894_v21 = vadd.f32 %v768_v15, %v495_v9  ;;  %v771_v22 = vadd.f32 %v1762_v5, %v770_v20  ;;  %964 = vrot.lane.b32.xlu1 %v506_v13, %s1568_s13 }
  0xf5   : > { %v897_v23 = vadd.f32 %v779_v19, %v506_v13  ;;  %v1776_v24 = vsel %vm684_vm1, %v896_v18, %v776_v11  ;;  %v1384_v26 = vpop.f32.mrb[4].mxu0  ;;  %960 = vrot.lane.b32.xlu0 %v498_v17, %s1568_s13 }
  0xf6   : > { %v895_v25 = vadd.f32 %v771_v22, %v498_v17  ;;  %v1780_v27 = vsel %vm684_vm1, %v894_v21, %v768_v15  ;;  %v519_v28 = vadd.f32 %v1384_v26, %v1757_v3  ;;  %v510_v29 = vpop.f32.mrb[5].mxu0 }
  0xf7   : > { %v1784_v30 = vsel %vm684_vm1, %v897_v23, %v779_v19  ;;  %v511_v32 = vadd.f32 %v1757_v3, %v510_v29  ;;  %v1385_v33 = vpop.f32.mrb[6].mxu0 }
  0xf8   : > { %v1418_v31 = vpop.f32.mrb[4].mxu1  ;;  %v1788_v34 = vsel %vm684_vm1, %v895_v25, %v771_v22  ;;  %v522_v37 = vadd.f32 %v1385_v33, %v1757_v3  ;;  %v513_v38 = vpop.f32.mrb[7].mxu0 }
  0xf9   : > { %v792_v35 = vadd.f32 %v1418_v31, %v1762_v5  ;;  %v783_v36 = vpop.f32.mrb[5].mxu1  ;;  %v514_v41 = vadd.f32 %v1757_v3, %v513_v38  ;;  %970 = vrot.lane.b32.xlu0 %v519_v28, %s1568_s13 }
  0xfa   : > { %v784_v39 = vadd.f32 %v1762_v5, %v783_v36  ;;  %v1419_v40 = vpop.f32.mrb[6].mxu1  ;;  %972 = vrot.lane.b32.xlu1 %v522_v37, %s1568_s13 }
  0xfb   : > { %v900_v42 = vadd.f32 %v792_v35, %v519_v28  ;;  %v795_v43 = vadd.f32 %v1419_v40, %v1762_v5  ;;  %v786_v44 = vpop.f32.mrb[7].mxu1 }
  0xfc   : > { %v898_v45 = vadd.f32 %v784_v39, %v511_v32  ;;  %v787_v46 = vadd.f32 %v1762_v5, %v786_v44 }
  0xfd   : > { %v901_v47 = vadd.f32 %v795_v43, %v522_v37  ;;  %v1799_v48 = vsel %vm684_vm1, %v900_v42, %v792_v35  ;;  %v1388_v50 = vpop.f32.mrb[8].mxu0  ;;  %966 = vrot.lane.b32.xlu0 %v511_v32, %s1568_s13 }
  0xfe   : > { %v899_v49 = vadd.f32 %v787_v46, %v514_v41  ;;  %v1803_v51 = vsel %vm684_vm1, %v898_v45, %v784_v39  ;;  %v535_v52 = vadd.f32 %v1388_v50, %v1757_v3  ;;  %v526_v53 = vpop.f32.mrb[9].mxu0  ;;  %968 = vrot.lane.b32.xlu1 %v514_v41, %s1568_s13 }
  0xff   : > { %v1808_v54 = vsel %vm684_vm1, %v901_v47, %v795_v43  ;;  %v527_v56 = vadd.f32 %v1757_v3, %v526_v53  ;;  %v1389_v57 = vpop.f32.mrb[10].mxu0 }
 0x100   : > { %v1422_v55 = vpop.f32.mrb[8].mxu1  ;;  %v1812_v58 = vsel %vm684_vm1, %v899_v49, %v787_v46  ;;  %v538_v61 = vadd.f32 %v1389_v57, %v1757_v3  ;;  %v529_v62 = vpop.f32.mrb[11].mxu0 }
 0x101   : > { %v808_v59 = vadd.f32 %v1422_v55, %v1762_v5  ;;  %v799_v60 = vpop.f32.mrb[9].mxu1  ;;  %v530_v1 = vadd.f32 %v1757_v3, %v529_v62  ;;  %978 = vrot.lane.b32.xlu0 %v535_v52, %s1568_s13 }
 0x102   : > { %v800_v63 = vadd.f32 %v1762_v5, %v799_v60  ;;  %v1423_v0 = vpop.f32.mrb[10].mxu1  ;;  %980 = vrot.lane.b32.xlu1 %v538_v61, %s1568_s13 }
 0x103   : > { %v904_v2 = vadd.f32 %v808_v59, %v535_v52  ;;  %v811_v4 = vadd.f32 %v1423_v0, %v1762_v5  ;;  %v802_v6 = vpop.f32.mrb[11].mxu1 }
 0x104   : > { %v902_v7 = vadd.f32 %v800_v63, %v527_v56  ;;  %v803_v8 = vadd.f32 %v1762_v5, %v802_v6 }
 0x105   : > { %v905_v9 = vadd.f32 %v811_v4, %v538_v61  ;;  %v1823_v10 = vsel %vm684_vm1, %v904_v2, %v808_v59  ;;  %v1392_v12 = vpop.f32.mrb[12].mxu0  ;;  %974 = vrot.lane.b32.xlu0 %v527_v56, %s1568_s13 }
 0x106   : > { %v903_v11 = vadd.f32 %v803_v8, %v530_v1  ;;  %v1827_v13 = vsel %vm684_vm1, %v902_v7, %v800_v63  ;;  %v551_v14 = vadd.f32 %v1392_v12, %v1757_v3  ;;  %v542_v15 = vpop.f32.mrb[13].mxu0  ;;  %976 = vrot.lane.b32.xlu1 %v530_v1, %s1568_s13 }
 0x107   : > { %v1832_v16 = vsel %vm684_vm1, %v905_v9, %v811_v4  ;;  %v543_v18 = vadd.f32 %v1757_v3, %v542_v15  ;;  %v1393_v19 = vpop.f32.mrb[14].mxu0 }
 0x108   : > { %v1426_v17 = vpop.f32.mrb[12].mxu1  ;;  %v1836_v20 = vsel %vm684_vm1, %v903_v11, %v803_v8  ;;  %v554_v23 = vadd.f32 %v1393_v19, %v1757_v3  ;;  %v545_v25 = vpop.f32.mrb[15].mxu0 }
 0x109   : > { %v824_v21 = vadd.f32 %v1426_v17, %v1762_v5  ;;  %v815_v22 = vpop.f32.mrb[13].mxu1  ;;  %v546_v29 = vadd.f32 %v1757_v3, %v545_v25  ;;  %986 = vrot.lane.b32.xlu0 %v551_v14, %s1568_s13 }
 0x10a   : > { %v816_v26 = vadd.f32 %v1762_v5, %v815_v22  ;;  %v1427_v28 = vpop.f32.mrb[14].mxu1  ;;  %988 = vrot.lane.b32.xlu1 %v554_v23, %s1568_s13 }
 0x10b   : > { %v908_v31 = vadd.f32 %v824_v21, %v551_v14  ;;  %v827_v32 = vadd.f32 %v1427_v28, %v1762_v5  ;;  %v818_v33 = vpop.f32.mrb[15].mxu1 }
 0x10c   : > { %v906_v35 = vadd.f32 %v816_v26, %v543_v18  ;;  %v819_v36 = vadd.f32 %v1762_v5, %v818_v33 }
 0x10d   : > { %v909_v37 = vadd.f32 %v827_v32, %v554_v23  ;;  %v1847_v38 = vsel %vm684_vm1, %v908_v31, %v824_v21  ;;  %v1396_v40 = vpop.f32.mrb[16].mxu0  ;;  %982 = vrot.lane.b32.xlu0 %v543_v18, %s1568_s13 }
 0x10e   : > { %v907_v39 = vadd.f32 %v819_v36, %v546_v29  ;;  %v1851_v41 = vsel %vm684_vm1, %v906_v35, %v816_v26  ;;  %v567_v42 = vadd.f32 %v1396_v40, %v1757_v3  ;;  %v558_v43 = vpop.f32.mrb[17].mxu0  ;;  %984 = vrot.lane.b32.xlu1 %v546_v29, %s1568_s13 }
 0x10f   : > { %v1856_v44 = vsel %vm684_vm1, %v909_v37, %v827_v32  ;;  %v559_v46 = vadd.f32 %v1757_v3, %v558_v43  ;;  %v1397_v47 = vpop.f32.mrb[18].mxu0 }
 0x110   : > { %v1430_v45 = vpop.f32.mrb[16].mxu1  ;;  %v1860_v49 = vsel %vm684_vm1, %v907_v39, %v819_v36  ;;  %v570_v53 = vadd.f32 %v1397_v47, %v1757_v3  ;;  %v561_v55 = vpop.f32.mrb[19].mxu0 }
 0x111   : > { %v840_v50 = vadd.f32 %v1430_v45, %v1762_v5  ;;  %v831_v52 = vpop.f32.mrb[17].mxu1  ;;  %v562_v59 = vadd.f32 %v1757_v3, %v561_v55  ;;  %994 = vrot.lane.b32.xlu0 %v567_v42, %s1568_s13 }
 0x112   : > { %v832_v56 = vadd.f32 %v1762_v5, %v831_v52  ;;  %v1431_v57 = vpop.f32.mrb[18].mxu1  ;;  %996 = vrot.lane.b32.xlu1 %v570_v53, %s1568_s13 }
 0x113   : > { %v912_v60 = vadd.f32 %v840_v50, %v567_v42  ;;  %v843_v61 = vadd.f32 %v1431_v57, %v1762_v5  ;;  %v834_v62 = vpop.f32.mrb[19].mxu1 }
 0x114   : > { %v910_v63 = vadd.f32 %v832_v56, %v559_v46  ;;  %v835_v0 = vadd.f32 %v1762_v5, %v834_v62 }
 0x115   : > { %v913_v1 = vadd.f32 %v843_v61, %v570_v53  ;;  %v1871_v2 = vsel %vm684_vm1, %v912_v60, %v840_v50  ;;  %v1400_v6 = vpop.f32.mrb[20].mxu0  ;;  %990 = vrot.lane.b32.xlu0 %v559_v46, %s1568_s13 }
 0x116   : > { %v911_v4 = vadd.f32 %v835_v0, %v562_v59  ;;  %v1875_v7 = vsel %vm684_vm1, %v910_v63, %v832_v56  ;;  %v583_v8 = vadd.f32 %v1400_v6, %v1757_v3  ;;  %v574_v9 = vpop.f32.mrb[21].mxu0  ;;  %992 = vrot.lane.b32.xlu1 %v562_v59, %s1568_s13 }
 0x117   : > { %v1880_v11 = vsel %vm684_vm1, %v913_v1, %v843_v61  ;;  %v575_v14 = vadd.f32 %v1757_v3, %v574_v9  ;;  %v1401_v15 = vpop.f32.mrb[22].mxu0 }
 0x118   : > { %v1434_v12 = vpop.f32.mrb[20].mxu1  ;;  %v1884_v17 = vsel %vm684_vm1, %v911_v4, %v835_v0  ;;  %v586_v21 = vadd.f32 %v1401_v15, %v1757_v3  ;;  %v577_v22 = vpop.f32.mrb[23].mxu0 }
 0x119   : > { %v856_v18 = vadd.f32 %v1434_v12, %v1762_v5  ;;  %v847_v19 = vpop.f32.mrb[21].mxu1  ;;  %v578_v26 = vadd.f32 %v1757_v3, %v577_v22  ;;  %1002 = vrot.lane.b32.xlu0 %v583_v8, %s1568_s13 }
 0x11a   : > { %v848_v23 = vadd.f32 %v1762_v5, %v847_v19  ;;  %v1435_v25 = vpop.f32.mrb[22].mxu1  ;;  %1004 = vrot.lane.b32.xlu1 %v586_v21, %s1568_s13 }
 0x11b   : > { %v916_v28 = vadd.f32 %v856_v18, %v583_v8  ;;  %v859_v29 = vadd.f32 %v1435_v25, %v1762_v5  ;;  %v850_v31 = vpop.f32.mrb[23].mxu1 }
 0x11c   : > { %v914_v32 = vadd.f32 %v848_v23, %v575_v14  ;;  %v851_v33 = vadd.f32 %v1762_v5, %v850_v31 }
 0x11d   : > { %v917_v35 = vadd.f32 %v859_v29, %v586_v21  ;;  %v1895_v36 = vsel %vm684_vm1, %v916_v28, %v856_v18  ;;  %v1404_v39 = vpop.f32.mrb[24].mxu0  ;;  %998 = vrot.lane.b32.xlu0 %v575_v14, %s1568_s13 }
 0x11e   : > { %v915_v37 = vadd.f32 %v851_v33, %v578_v26  ;;  %v1899_v40 = vsel %vm684_vm1, %v914_v32, %v848_v23  ;;  %v599_v42 = vadd.f32 %v1404_v39, %v1757_v3  ;;  %v590_v43 = vpop.f32.mrb[25].mxu0  ;;  %1000 = vrot.lane.b32.xlu1 %v578_v26, %s1568_s13 }
 0x11f   : > { %v1904_v45 = vsel %vm684_vm1, %v917_v35, %v859_v29  ;;  %v591_v47 = vadd.f32 %v1757_v3, %v590_v43  ;;  %v1405_v50 = vpop.f32.mrb[26].mxu0 }
 0x120   : > { %v1438_v46 = vpop.f32.mrb[24].mxu1  ;;  %v1908_v52 = vsel %vm684_vm1, %v915_v37, %v851_v33  ;;  %v602_v56 = vadd.f32 %v1405_v50, %v1757_v3  ;;  %v593_v57 = vpop.f32.mrb[27].mxu0 }
 0x121   : > { %v872_v53 = vadd.f32 %v1438_v46, %v1762_v5  ;;  %v863_v55 = vpop.f32.mrb[25].mxu1  ;;  %v594_v61 = vadd.f32 %v1757_v3, %v593_v57  ;;  %1010 = vrot.lane.b32.xlu0 %v599_v42, %s1568_s13 }
 0x122   : > { %v864_v59 = vadd.f32 %v1762_v5, %v863_v55  ;;  %v1439_v60 = vpop.f32.mrb[26].mxu1  ;;  %1012 = vrot.lane.b32.xlu1 %v602_v56, %s1568_s13 }
 0x123   : > { %v920_v62 = vadd.f32 %v872_v53, %v599_v42  ;;  %v875_v63 = vadd.f32 %v1439_v60, %v1762_v5  ;;  %v866_v0 = vpop.f32.mrb[27].mxu1 }
 0x124   : > { %v918_v1 = vadd.f32 %v864_v59, %v591_v47  ;;  %v867_v4 = vadd.f32 %v1762_v5, %v866_v0 }
 0x125   : > { %v921_v6 = vadd.f32 %v875_v63, %v602_v56  ;;  %v1919_v8 = vsel %vm684_vm1, %v920_v62, %v872_v53  ;;  %v1408_v12 = vpop.f32.mrb[28].mxu0  ;;  %1006 = vrot.lane.b32.xlu0 %v591_v47, %s1568_s13 }
 0x126   : > { %v919_v9 = vadd.f32 %v867_v4, %v594_v61  ;;  %v1923_v14 = vsel %vm684_vm1, %v918_v1, %v864_v59  ;;  %v615_v15 = vadd.f32 %v1408_v12, %v1757_v3  ;;  %v606_v18 = vpop.f32.mrb[29].mxu0  ;;  %1008 = vrot.lane.b32.xlu1 %v594_v61, %s1568_s13 }
 0x127   : > { %v1928_v19 = vsel %vm684_vm1, %v921_v6, %v875_v63  ;;  %v607_v22 = vadd.f32 %v1757_v3, %v606_v18  ;;  %v1409_v23 = vpop.f32.mrb[30].mxu0 }
 0x128   : > { %v1442_v21 = vpop.f32.mrb[28].mxu1  ;;  %v1932_v25 = vsel %vm684_vm1, %v919_v9, %v867_v4  ;;  %v618_v29 = vadd.f32 %v1409_v23, %v1757_v3  ;;  %v609_v31 = vpop.f32.mrb[31].mxu0 }
 0x129   : > { %v888_v26 = vadd.f32 %v1442_v21, %v1762_v5  ;;  %v879_v28 = vpop.f32.mrb[29].mxu1  ;;  %v610_v35 = vadd.f32 %v1757_v3, %v609_v31  ;;  %1014 = vrot.lane.b32.xlu0 %v607_v22, %s1568_s13 }
 0x12a   : > { %v880_v32 = vadd.f32 %v1762_v5, %v879_v28  ;;  %v1443_v33 = vpop.f32.mrb[30].mxu1 }
 0x12b   : > { %v924_v37 = vadd.f32 %v888_v26, %v615_v15  ;;  %v891_v39 = vadd.f32 %v1443_v33, %v1762_v5  ;;  %v882_v42 = vpop.f32.mrb[31].mxu1  ;;  %1016 = vrot.lane.b32.xlu1 %v610_v35, %s1568_s13 }
 0x12c   : > { %v922_v43 = vadd.f32 %v880_v32, %v607_v22  ;;  %v883_v46 = vadd.f32 %v1762_v5, %v882_v42 }
 0x12d   : > { %v925_v47 = vadd.f32 %v891_v39, %v618_v29  ;;  %v1943_v50 = vsel %vm684_vm1, %v924_v37, %v888_v26  ;;  %1018 = vrot.lane.b32.xlu0 %v615_v15, %s1568_s13 }
 0x12e   : > { %v923_v53 = vadd.f32 %v883_v46, %v610_v35  ;;  %v1947_v3 = vsel %vm684_vm1, %v922_v43, %v880_v32 }
 0x12f   : > { %v1950_v55 = vsel %vm684_vm1, %v925_v47, %v891_v39  ;;  %1020 = vrot.lane.b32.xlu1 %v618_v29, %s1568_s13 }
 0x130   : > { %v1954_v56 = vsel %vm684_vm1, %v923_v53, %v883_v46 }
 0x162   : > { %v963_v5 = vpop.permute.xlu1 %962 }
 0x163   : > { %v1089_v57 = vsel %vm1086_vm2, %v1776_v24, %v963_v5  ;;  %v959_v59 = vpop.permute.xlu0 %958 }
 0x164   : > { %v1121_v60 = vmax.f32 %v1089_v57, 0.0  ;;  %v1087_v61 = vsel %vm1086_vm2, %v1780_v27, %v959_v59 }
 0x165   : > { %v1119_v62 = vmax.f32 %v1087_v61, 0.0 }
 0x166   : > { %1153 = vst.msk [vmem:[%s1963_s16 + $0x10] sm:$0xff] %vm411_vm0, %v1121_v60  ;;  %v965_v63 = vpop.permute.xlu1 %964 }
 0x167   : > { %1151 = vst.msk [vmem:[%s1963_s16] sm:$0xff] %vm411_vm0, %v1119_v62  ;;  %v1090_v24 = vsel %vm1086_vm2, %v1784_v30, %v965_v63  ;;  %v961_v0 = vpop.permute.xlu0 %960 }
 0x168   : > { %v1122_v1 = vmax.f32 %v1090_v24, 0.0  ;;  %v1088_v27 = vsel %vm1086_vm2, %v1788_v34, %v961_v0 }
 0x169   : > { %v1120_v4 = vmax.f32 %v1088_v27, 0.0 }
 0x16a   : > { %1154 = vst.msk [vmem:[%s1963_s16 + $0x18] sm:$0xff] %vm411_vm0, %v1122_v1 }
 0x16b   : > { %1152 = vst.msk [vmem:[%s1963_s16 + $0x8] sm:$0xff] %vm411_vm0, %v1120_v4  ;;  %v971_v6 = vpop.permute.xlu0 %970 }
 0x16c   : > { %v1093_v9 = vsel %vm1086_vm2, %v1799_v48, %v971_v6  ;;  %v973_v12 = vpop.permute.xlu1 %972 }
 0x16d   : > { %v1125_v15 = vmax.f32 %v1093_v9, 0.0  ;;  %v1094_v30 = vsel %vm1086_vm2, %v1808_v54, %v973_v12 }
 0x16e   : > { %v1126_v18 = vmax.f32 %v1094_v30, 0.0 }
 0x16f   : > { %1157 = vst.msk [vmem:[%s1963_s16 + $0x30] sm:$0xff] %vm411_vm0, %v1125_v15  ;;  %v967_v34 = vpop.permute.xlu0 %966 }
 0x170   : > { %1158 = vst.msk [vmem:[%s1963_s16 + $0x38] sm:$0xff] %vm411_vm0, %v1126_v18  ;;  %v1091_v21 = vsel %vm1086_vm2, %v1803_v51, %v967_v34  ;;  %v969_v22 = vpop.permute.xlu1 %968 }
 0x171   : > { %v1123_v23 = vmax.f32 %v1091_v21, 0.0  ;;  %v1092_v48 = vsel %vm1086_vm2, %v1812_v58, %v969_v22 }
 0x172   : > { %v1124_v26 = vmax.f32 %v1092_v48, 0.0 }
 0x173   : > { %1155 = vst.msk [vmem:[%s1963_s16 + $0x20] sm:$0xff] %vm411_vm0, %v1123_v23  ;;  %v979_v54 = vpop.permute.xlu0 %978 }
 0x174   : > { %1156 = vst.msk [vmem:[%s1963_s16 + $0x28] sm:$0xff] %vm411_vm0, %v1124_v26  ;;  %v1097_v28 = vsel %vm1086_vm2, %v1823_v10, %v979_v54  ;;  %v981_v29 = vpop.permute.xlu1 %980 }
 0x175   : > { %v1129_v31 = vmax.f32 %v1097_v28, 0.0  ;;  %v1098_v51 = vsel %vm1086_vm2, %v1832_v16, %v981_v29 }
 0x176   : > { %v1130_v32 = vmax.f32 %v1098_v51, 0.0 }
 0x177   : > { %1161 = vst.msk [vmem:[%s1963_s16 + $0x50] sm:$0xff] %vm411_vm0, %v1129_v31  ;;  %v975_v58 = vpop.permute.xlu0 %974 }
 0x178   : > { %1162 = vst.msk [vmem:[%s1963_s16 + $0x58] sm:$0xff] %vm411_vm0, %v1130_v32  ;;  %v1095_v33 = vsel %vm1086_vm2, %v1827_v13, %v975_v58  ;;  %v977_v35 = vpop.permute.xlu1 %976 }
 0x179   : > { %v1127_v37 = vmax.f32 %v1095_v33, 0.0  ;;  %v1096_v10 = vsel %vm1086_vm2, %v1836_v20, %v977_v35 }
 0x17a   : > { %v1128_v39 = vmax.f32 %v1096_v10, 0.0 }
 0x17b   : > { %1159 = vst.msk [vmem:[%s1963_s16 + $0x40] sm:$0xff] %vm411_vm0, %v1127_v37  ;;  %v987_v16 = vpop.permute.xlu0 %986 }
 0x17c   : > { %1160 = vst.msk [vmem:[%s1963_s16 + $0x48] sm:$0xff] %vm411_vm0, %v1128_v39  ;;  %v1101_v42 = vsel %vm1086_vm2, %v1847_v38, %v987_v16  ;;  %v989_v43 = vpop.permute.xlu1 %988 }
 0x17d   : > { %v1133_v46 = vmax.f32 %v1101_v42, 0.0  ;;  %v1102_v13 = vsel %vm1086_vm2, %v1856_v44, %v989_v43 }
 0x17e   : > { %v1134_v47 = vmax.f32 %v1102_v13, 0.0 }
 0x17f   : > { %1165 = vst.msk [vmem:[%s1963_s16 + $0x70] sm:$0xff] %vm411_vm0, %v1133_v46  ;;  %v983_v20 = vpop.permute.xlu0 %982 }
 0x180   : > { %1166 = vst.msk [vmem:[%s1963_s16 + $0x78] sm:$0xff] %vm411_vm0, %v1134_v47  ;;  %v1099_v53 = vsel %vm1086_vm2, %v1851_v41, %v983_v20  ;;  %v985_v5 = vpop.permute.xlu1 %984 }
 0x181   : > { %v1131_v57 = vmax.f32 %v1099_v53, 0.0  ;;  %v1100_v38 = vsel %vm1086_vm2, %v1860_v49, %v985_v5 }
 0x182   : > { %v1132_v59 = vmax.f32 %v1100_v38, 0.0 }
 0x183   : > { %1163 = vst.msk [vmem:[%s1963_s16 + $0x60] sm:$0xff] %vm411_vm0, %v1131_v57  ;;  %v995_v44 = vpop.permute.xlu0 %994 }
 0x184   : > { %1164 = vst.msk [vmem:[%s1963_s16 + $0x68] sm:$0xff] %vm411_vm0, %v1132_v59  ;;  %v1105_v60 = vsel %vm1086_vm2, %v1871_v2, %v995_v44  ;;  %v997_v61 = vpop.permute.xlu1 %996 }
 0x185   : > { %v1137_v62 = vmax.f32 %v1105_v60, 0.0  ;;  %v1106_v41 = vsel %vm1086_vm2, %v1880_v11, %v997_v61 }
 0x186   : > { %v1138_v63 = vmax.f32 %v1106_v41, 0.0 }
 0x187   : > { %1169 = vst.msk [vmem:[%s1963_s16 + $0x90] sm:$0xff] %vm411_vm0, %v1137_v62  ;;  %v991_v49 = vpop.permute.xlu0 %990 }
 0x188   : > { %1170 = vst.msk [vmem:[%s1963_s16 + $0x98] sm:$0xff] %vm411_vm0, %v1138_v63  ;;  %v1103_v24 = vsel %vm1086_vm2, %v1875_v7, %v991_v49  ;;  %v993_v0 = vpop.permute.xlu1 %992 }
 0x189   : > { %v1135_v1 = vmax.f32 %v1103_v24, 0.0  ;;  %v1104_v2 = vsel %vm1086_vm2, %v1884_v17, %v993_v0 }
 0x18a   : > { %v1136_v27 = vmax.f32 %v1104_v2, 0.0 }
 0x18b   : > { %1167 = vst.msk [vmem:[%s1963_s16 + $0x80] sm:$0xff] %vm411_vm0, %v1135_v1  ;;  %v1003_v11 = vpop.permute.xlu0 %1002 }
 0x18c   : > { %1168 = vst.msk [vmem:[%s1963_s16 + $0x88] sm:$0xff] %vm411_vm0, %v1136_v27  ;;  %v1109_v4 = vsel %vm1086_vm2, %v1895_v36, %v1003_v11  ;;  %v1005_v6 = vpop.permute.xlu1 %1004 }
 0x18d   : > { %v1141_v9 = vmax.f32 %v1109_v4, 0.0  ;;  %v1110_v7 = vsel %vm1086_vm2, %v1904_v45, %v1005_v6 }
 0x18e   : > { %v1142_v12 = vmax.f32 %v1110_v7, 0.0 }
 0x18f   : > { %1173 = vst.msk [vmem:[%s1963_s16 + $0xb0] sm:$0xff] %vm411_vm0, %v1141_v9  ;;  %v999_v17 = vpop.permute.xlu0 %998 }
 0x190   : > { %1174 = vst.msk [vmem:[%s1963_s16 + $0xb8] sm:$0xff] %vm411_vm0, %v1142_v12  ;;  %v1107_v15 = vsel %vm1086_vm2, %v1899_v40, %v999_v17  ;;  %v1001_v30 = vpop.permute.xlu1 %1000 }
 0x191   : > { %v1139_v18 = vmax.f32 %v1107_v15, 0.0  ;;  %v1108_v36 = vsel %vm1086_vm2, %v1908_v52, %v1001_v30 }
 0x192   : > { %v1140_v34 = vmax.f32 %v1108_v36, 0.0 }
 0x193   : > { %1171 = vst.msk [vmem:[%s1963_s16 + $0xa0] sm:$0xff] %vm411_vm0, %v1139_v18  ;;  %v1011_v45 = vpop.permute.xlu0 %1010 }
 0x194   : > { %1172 = vst.msk [vmem:[%s1963_s16 + $0xa8] sm:$0xff] %vm411_vm0, %v1140_v34  ;;  %v1113_v21 = vsel %vm1086_vm2, %v1919_v8, %v1011_v45  ;;  %v1013_v22 = vpop.permute.xlu1 %1012 }
 0x195   : > { %v1145_v23 = vmax.f32 %v1113_v21, 0.0  ;;  %v1114_v40 = vsel %vm1086_vm2, %v1928_v19, %v1013_v22 }
 0x196   : > { %v1146_v48 = vmax.f32 %v1114_v40, 0.0 }
 0x197   : > { %1177 = vst.msk [vmem:[%s1963_s16 + $0xd0] sm:$0xff] %vm411_vm0, %v1145_v23  ;;  %v1007_v52 = vpop.permute.xlu0 %1006 }
 0x198   : > { %1178 = vst.msk [vmem:[%s1963_s16 + $0xd8] sm:$0xff] %vm411_vm0, %v1146_v48  ;;  %v1111_v26 = vsel %vm1086_vm2, %v1923_v14, %v1007_v52  ;;  %v1009_v54 = vpop.permute.xlu1 %1008 }
 0x199   : > { %v1143_v28 = vmax.f32 %v1111_v26, 0.0  ;;  %v1112_v8 = vsel %vm1086_vm2, %v1932_v25, %v1009_v54 }
 0x19a   : > { %v1144_v29 = vmax.f32 %v1112_v8, 0.0 }
 0x19b   : > { %1175 = vst.msk [vmem:[%s1963_s16 + $0xc0] sm:$0xff] %vm411_vm0, %v1143_v28  ;;  %v1015_v19 = vpop.permute.xlu0 %1014 }
 0x19c   : > { %1176 = vst.msk [vmem:[%s1963_s16 + $0xc8] sm:$0xff] %vm411_vm0, %v1144_v29  ;;  %v1115_v31 = vsel %vm1086_vm2, %v1947_v3, %v1015_v19 }
 0x19d   : > { %v1147_v51 = vmax.f32 %v1115_v31, 0.0  ;;  %v1017_v32 = vpop.permute.xlu1 %1016 }
 0x19e   : > { %v1116_v14 = vsel %vm1086_vm2, %v1954_v56, %v1017_v32 }
 0x19f   : > { %1179 = vst.msk [vmem:[%s1963_s16 + $0xe0] sm:$0xff] %vm411_vm0, %v1147_v51  ;;  %v1148_v25 = vmax.f32 %v1116_v14, 0.0  ;;  %v1019_v58 = vpop.permute.xlu0 %1018 }
 0x1a0   : > { %v1117_v33 = vsel %vm1086_vm2, %v1943_v50, %v1019_v58 }
 0x1a1   : > { %1180 = vst.msk [vmem:[%s1963_s16 + $0xe8] sm:$0xff] %vm411_vm0, %v1148_v25  ;;  %v1149_v3 = vmax.f32 %v1117_v33, 0.0  ;;  %v1021_v35 = vpop.permute.xlu1 %1020 }
 0x1a2   : > { %v1118_v37 = vsel %vm1086_vm2, %v1950_v55, %v1021_v35 }
 0x1a3   : > { %1181 = vst.msk [vmem:[%s1963_s16 + $0xf0] sm:$0xff] %vm411_vm0, %v1149_v3  ;;  %v1150_v56 = vmax.f32 %v1118_v37, 0.0 }
 0x1a5   : > { %1182 = vst.msk [vmem:[%s1963_s16 + $0xf8] sm:$0xff] %vm411_vm0, %v1150_v56 }
 0x1a6   : > { %1517 = shalt.err (!%p1514_p3)
}
 0x1a7   : > { %s1518_s11 = scalar_lea.hbm %s2090_s26, 4096  ;;  %s1522_s15 = scalar_lea.hbm %s2148_s6, 8192 }
 0x1a8   : > { %p1519_p4 = scmp.ne.s32.totalorder %s2090_s26, %s1518_s11  ;;  %p1523_p9 = scmp.lt.u32.totalorder %s2090_s26, %s2148_s6 }
 0x1a9   : > { %p1524_p10 = scmp.lt.u32.totalorder %s1522_s15, %s1518_s11  ;;  %p1526_p12 = scmp.lt.u32.totalorder %s1518_s11, %s2090_s26 }
 0x1aa   : > { %p1520_p7 = pnand %p1519_p4, %p1644_p5 }
 0x1ab   : > { %p1525_p11 = por %p1524_p10, %p1523_p9 }
 0x1ac   : > { %p1521_p8 = pneg %p1520_p7 }
 0x1ad   : > { %p1527_p13 = por %p1526_p12, %p1525_p11 }
 0x1af   : > { %p1528_p0 = pnand %p1527_p13, %p1521_p8 }
 0x1b1   : > { %1531 = shalt.err (!%p1528_p0)
}
 0x1b2   : > { %s1570_s19 = smov 128  }
 0x1b3   : > { %1444 = dma.vmem_to_hbm [thread:$0]  (%p1644_p5), %s2094_s18, 4096, %s2090_s26, %s2100_s25, %s1570_s19, %s1570_s19, %s1568_s13  }
 0x1b4 PF: > { %p1450_p1 = scmp.ge.s32.totalorder %s1566_s24, 2  ;;  %s1212_s20 = sand.u32 1, %s1554_s21  }
 0x1b5   : > { %s1213_s28 = scalar_lea.sflag [#allocation3], %s1212_s20 }
 0x1b6   : > { %p1447_p2 = pnand %p1450_p1, %p1648_p6 }
 0x1b8   : > { %1549 = dma.done.wait (!%p1447_p2), %s1213_s28, 4096  }
 0x1b9   : > { %1551 = vsyncadd (!%p1447_p2), %s1213_s28, 4294963200  ;;  %p16_p3 = scmp.ge.s32.totalorder %s1631_s27, 4   ;;  %s2151_s21 = smov %s1558_s22 }
 0x1ba   : > { %s2152_s22 = smov %s1562_s23  ;;  %s2153_s23 = smov %s1642_s30 }
 0x1bb   : > { %s2154_s24 = smov %s1631_s27  ;;  %18 = sbr.rel (!%p16_p3) target bundleno = 3 (0x3), region = 82 }
 0x1c2   :  { %1218 = vsyncpa [#allocation3], 1 }
 0x1c3   :  { %1220 = vsyncpa [#allocation3 + $0x1], 1 }

// kernel: bottleneck_forward.2
= control target key start
LH: loop header
LB: loop body
LE: loop exit
PB: predicated region body
PF: predicated region fallthrough
CT: control target
= control target key end

     0   :  { %10 = vsyncpa [#allocation4], 0  ;;  %s7649_s0 = inlined_call_operand.hbm [shape: f32[2,16,16,16], index: 0, kind: input, shape index: {}]   ;;  %s7650_s1 = inlined_call_operand.vmem [shape: bf16[16,32], index: 1, kind: input, shape index: {}]   ;;  %s7651_s2 = inlined_call_operand.vmem [shape: f32[1,32], index: 2, kind: input, shape index: {}]   ;;  %s7652_s3 = inlined_call_operand.vmem [shape: f32[9,32], index: 3, kind: input, shape index: {}]   ;;  %s7653_s4 = inlined_call_operand.vmem [shape: f32[1,32], index: 4, kind: input, shape index: {}]   ;;  %s7654_s5 = inlined_call_operand.vmem [shape: bf16[2,16,16,32], index: 5, kind: output, shape index: {}]  }
   0x1   :  { %12 = vsyncpa [#allocation4 + $0x1], 0  ;;  %s4826_s18 = smov 0   ;;  %s4828_s19 = smov 0  }
   0x2   :  { %s4830_s20 = smov 0   ;;  %s4832_s21 = smov 0  }
   0x3 LB: > { %s4845_s22 = sadd.s32 4294967295, %s4790_s21   ;;  %s4848_s23 = sadd.s32 1, %s4790_s21   ;;  %s4790_s21 = sphi %s4832_s21, %s8094_s21   ;;  %s4786_s20 = sphi %s4830_s20, %s8093_s20   ;;  %s4782_s19 = sphi %s4828_s19, %s8092_s19   ;;  %s4778_s18 = sphi %s4826_s18, %s8091_s18  }
   0x4   : > { %s22_s24 = ssub.s32 %s4790_s21, %s4848_s23  ;;  %s25_s25 = sadd.s32 1, %s4786_s20 }
   0x5   : > { %p23_p0 = scmp.eq.s32.totalorder %s22_s24, 0  ;;  %p32_p1 = scmp.ne.s32.totalorder %s4786_s20, %s4782_s19 }
   0x6   : > { %p33_p2 = scmp.eq.s32.totalorder %s4790_s21, 0  ;;  %p38_p3 = scmp.ne.s32.totalorder %s4782_s19, %s4778_s18 }
   0x7   : > { %s4858_s26 = scalar_select %p23_p0, %s4786_s20, %s25_s25  }
   0x8   : > { %p34_p4 = por %p33_p2, %p32_p1  ;;  %p39_p5 = scmp.eq.s32.totalorder %s4845_s22, 0 }
   0x9   : > { %p4651_p6 = scmp.lt.s32.totalorder %s4790_s21, 2  ;;  %s184_s28 = sand.u32 1, %s4786_s20  }
   0xa   : > { %p4862_p7 = por %p39_p5, %p38_p3  ;;  %s4377_s29 = sshll.u32 %s184_s28, 8 }
   0xb   : > { %s4526_s30 = sshll.u32 %s4790_s21, 12  ;;  %s188_s9 = scalar_lea.vmem [#allocation3], %s4377_s29 }
   0xc   : > { %s4871_s8 = scalar_lea.hbm %s7649_s0, %s4526_s30  ;;  %s195_s10 = sshll.u32 %s188_s9, 4  ;;  %s4873_s10 = int_to_ptr.vmem [resolvable:$true] %s195_s10 }
   0xd   : > { %p4875_p8 = pnand %p4651_p6, %p34_p4  ;;  %s4880_s12 = scalar_lea.sflag [#allocation4], %s184_s28 }
   0xe   : > { %s4726_s13 = scalar_lea.hbm %s4871_s8, 4096  ;;  %s4731_s16 = scalar_lea.hbm %s7649_s0, 8192 }
   0xf   : > { %p4727_p10 = scmp.ne.s32.totalorder %s4871_s8, %s4726_s13  ;;  %p4728_p11 = pneg %p4875_p8 }
  0x10   : > { %p4732_p0 = scmp.lt.u32.totalorder %s4871_s8, %s7649_s0  ;;  %p4733_p1 = scmp.lt.u32.totalorder %s4731_s16, %s4726_s13 }
  0x11   : > { %p4729_p12 = pnand %p4728_p11, %p4727_p10  ;;  %p4735_p3 = scmp.lt.u32.totalorder %s4726_s13, %s4871_s8 }
  0x12   : > { %p4734_p2 = por %p4733_p1, %p4732_p0 }
  0x13   : > { %p4730_p13 = pneg %p4729_p12 }
  0x14   : > { %p4736_p4 = por %p4735_p3, %p4734_p2 }
  0x16   : > { %p4737_p5 = pnand %p4736_p4, %p4730_p13 }
  0x18   : > { %4740 = shalt.err (!%p4737_p5)
}
  0x19   : > { %s4741_s24 = scalar_lea.vmem %s4873_s10, 4096  ;;  %s4792_s25 = smov [#allocation3]  }
  0x1a   : > { %p4742_p6 = scmp.ne.s32.totalorder %s4873_s10, %s4741_s24  ;;  %s4746_s28 = sshll.u32 %s4792_s25, 4  ;;  %s4747_s28 = int_to_ptr.vmem [resolvable:$false] %s4746_s28 }
  0x1b   : > { %s4748_s29 = scalar_lea.vmem %s4747_s28, 8192  ;;  %p4749_p9 = scmp.lt.s32.totalorder %s4873_s10, %s4747_s28 }
  0x1c   : > { %p4744_p10 = pnand %p4742_p6, %p4728_p11  ;;  %p4750_p0 = scmp.lt.s32.totalorder %s4748_s29, %s4741_s24 }
  0x1e   : > { %p4745_p12 = pneg %p4744_p10  ;;  %p4751_p1 = por %p4750_p0, %p4749_p9 }
  0x20   : > { %p4752_p2 = pnand %p4751_p1, %p4745_p12 }
  0x22   : > { %4755 = shalt.err (!%p4752_p2)
}
  0x23   : > { %s4793_s30 = smov 128   ;;  %s4794_s6 = smov 8  }
  0x24   : > { %4650 = dma.hbm_to_vmem [thread:$0]  (!%p4875_p8), %s4871_s8, 4096, %s4873_s10, %s4880_s12, %s4793_s30, %s4793_s30, %s4794_s6  }
  0x25   : > { %p203_p11 = scmp.lt.s32.totalorder %s4790_s21, 3  ;;  %p7696_p13 = scmp.ge.s32.totalorder %s4790_s21, 1 }
  0x27   : > { %p204_p3 = pnand %p7696_p13, %p203_p11 }
  0x29   : > { %207 = sbr.rel (%p204_p3) target bundleno = 848 (0x350), region = 40 }
  0x30   : > { %s209_s7 = sand.u32 1, %s4782_s19  }
  0x31   : > { %s4381_s9 = sshll.u32 %s209_s7, 8  ;;  %s210_s13 = scalar_lea.sflag [#allocation4], %s209_s7 }
  0x32   : > { %s4912_s14 = scalar_lea.vmem [#allocation3], %s4381_s9 }
  0x33   : > { %4773 = dma.done.wait (%p4862_p7), %s210_s13, 4096  }
  0x34   : > { %4775 = vsyncadd (%p4862_p7), %s210_s13, 4294963200  ;;  %v4687_v0 = vld [vmem:[%s7650_s1] sm:$0xff]   ;;  %v246_v1 = vld [vmem:[%s4912_s14] sm:$0xff]  ;;  %vm309_vm0 = vcmask 130048   ;;  %vm567_vm1 = vcmask 257024   ;;  %v4795_v49 = vmov 0  }
  0x35   : > { %v247_v2 = vld [vmem:[%s4912_s14 + $0x8] sm:$0xff]  ;;  %v262_v3 = vld [vmem:[%s4912_s14 + $0x80] sm:$0xff]  ;;  %4609 = vmatprep.subr.bf16.mxu0 %v4687_v0  ;;  %4643 = vmatprep.subr.bf16.mxu1 %v4687_v0  ;;  %v248_v6 = vld [vmem:[%s4912_s14 + $0x10] sm:$0xff]  ;;  %575 = vst.msk [vmem:[#allocation2 + $0x18] sm:$0xf] %vm567_vm1, %v4795_v49  ;;  %vm570_vm2 = vcmask 253952  }
  0x36   : > { %v278_v4 = vpack.c.bf16 %v247_v2, %v246_v1  ;;  %v263_v5 = vld [vmem:[%s4912_s14 + $0x88] sm:$0xff]  ;;  %v249_v7 = vld [vmem:[%s4912_s14 + $0x18] sm:$0xff]  ;;  %4610 = vmatpush3.bf16.msra.mxu0 %v4687_v0  ;;  %4644 = vmatpush3.bf16.msra.mxu1 %v4687_v0  ;;  %v264_v10 = vld [vmem:[%s4912_s14 + $0x90] sm:$0xff]  ;;  %568 = vst.msk [vmem:[#allocation2] sm:$0xf] %vm567_vm1, %v4795_v49  ;;  %vm1877_vm6 = vcmask 1042432  }
  0x37   : > { %v286_v8 = vpack.c.bf16 %v263_v5, %v262_v3  ;;  %v279_v9 = vpack.c.bf16 %v249_v7, %v248_v6  ;;  %v265_v11 = vld [vmem:[%s4912_s14 + $0x98] sm:$0xff]  ;;  %v250_v12 = vld [vmem:[%s4912_s14 + $0x20] sm:$0xff]  ;;  %v251_v14 = vld [vmem:[%s4912_s14 + $0x28] sm:$0xff]  ;;  %569 = vst.msk [vmem:[#allocation2 + $0x4] sm:$0xf] %vm567_vm1, %v4795_v49  ;;  %vm1878_vm7 = vcmask 1046532  }
  0x38   : > { %4611 = vmatprep.mubr.msk.bf16.mxu0 %vm309_vm0, %v278_v4  ;;  %v287_v13 = vpack.c.bf16 %v265_v11, %v264_v10  ;;  %v266_v15 = vld [vmem:[%s4912_s14 + $0xa0] sm:$0xff]  ;;  %v267_v16 = vld [vmem:[%s4912_s14 + $0xa8] sm:$0xff]  ;;  %v280_v17 = vpack.c.bf16 %v251_v14, %v250_v12  ;;  %v252_v19 = vld [vmem:[%s4912_s14 + $0x30] sm:$0xff]  ;;  %572 = vst.msk [vmem:[#allocation2 + $0xc] sm:$0xf] %vm567_vm1, %v4795_v49  ;;  %p240_p7 = scmp.lt.s32.totalorder %s4845_s22, 1 }
  0x39   : > { %4627 = vmatprep.mubr.msk.bf16.mxu1 %vm309_vm0, %v286_v8  ;;  %v288_v18 = vpack.c.bf16 %v267_v16, %v266_v15  ;;  %4612 = vmatmul.mubr.msk.bf16.vlgmr.msra.gmra.mrb[0].mxu0 %vm309_vm0, %v279_v9  ;;  %v253_v20 = vld [vmem:[%s4912_s14 + $0x38] sm:$0xff]  ;;  %v268_v21 = vld [vmem:[%s4912_s14 + $0xb0] sm:$0xff]  ;;  %v254_v23 = vld [vmem:[%s4912_s14 + $0x40] sm:$0xff]  ;;  %573 = vst.msk [vmem:[#allocation2 + $0x10] sm:$0xf] %vm567_vm1, %v4795_v49 }
  0x3a   : > { %4628 = vmatmul.mubr.msk.bf16.vlgmr.msra.gmra.mrb[0].mxu1 %vm309_vm0, %v287_v13  ;;  %4615 = vmatprep.mubr.msk.bf16.mxu0 %vm309_vm0, %v280_v17  ;;  %v269_v22 = vld [vmem:[%s4912_s14 + $0xb8] sm:$0xff]  ;;  %v255_v24 = vld [vmem:[%s4912_s14 + $0x48] sm:$0xff]  ;;  %v270_v25 = vld [vmem:[%s4912_s14 + $0xc0] sm:$0xff]  ;;  %v281_v27 = vpack.c.bf16 %v253_v20, %v252_v19  ;;  %576 = vst.msk [vmem:[#allocation2 + $0x1c] sm:$0xf] %vm567_vm1, %v4795_v49  ;;  %s8096_s22 = smov (!%p240_p7, %s4845_s22), 1 }
  0x3b   : > { %4631 = vmatprep.mubr.msk.bf16.mxu1 %vm309_vm0, %v288_v18  ;;  %v271_v26 = vld [vmem:[%s4912_s14 + $0xc8] sm:$0xff]  ;;  %v289_v28 = vpack.c.bf16 %v269_v22, %v268_v21  ;;  %v282_v29 = vpack.c.bf16 %v255_v24, %v254_v23  ;;  %v256_v31 = vld [vmem:[%s4912_s14 + $0x50] sm:$0xff]  ;;  %v257_v32 = vld [vmem:[%s4912_s14 + $0x58] sm:$0xff]  ;;  %578 = vst.msk [vmem:[#allocation2 + $0x24] sm:$0xf] %vm567_vm1, %v4795_v49  ;;  %s4527_s8 = sshll.u32 %s8096_s22, 7 }
  0x3c   : > { %v290_v30 = vpack.c.bf16 %v271_v26, %v270_v25  ;;  %v272_v33 = vld [vmem:[%s4912_s14 + $0xd0] sm:$0xff]  ;;  %v273_v34 = vld [vmem:[%s4912_s14 + $0xd8] sm:$0xff]  ;;  %v258_v35 = vld [vmem:[%s4912_s14 + $0x60] sm:$0xff]  ;;  %v283_v39 = vpack.c.bf16 %v257_v32, %v256_v31  ;;  %579 = vst.msk [vmem:[#allocation2 + $0x28] sm:$0xf] %vm567_vm1, %v4795_v49  ;;  %s5559_s28 = scalar_lea.vmem %s7654_s5, %s4527_s8 }
  0x3d   : > { %v259_v36 = vld [vmem:[%s4912_s14 + $0x68] sm:$0xff]  ;;  %v274_v37 = vld [vmem:[%s4912_s14 + $0xe0] sm:$0xff]  ;;  %v291_v40 = vpack.c.bf16 %v273_v34, %v272_v33  ;;  %v260_v43 = vld [vmem:[%s4912_s14 + $0x70] sm:$0xff]  ;;  %581 = vst.msk [vmem:[#allocation2 + $0x30] sm:$0xf] %vm567_vm1, %v4795_v49 }
  0x3e   : > { %v275_v38 = vld [vmem:[%s4912_s14 + $0xe8] sm:$0xff]  ;;  %v284_v41 = vpack.c.bf16 %v259_v36, %v258_v35  ;;  %v261_v44 = vld [vmem:[%s4912_s14 + $0x78] sm:$0xff]  ;;  %v276_v45 = vld [vmem:[%s4912_s14 + $0xf0] sm:$0xff]  ;;  %582 = vst.msk [vmem:[#allocation2 + $0x34] sm:$0xf] %vm567_vm1, %v4795_v49 }
  0x3f   : > { %v292_v42 = vpack.c.bf16 %v275_v38, %v274_v37  ;;  %v277_v46 = vld [vmem:[%s4912_s14 + $0xf8] sm:$0xff]  ;;  %v285_v47 = vpack.c.bf16 %v261_v44, %v260_v43  ;;  %584 = vst.msk [vmem:[#allocation2 + $0x3c] sm:$0xf] %vm567_vm1, %v4795_v49  ;;  %585 = vst.msk [vmem:[#allocation2 + $0x40] sm:$0xf] %vm567_vm1, %v4795_v49 }
  0x40   : > { %v293_v48 = vpack.c.bf16 %v277_v46, %v276_v45  ;;  %587 = vst.msk [vmem:[#allocation2 + $0x48] sm:$0xf] %vm567_vm1, %v4795_v49  ;;  %588 = vst.msk [vmem:[#allocation2 + $0x4c] sm:$0xf] %vm567_vm1, %v4795_v49  ;;  %v1144_v50 = vld [vmem:[#allocation2] sm:$0xf] }
  0x41   : > { %4616 = vmatmul.mubr.msk.bf16.gmra.mrb[4].mxu0 %vm309_vm0, %v281_v27  ;;  %590 = vst.msk [vmem:[#allocation2 + $0x54] sm:$0xf] %vm567_vm1, %v4795_v49  ;;  %591 = vst.msk [vmem:[#allocation2 + $0x58] sm:$0xf] %vm567_vm1, %v4795_v49  ;;  %v1297_v51 = vshrl.u32 %v1144_v50, 16  ;;  %v1300_v52 = vshll.u32 %v1144_v50, 16  ;;  %v1176_v5 = vunpack.c.l.bf16 %v1144_v50 }
  0x42   : > { %4632 = vmatmul.mubr.msk.bf16.gmra.mrb[4].mxu1 %vm309_vm0, %v289_v28  ;;  %4619 = vmatprep.mubr.msk.bf16.mxu0 %vm309_vm0, %v282_v29  ;;  %593 = vst.msk [vmem:[#allocation2 + $0x60] sm:$0xf] %vm567_vm1, %v4795_v49  ;;  %594 = vst.msk [vmem:[#allocation2 + $0x64] sm:$0xf] %vm567_vm1, %v4795_v49  ;;  %v1145_v55 = vld [vmem:[#allocation2 + $0x4] sm:$0xf] }
  0x43   : > { %4635 = vmatprep.mubr.msk.bf16.mxu1 %vm309_vm0, %v290_v30  ;;  %596 = vst.msk [vmem:[#allocation2 + $0x6c] sm:$0xf] %vm567_vm1, %v4795_v49  ;;  %597 = vst.msk [vmem:[#allocation2 + $0x70] sm:$0xf] %vm567_vm1, %v4795_v49  ;;  %v1299_v53 = vrot.slane %v1297_v51, 4  ;;  %v1302_v54 = vrot.slane %v1300_v52, 5  ;;  %v1177_v21 = vunpack.c.l.bf16 %v1145_v55 }
  0x44   : > { %599 = vst.msk [vmem:[#allocation2 + $0x78] sm:$0xf] %vm567_vm1, %v4795_v49  ;;  %600 = vst.msk [vmem:[#allocation2 + $0x7c] sm:$0xf] %vm567_vm1, %v4795_v49  ;;  %vm1293_vm3 = vsmask.f32 3328 }
  0x45   : > { %602 = vst.msk [vmem:[#allocation2 + $0x84] sm:$0xf] %vm567_vm1, %v4795_v49  ;;  %603 = vst.msk [vmem:[#allocation2 + $0x88] sm:$0xf] %vm567_vm1, %v4795_v49  ;;  %v1303_v56 = vor.u32 %v1302_v54, %v1299_v53  ;;  %vm1294_vm4 = vsmask.f32 7440 }
  0x46   : > { %605 = vst.msk [vmem:[#allocation2 + $0x90] sm:$0xf] %vm567_vm1, %v4795_v49  ;;  %606 = vst.msk [vmem:[#allocation2 + $0x94] sm:$0xf] %vm567_vm1, %v4795_v49  ;;  %v1306_v57 = vshll.u32 %v1145_v55, 16  ;;  %v1310_v59 = vshrl.u32 %v1145_v55, 16 }
  0x47   : > { %608 = vst.msk [vmem:[#allocation2 + $0x9c] sm:$0xf] %vm567_vm1, %v4795_v49  ;;  %609 = vst.msk [vmem:[#allocation2 + $0xa0] sm:$0xf] %vm567_vm1, %v4795_v49  ;;  %v1304_v58 = vrot.slane %v1303_v56, 4  ;;  %v1882_v2 = vrot.slane %v1145_v55, 5 }
  0x48   : > { %611 = vst.msk [vmem:[#allocation2 + $0xa8] sm:$0xf] %vm567_vm1, %v4795_v49  ;;  %612 = vst.msk [vmem:[#allocation2 + $0xac] sm:$0xf] %vm567_vm1, %v4795_v49  ;;  %v1813_v61 = vld [vmem:[#allocation2] sm:$0xe] }
  0x49   : > { %4620 = vmatmul.mubr.msk.bf16.gmra.mrb[8].mxu0 %vm309_vm0, %v283_v39  ;;  %614 = vst.msk [vmem:[#allocation2 + $0xb4] sm:$0xf] %vm567_vm1, %v4795_v49  ;;  %615 = vst.msk [vmem:[#allocation2 + $0xb8] sm:$0xf] %vm567_vm1, %v4795_v49  ;;  %v1308_v62 = vrot.slane %v1306_v57, 5  ;;  %v1312_v0 = vrot.slane %v1310_v59, 4 }
  0x4a   : > { %4636 = vmatmul.mubr.msk.bf16.gmra.mrb[8].mxu1 %vm309_vm0, %v291_v40  ;;  %4623 = vmatprep.mubr.msk.bf16.mxu0 %vm309_vm0, %v284_v41  ;;  %617 = vst.msk [vmem:[#allocation2 + $0xc0] sm:$0xf] %vm567_vm1, %v4795_v49  ;;  %618 = vst.msk [vmem:[#allocation2 + $0xc4] sm:$0xf] %vm567_vm1, %v4795_v49  ;;  %v4436_v1 = vrot.slane %v1813_v61, 9  ;;  %v1884_v23 = vrot.slane %v1882_v2, 4 }
  0x4b   : > { %4639 = vmatprep.mubr.msk.bf16.mxu1 %vm309_vm0, %v292_v42  ;;  %620 = vst.msk [vmem:[#allocation2 + $0xcc] sm:$0xf] %vm567_vm1, %v4795_v49  ;;  %621 = vst.msk [vmem:[#allocation2 + $0xd0] sm:$0xf] %vm567_vm1, %v4795_v49  ;;  %v5036_v7 = vld [vmem:[%s7652_s3] ss:$0 sm:$0xff]  ;;  %v1313_v8 = vor.u32 %v1312_v0, %v1308_v62 }
  0x4c   : > { %577 = vst.msk [vmem:[#allocation2 + $0x20] sm:$0x1] %vm570_vm2, %v4795_v49  ;;  %571 = vst.msk [vmem:[#allocation2 + $0x8] sm:$0x1] %vm570_vm2, %v4795_v49  ;;  %v5041_v9 = vld [vmem:[%s7652_s3 + $0x1] ss:$0 sm:$0xff]  ;;  %v1213_v12 = vmul.f32 %v5036_v7, %v1176_v5  ;;  %v1214_v37 = vmul.f32 %v5036_v7, %v1177_v21 }
  0x4d   : > { %574 = vst.msk [vmem:[#allocation2 + $0x14] sm:$0x1] %vm570_vm2, %v4795_v49  ;;  %580 = vst.msk [vmem:[#allocation2 + $0x2c] sm:$0x1] %vm570_vm2, %v4795_v49  ;;  %v5050_v15 = vld [vmem:[%s7652_s3 + $0x2] ss:$0 sm:$0xff] }
  0x4e   : > { %583 = vst.msk [vmem:[#allocation2 + $0x38] sm:$0x1] %vm570_vm2, %v4795_v49  ;;  %586 = vst.msk [vmem:[#allocation2 + $0x44] sm:$0x1] %vm570_vm2, %v4795_v49  ;;  %v1314_v16 = vrot.slane %v1313_v8, 4 }
  0x4f   : > { %589 = vst.msk [vmem:[#allocation2 + $0x50] sm:$0x1] %vm570_vm2, %v4795_v49  ;;  %592 = vst.msk [vmem:[#allocation2 + $0x5c] sm:$0x1] %vm570_vm2, %v4795_v49  ;;  %v5056_v20 = vld [vmem:[%s7651_s2] ss:$0 sm:$0xff] }
  0x50   : > { %595 = vst.msk [vmem:[#allocation2 + $0x68] sm:$0x1] %vm570_vm2, %v4795_v49  ;;  %598 = vst.msk [vmem:[#allocation2 + $0x74] sm:$0x1] %vm570_vm2, %v4795_v49  ;;  %vm1028_vm9 = vsmask.f32 7938 }
  0x51   : > { %4624 = vmatmul.mubr.msk.bf16.gmra.mrb[12].mxu0 %vm309_vm0, %v285_v47  ;;  %601 = vst.msk [vmem:[#allocation2 + $0x80] sm:$0x1] %vm570_vm2, %v4795_v49  ;;  %604 = vst.msk [vmem:[#allocation2 + $0x8c] sm:$0x1] %vm570_vm2, %v4795_v49  ;;  %vm703_vm10 = vsmask.f32 256 }
  0x52   : > { %4640 = vmatmul.mubr.msk.bf16.gmra.mrb[12].mxu1 %vm309_vm0, %v293_v48  ;;  %607 = vst.msk [vmem:[#allocation2 + $0x98] sm:$0x1] %vm570_vm2, %v4795_v49  ;;  %610 = vst.msk [vmem:[#allocation2 + $0xa4] sm:$0x1] %vm570_vm2, %v4795_v49  ;;  %vm704_vm11 = vsmask.f32 4368 }
  0x53   : > { %613 = vst.msk [vmem:[#allocation2 + $0xb0] sm:$0x1] %vm570_vm2, %v4795_v49  ;;  %616 = vst.msk [vmem:[#allocation2 + $0xbc] sm:$0x1] %vm570_vm2, %v4795_v49  ;;  %v1277_v4 = vld [vmem:[#allocation2 + $0x8] sm:$0x1] }
  0x54   : > { %619 = vst.msk [vmem:[#allocation2 + $0xc8] sm:$0x1] %vm570_vm2, %v4795_v49  ;;  %622 = vst.msk [vmem:[#allocation2 + $0xd4] sm:$0x1] %vm570_vm2, %v4795_v49  ;;  %v1316_v11 = vshll.u32 %v1277_v4, 16  ;;  %v1885_v24 = vrot.slane %v1277_v4, 5 }
  0x55   : > { %vm5023_vm5 = vmor %vm1293_vm3, %vm1294_vm4 }
  0x56   : > { %v1309_v63 = vsel %vm5023_vm5, %v1304_v58, %v1308_v62  ;;  %vm5029_vm8 = vmor %vm1877_vm6, %vm1878_vm7  ;;  %v1318_v17 = vrot.slane %v1316_v11, 5 }
  0x57   : > { %v1712_v6 = vunpack.c.l.bf16 %v1309_v63  ;;  %v1883_v10 = vsel %vm5029_vm8, %v4436_v1, %v1882_v2  ;;  %v1886_v38 = vsel %vm5029_vm8, %v1884_v23, %v1885_v24  ;;  %v1039_v63 = vld [vmem:[#allocation2 + $0x18] sm:$0xf]  ;;  %vm5082_vm12 = vmand %vm567_vm1, %vm1028_vm9  ;;  %v1030_v24 = vld [vmem:[#allocation2 + $0xc] sm:$0xf] }
  0x58   : > { %v2024_v14 = vunpack.c.l.bf16 %v1883_v10  ;;  %v1319_v22 = vsel %vm5023_vm5, %v1314_v16, %v1318_v17  ;;  %v2025_v56 = vunpack.c.l.bf16 %v1886_v38  ;;  %v1095_v16 = vld [vmem:[#allocation2 + $0x78] sm:$0xf]  ;;  %vm5111_vm13 = vmor %vm703_vm10, %vm704_vm11 }
  0x59   : > { %v1749_v13 = vmul.f32 %v5041_v9, %v1712_v6  ;;  %v1713_v32 = vunpack.c.l.bf16 %v1319_v22  ;;  %vm5118_vm14 = vmand %vm570_vm2, %vm703_vm10 }
  0x5a   : > { %v2061_v19 = vmul.f32 %v5050_v15, %v2024_v14  ;;  %v7702_v14 = vmov 0 }
  0x5b   : > { %v1781_v18 = vadd.f32 %v1749_v13, %v1213_v12  ;;  %v1750_v52 = vmul.f32 %v5041_v9, %v1713_v32  ;;  %v7703_v14 = vsel %vm5082_vm12, 4294967295, %v7702_v14  ;;  %v5098_v32 = vmul.f32 %v5050_v15, %v2025_v56 }
  0x5c   : > { %7704 = vst [vmem:[#allocation7_spill] sm:$0xff] %v7703_v14 }
  0x5d   : > { %v5062_v30 = vadd.f32 %v2061_v19, %v1781_v18 }
 0x10c   : > { %v4613_v25 = vpop.f32.mrb[0].mxu0 }
 0x10d   : > { %v4629_v26 = vpop.f32.mrb[0].mxu1  ;;  %v401_v27 = vadd.f32 %v4613_v25, %v5056_v20  ;;  %v392_v29 = vpop.f32.mrb[1].mxu0  ;;  %v1088_v25 = vld [vmem:[#allocation2 + $0x6c] sm:$0xf] }
 0x10e   : > { %v465_v28 = vadd.f32 %v4629_v26, %v5056_v20  ;;  %v456_v31 = vpop.f32.mrb[1].mxu1  ;;  %v393_v33 = vadd.f32 %v5056_v20, %v392_v29  ;;  %v4614_v35 = vpop.f32.mrb[2].mxu0 }
 0x10f   : > { %v457_v34 = vadd.f32 %v5056_v20, %v456_v31  ;;  %v4630_v36 = vpop.f32.mrb[2].mxu1  ;;  %v521_v39 = vmax.f32 %v401_v27, 0.0  ;;  %v404_v41 = vadd.f32 %v4614_v35, %v5056_v20  ;;  %v395_v43 = vpop.f32.mrb[3].mxu0  ;;  %v5095_v31 = vadd.f32 %v1750_v52, %v1214_v37 }
 0x110   : > { %v537_v40 = vmax.f32 %v465_v28, 0.0  ;;  %v468_v42 = vadd.f32 %v4630_v36, %v5056_v20  ;;  %v459_v44 = vpop.f32.mrb[3].mxu1  ;;  %v519_v45 = vmax.f32 %v393_v33, 0.0  ;;  %v396_v47 = vadd.f32 %v5056_v20, %v395_v43 }
 0x111   : > { %v535_v46 = vmax.f32 %v457_v34, 0.0  ;;  %v460_v48 = vadd.f32 %v5056_v20, %v459_v44  ;;  %v4530_v49 = vpack.c.bf16 %v521_v39, %v521_v39  ;;  %v522_v51 = vmax.f32 %v404_v41, 0.0 }
 0x112   : > { %v4546_v50 = vpack.c.bf16 %v537_v40, %v537_v40  ;;  %v4528_v53 = vpack.c.bf16 %v519_v45, %v519_v45  ;;  %v538_v55 = vmax.f32 %v468_v42, 0.0  ;;  %v520_v59 = vmax.f32 %v396_v47, 0.0  ;;  %v1043_v47 = vld [vmem:[#allocation2 + $0x20] sm:$0x1] }
 0x113   : > { %v4544_v54 = vpack.c.bf16 %v535_v46, %v535_v46  ;;  %v724_v57 = vshrl.u32 %v4530_v49, 16  ;;  %v536_v61 = vmax.f32 %v460_v48, 0.0  ;;  %v727_v62 = vshll.u32 %v4530_v49, 16 }
 0x114   : > { %v860_v58 = vshrl.u32 %v4546_v50, 16  ;;  %v863_v0 = vshll.u32 %v4546_v50, 16  ;;  %v707_v1 = vshrl.u32 %v4528_v53, 16  ;;  %v4617_v4 = vpop.f32.mrb[4].mxu0  ;;  %v710_v10 = vshll.u32 %v4528_v53, 16 }
 0x115   : > { %v843_v2 = vshrl.u32 %v4544_v54, 16  ;;  %v4633_v5 = vpop.f32.mrb[4].mxu1  ;;  %v726_v6 = vrot.slane %v724_v57, 7  ;;  %v4531_v11 = vpack.c.bf16 %v522_v51, %v522_v51  ;;  %v5076_v12 = vpop.f32.mrb[5].mxu0  ;;  %v846_v19 = vshll.u32 %v4544_v54, 16 }
 0x116   : > { %v5074_v8 = vrot.slane %v860_v58, 7  ;;  %v5078_v13 = vpop.f32.mrb[5].mxu1  ;;  %v5086_v17 = vrot.slane %v707_v1, 7  ;;  %v4547_v21 = vpack.c.bf16 %v538_v55, %v538_v55  ;;  %v4529_v26 = vpack.c.bf16 %v520_v59, %v520_v59  ;;  %v1099_v54 = vld [vmem:[#allocation2 + $0x80] sm:$0x1] }
 0x117   : > { %7701 = vst [vmem:[#allocation6_spill] sm:$0xff] %v5078_v13  ;;  %v5088_v18 = vrot.slane %v843_v2, 7  ;;  %v729_v22 = vor.u32 %v727_v62, %v726_v6  ;;  %v5091_v27 = vpack.c.bf16 %v536_v61, %v536_v61  ;;  %v730_v33 = vrot.slane %v726_v6, 4  ;;  %v1036_v61 = vld [vmem:[#allocation2 + $0x14] sm:$0x1] }
 0x118   : > { %v865_v23 = vor.u32 %v863_v0, %v5074_v8  ;;  %v712_v28 = vor.u32 %v710_v10, %v5086_v17  ;;  %v732_v36 = vshrl.u32 %v4531_v11, 16  ;;  %v866_v38 = vrot.slane %v5074_v8, 4  ;;  %v5137_v10 = vpop.f32.mrb[6].mxu0 }
 0x119   : > { %v848_v29 = vor.u32 %v846_v19, %v5088_v18  ;;  %v1040_v34 = vsel %vm5082_vm12, %v729_v22, %v1039_v63  ;;  %v868_v40 = vshrl.u32 %v4547_v21, 16  ;;  %v7705_v41 = vmov 0  ;;  %7711 = vst [vmem:[#allocation10_spill] sm:$0xff] %v5137_v10 }
 0x11a   : > { %v1096_v35 = vsel %vm5082_vm12, %v865_v23, %v1095_v16  ;;  %1041 = vst [vmem:[#allocation2 + $0x18] sm:$0xf] %v1040_v34  ;;  %v1031_v39 = vsel %vm5082_vm12, %v712_v28, %v1030_v24  ;;  %v7706_v41 = vsel %vm5111_vm13, 4294967295, %v7705_v41  ;;  %v734_v42 = vrot.slane %v732_v36, 7 }
 0x11b   : > { %1097 = vst [vmem:[#allocation2 + $0x78] sm:$0xf] %v1096_v35  ;;  %v1089_v37 = vsel %vm5082_vm12, %v848_v29, %v1088_v25  ;;  %1032 = vst [vmem:[#allocation2 + $0xc] sm:$0xf] %v1031_v39  ;;  %v735_v43 = vshll.u32 %v4531_v11, 16  ;;  %v715_v44 = vshrl.u32 %v4529_v26, 16  ;;  %v417_v51 = vadd.f32 %v4617_v4, %v5056_v20 }
 0x11c   : > { %1090 = vst [vmem:[#allocation2 + $0x6c] sm:$0xf] %v1089_v37  ;;  %7707 = vst [vmem:[#allocation8_spill] sm:$0xff] %v7706_v41  ;;  %v851_v45 = vshrl.u32 %v5091_v27, 16  ;;  %v7708_v46 = vmov 0  ;;  %v870_v48 = vrot.slane %v868_v40, 7  ;;  %v481_v56 = vadd.f32 %v4633_v5, %v5056_v20 }
 0x11d   : > { %v7709_v46 = vsel %vm5118_vm14, 4294967295, %v7708_v46  ;;  %v871_v49 = vshll.u32 %v4547_v21, 16  ;;  %v718_v50 = vshll.u32 %v4529_v26, 16  ;;  %v737_v52 = vor.u32 %v735_v43, %v734_v42 }
 0x11e   : > { %7710 = vst [vmem:[#allocation9_spill] sm:$0xff] %v7709_v46  ;;  %v739_v53 = vrot.slane %v734_v42, 4  ;;  %v717_v55 = vrot.slane %v715_v44, 7  ;;  %v713_v57 = vrot.slane %v5086_v17, 4  ;;  %v875_v59 = vrot.slane %v870_v48, 4 }
 0x11f   : > { %v873_v58 = vor.u32 %v871_v49, %v870_v48  ;;  %v5125_v62 = vrot.slane %v851_v45, 7  ;;  %v738_v63 = vsel %vm5111_vm13, %v730_v33, %v737_v52  ;;  %v525_v8 = vmax.f32 %v417_v51, 0.0  ;;  %v5164_v44 = vld [vmem:[%s7652_s3 + $0x3] ss:$0 sm:$0xff] }
 0x120   : > { %v1044_v0 = vsel %vm5118_vm14, %v739_v53, %v1043_v47  ;;  %v720_v1 = vor.u32 %v718_v50, %v717_v55  ;;  %v722_v2 = vrot.slane %v717_v55, 4  ;;  %1042 = vst.msk [vmem:[#allocation2 + $0x1c] sm:$0xf] %vm567_vm1, %v738_v63  ;;  %v1100_v6 = vsel %vm5118_vm14, %v875_v59, %v1099_v54  ;;  %v5180_v59 = vld [vmem:[%s7652_s3 + $0x6] ss:$0 sm:$0xff] }
 0x121   : > { %1045 = vst [vmem:[#allocation2 + $0x20] sm:$0x1] %v1044_v0  ;;  %v874_v5 = vsel %vm5111_vm13, %v866_v38, %v873_v58  ;;  %v1148_v11 = vld [vmem:[#allocation2 + $0x18] sm:$0xf]  ;;  %1101 = vst [vmem:[#allocation2 + $0x80] sm:$0x1] %v1100_v6  ;;  %v5153_v36 = vadd.f32 %v5098_v32, %v5095_v31  ;;  %v5158_v42 = vpack.c.bf16 %v525_v8, %v525_v8 }
 0x122   : > { %v2127_v16 = vld [vmem:[#allocation2 + $0x18] sm:$0xf]  ;;  %1098 = vst.msk [vmem:[#allocation2 + $0x7c] sm:$0xf] %vm567_vm1, %v874_v5  ;;  %v721_v17 = vsel %vm5111_vm13, %v713_v57, %v720_v1  ;;  %v1037_v19 = vsel %vm5118_vm14, %v722_v2, %v1036_v61  ;;  %v854_v21 = vshll.u32 %v5091_v27, 16  ;;  %v541_v22 = vmax.f32 %v481_v56, 0.0 }
 0x123   : > { %v1180_v23 = vunpack.c.l.bf16 %v1148_v11  ;;  %v1345_v24 = vshrl.u32 %v1148_v11, 16  ;;  %v1348_v25 = vshll.u32 %v1148_v11, 16  ;;  %v5145_v26 = vld [vmem:[#allocation2 + $0x18] sm:$0xe]  ;;  %1033 = vst.msk [vmem:[#allocation2 + $0x10] sm:$0xf] %vm567_vm1, %v721_v17  ;;  %v2159_v37 = vunpack.c.l.bf16 %v2127_v16 }
 0x124   : > { %1038 = vst [vmem:[#allocation2 + $0x14] sm:$0x1] %v1037_v19  ;;  %v2299_v29 = vshrl.u32 %v2127_v16, 16  ;;  %v2302_v33 = vshll.u32 %v2127_v16, 16  ;;  %v5149_v34 = vld [vmem:[#allocation2 + $0x18] sm:$0xe]  ;;  %v5156_v27 = vor.u32 %v854_v21, %v5125_v62  ;;  %v5172_v52 = vpack.c.bf16 %v541_v22, %v541_v22 }
 0x125   : > { %v3101_v35 = vld [vmem:[#allocation2 + $0x18] sm:$0xf]  ;;  %v1347_v38 = vrot.slane %v1345_v24, 4  ;;  %v1350_v39 = vrot.slane %v1348_v25, 5  ;;  %v5167_v32 = vmul.f32 %v5036_v7, %v1180_v23  ;;  %v5175_v57 = vmul.f32 %v5164_v44, %v2159_v37  ;;  %v2125_v37 = vld [vmem:[#allocation2 + $0xc] sm:$0xf] }
 0x126   : > { %v1164_v40 = vld [vmem:[#allocation2 + $0x78] sm:$0xf]  ;;  %v2301_v45 = vrot.slane %v2299_v29, 4  ;;  %v2304_v47 = vrot.slane %v2302_v33, 5  ;;  %v3251_v31 = vshrl.u32 %v3101_v35, 16  ;;  %v3254_v49 = vshll.u32 %v3101_v35, 16 }
 0x127   : > { %7712 = vst [vmem:[#allocation11_spill] sm:$0xff] %v5167_v32  ;;  %v5170_v50 = vld [vmem:[#allocation2 + $0x18] sm:$0xe]  ;;  %v1351_v53 = vor.u32 %v1350_v39, %v1347_v38  ;;  %v3133_v54 = vunpack.c.l.bf16 %v3101_v35  ;;  %v1537_v56 = vshrl.u32 %v1164_v40, 16  ;;  %7713 = vst [vmem:[#allocation12_spill] sm:$0xff] %v5175_v57  ;;  %v1540_v63 = vshll.u32 %v1164_v40, 16 }
 0x128   : > { %v2143_v51 = vld [vmem:[#allocation2 + $0x78] sm:$0xf]  ;;  %v3253_v55 = vrot.slane %v3251_v31, 4  ;;  %v2305_v58 = vor.u32 %v2304_v47, %v2301_v45  ;;  %v3256_v61 = vrot.slane %v3254_v49, 5  ;;  %v1196_v2 = vunpack.c.l.bf16 %v1164_v40  ;;  %v1146_v29 = vld [vmem:[#allocation2 + $0xc] sm:$0xf] }
 0x129   : > { %v3117_v0 = vld [vmem:[#allocation2 + $0x78] sm:$0xf]  ;;  %v1539_v5 = vrot.slane %v1537_v56, 4  ;;  %v2175_v8 = vunpack.c.l.bf16 %v2143_v51  ;;  %v1542_v16 = vrot.slane %v1540_v63, 5  ;;  %v2491_v17 = vshrl.u32 %v2143_v51, 16 }
 0x12a   : > { %v5183_v6 = vld [vmem:[#allocation2 + $0x78] sm:$0xe]  ;;  %v3257_v11 = vor.u32 %v3256_v61, %v3253_v55  ;;  %v2494_v19 = vshll.u32 %v2143_v51, 16  ;;  %v5185_v21 = vrot.slane %v1351_v53, 4  ;;  %v5188_v22 = vmul.f32 %v5180_v59, %v3133_v54  ;;  %v5212_v4 = vld [vmem:[#allocation2 + $0xc] sm:$0xe] }
 0x12b   : > { %v5190_v23 = vld [vmem:[#allocation2 + $0x78] sm:$0xe]  ;;  %v3149_v24 = vunpack.c.l.bf16 %v3117_v0  ;;  %v3443_v25 = vshrl.u32 %v3117_v0, 16  ;;  %v5192_v33 = vrot.slane %v2305_v58, 4  ;;  %v2493_v38 = vrot.slane %v2491_v17, 4 }
 0x12c   : > { %v2496_v39 = vrot.slane %v2494_v19, 5  ;;  %v5196_v40 = vmul.f32 %v5036_v7, %v1196_v2  ;;  %v5199_v45 = vmul.f32 %v5164_v44, %v2175_v8  ;;  %v3446_v31 = vshll.u32 %v3117_v0, 16  ;;  %v5207_v58 = vld [vmem:[#allocation2 + $0x78] sm:$0xe]  ;;  %v1162_v2 = vld [vmem:[#allocation2 + $0x6c] sm:$0xf] }
 0x12d   : > { %v3445_v47 = vrot.slane %v3443_v25, 4  ;;  %v5201_v49 = vrot.slane %v3257_v11, 4  ;;  %v1543_v51 = vor.u32 %v1542_v16, %v1539_v5  ;;  %v1321_v54 = vshrl.u32 %v1146_v29, 16  ;;  %v5209_v25 = vld [vmem:[#allocation2 + $0xc] sm:$0xe] }
 0x12e   : > { %7714 = vst [vmem:[#allocation13_spill] sm:$0xff] %v5196_v40  ;;  %7715 = vst [vmem:[#allocation14_spill] sm:$0xff] %v5199_v45  ;;  %v5205_v55 = vmul.f32 %v5180_v59, %v3149_v24  ;;  %v3448_v56 = vrot.slane %v3446_v31, 5  ;;  %v1324_v61 = vshll.u32 %v1146_v29, 16  ;;  %v2157_v63 = vunpack.c.l.bf16 %v2125_v37  ;;  %v2141_v1 = vld [vmem:[#allocation2 + $0x6c] sm:$0xf] }
 0x12f   : > { %v2497_v17 = vor.u32 %v2496_v39, %v2493_v38  ;;  %v1178_v8 = vunpack.c.l.bf16 %v1146_v29  ;;  %v1323_v19 = vrot.slane %v1321_v54, 4  ;;  %v2275_v0 = vshrl.u32 %v2125_v37, 16  ;;  %v5217_v38 = vpop.f32.mrb[6].mxu1  ;;  %v3115_v31 = vld [vmem:[#allocation2 + $0x6c] sm:$0xf] }
 0x130   : > { %7716 = vst [vmem:[#allocation15_spill] sm:$0xff] %v5205_v55  ;;  %v3449_v11 = vor.u32 %v3448_v56, %v3445_v47  ;;  %v1326_v5 = vrot.slane %v1324_v61, 5  ;;  %v2194_v16 = vmul.f32 %v5164_v44, %v2157_v63  ;;  %v2278_v28 = vshll.u32 %v2125_v37, 16  ;;  %7717 = vst [vmem:[#allocation16_spill] sm:$0xff] %v5217_v38  ;;  %v5220_v56 = vld [vmem:[#allocation2 + $0x6c] sm:$0xe] }
 0x131   : > { %v5214_v24 = vrot.slane %v1543_v51, 4  ;;  %v1194_v53 = vunpack.c.l.bf16 %v1162_v2  ;;  %v1513_v35 = vshrl.u32 %v1162_v2, 16  ;;  %v2277_v54 = vrot.slane %v2275_v0, 4  ;;  %7718 = vst [vmem:[#allocation17_spill] sm:$0xff] %v5220_v56  ;;  %v5233_v0 = vld [vmem:[#allocation2 + $0x6c] sm:$0xe] }
 0x132   : > { %v1327_v29 = vor.u32 %v1326_v5, %v1323_v19  ;;  %v2280_v47 = vrot.slane %v2278_v28, 5  ;;  %v5222_v61 = vrot.slane %v2497_v17, 4  ;;  %v5225_v37 = vmul.f32 %v5036_v7, %v1178_v8  ;;  %7719 = vst [vmem:[#allocation18_spill] sm:$0xff] %v5233_v0  ;;  %v1149_v55 = vld [vmem:[#allocation2 + $0x1c] sm:$0xf] }
 0x133   : > { %v1516_v63 = vshll.u32 %v1162_v2, 16  ;;  %v5228_v48 = vrot.slane %v3449_v11, 4  ;;  %v5231_v43 = vadd.f32 %v2194_v16, %v5062_v30  ;;  %v1515_v19 = vrot.slane %v1513_v35, 4  ;;  %v1279_v40 = vld [vmem:[#allocation2 + $0x20] sm:$0x1] }
 0x134   : > { %v2467_v5 = vshrl.u32 %v2141_v1, 16  ;;  %v5236_v28 = vmul.f32 %v5036_v7, %v1194_v53  ;;  %v2470_v39 = vshll.u32 %v2141_v1, 16  ;;  %v5239_v51 = vrot.slane %v1327_v29, 4  ;;  %v5242_v8 = vld [vmem:[#allocation2 + $0x6c] sm:$0xe] }
 0x135   : > { %v1518_v17 = vrot.slane %v1516_v63, 5  ;;  %v2281_v2 = vor.u32 %v2280_v47, %v2277_v54  ;;  %v3419_v38 = vshrl.u32 %v3115_v31, 16  ;;  %v2173_v10 = vunpack.c.l.bf16 %v2141_v1  ;;  %7721 = vst [vmem:[#allocation20_spill] sm:$0xff] %v5242_v8  ;;  %v1165_v0 = vld [vmem:[#allocation2 + $0x7c] sm:$0xf] }
 0x136   : > { %7720 = vst [vmem:[#allocation19_spill] sm:$0xff] %v5236_v28  ;;  %v2469_v11 = vrot.slane %v2467_v5, 4  ;;  %v2472_v30 = vrot.slane %v2470_v39, 5  ;;  %v3147_v16 = vunpack.c.l.bf16 %v3115_v31  ;;  %v3422_v35 = vshll.u32 %v3115_v31, 16  ;;  %v2128_v5 = vld [vmem:[#allocation2 + $0x1c] sm:$0xf] }
 0x137   : > { %v1519_v45 = vor.u32 %v1518_v17, %v1515_v19  ;;  %v3421_v53 = vrot.slane %v3419_v38, 4  ;;  %v1354_v57 = vshll.u32 %v1149_v55, 16  ;;  %v1181_v32 = vunpack.c.l.bf16 %v1149_v55 }
 0x138   : > { %v2473_v63 = vor.u32 %v2472_v30, %v2469_v11  ;;  %v3424_v28 = vrot.slane %v3422_v35, 5  ;;  %v1358_v29 = vshrl.u32 %v1149_v55, 16  ;;  %v5244_v56 = vrot.slane %v2281_v2, 4  ;;  %v2259_v2 = vld [vmem:[#allocation2 + $0x20] sm:$0x1] }
 0x139   : > { %v1356_v54 = vrot.slane %v1354_v57, 5  ;;  %v1364_v47 = vshll.u32 %v1279_v40, 16  ;;  %v1896_v1 = vrot.slane %v1149_v55, 5  ;;  %v5247_v39 = vmul.f32 %v5164_v44, %v2173_v10 }
 0x13a   : > { %v5250_v31 = vmul.f32 %v5180_v59, %v3147_v16  ;;  %v3425_v19 = vor.u32 %v3424_v28, %v3421_v53  ;;  %v1360_v38 = vrot.slane %v1358_v29, 4  ;;  %v5252_v17 = vrot.slane %v1519_v45, 4 }
 0x13b   : > { %7722 = vst [vmem:[#allocation21_spill] sm:$0xff] %v5247_v39  ;;  %v1898_v30 = vrot.slane %v1896_v1, 4  ;;  %v1899_v35 = vrot.slane %v1279_v40, 5  ;;  %v5255_v13 = vrot.slane %v2473_v63, 4  ;;  %v1218_v57 = vmul.f32 %v5036_v7, %v1181_v32 }
 0x13c   : > { %7723 = vst [vmem:[#allocation22_spill] sm:$0xff] %v5250_v31  ;;  %v1357_v10 = vsel %vm5023_vm5, %v5185_v21, %v1356_v54  ;;  %v1361_v55 = vor.u32 %v1360_v38, %v1356_v54  ;;  %v1366_v16 = vrot.slane %v1364_v47, 5  ;;  %v2308_v45 = vshll.u32 %v2128_v5, 16  ;;  %v3102_v47 = vld [vmem:[#allocation2 + $0x1c] sm:$0xf] }
 0x13d   : > { %7724 = vst [vmem:[#allocation23_spill] sm:$0xff] %v5255_v13  ;;  %v1900_v28 = vsel %vm5029_vm8, %v1898_v30, %v1899_v35  ;;  %v2312_v53 = vshrl.u32 %v2128_v5, 16  ;;  %v5263_v29 = vrot.slane %v3425_v19, 4  ;;  %v7726_v40 = vrot.slane %v5145_v26, 9 }
 0x13e   : > { %v1362_v11 = vrot.slane %v1361_v55, 4  ;;  %v2318_v32 = vshll.u32 %v2259_v2, 16  ;;  %v1716_v31 = vunpack.c.l.bf16 %v1357_v10  ;;  %v2310_v39 = vrot.slane %v2308_v45, 5 }
 0x13f   : > { %7725 = vst [vmem:[#allocation24_spill] sm:$0xff] %v5263_v29  ;;  %v5269_v63 = vsel %vm5029_vm8, %v7726_v40, %v1896_v1  ;;  %v2314_v21 = vrot.slane %v2312_v53, 4  ;;  %v2864_v54 = vrot.slane %v2128_v5, 5  ;;  %v2029_v30 = vunpack.c.l.bf16 %v1900_v28  ;;  %v3234_v40 = vld [vmem:[#allocation2 + $0x20] sm:$0x1]  ;;  %v5276_v29 = vpop.f32.mrb[7].mxu0 }
 0x140   : > { %7727 = vst [vmem:[#allocation25_spill] sm:$0xff] %v5269_v63  ;;  %v1367_v38 = vsel %vm5023_vm5, %v1362_v11, %v1366_v16  ;;  %v2160_v35 = vunpack.c.l.bf16 %v2128_v5  ;;  %v2320_v19 = vrot.slane %v2318_v32, 5  ;;  %v2311_v26 = vsel %vm5023_vm5, %v5192_v33, %v2310_v39  ;;  %7728 = vst [vmem:[#allocation26_spill] sm:$0xff] %v5276_v29  ;;  %v5288_v33 = vld [vmem:[%s7652_s3 + $0x4] ss:$0 sm:$0xff] }
 0x141   : > { %v1717_v8 = vunpack.c.l.bf16 %v1367_v38  ;;  %v2315_v55 = vor.u32 %v2314_v21, %v2310_v39  ;;  %v2867_v1 = vrot.slane %v2259_v2, 5  ;;  %v2692_v10 = vunpack.c.l.bf16 %v2311_v26  ;;  %v3118_v63 = vld [vmem:[#allocation2 + $0x7c] sm:$0xf] }
 0x142   : > { %v7729_v45 = vrot.slane %v5149_v34, 9  ;;  %v2866_v11 = vrot.slane %v2864_v54, 4  ;;  %v3134_v5 = vunpack.c.l.bf16 %v3102_v47  ;;  %v3260_v39 = vshll.u32 %v3102_v47, 16 }
 0x143   : > { %v1754_v16 = vmul.f32 %v5041_v9, %v1717_v8  ;;  %v2316_v28 = vrot.slane %v2315_v55, 4  ;;  %v3264_v2 = vshrl.u32 %v3102_v47, 16  ;;  %v5291_v32 = vmul.f32 %v5041_v9, %v1716_v31 }
 0x144   : > { %v5282_v53 = vsel %vm5029_vm8, %v7729_v45, %v2864_v54  ;;  %v2868_v21 = vsel %vm5029_vm8, %v2866_v11, %v2867_v1  ;;  %v3270_v54 = vshll.u32 %v3234_v40, 16  ;;  %v5297_v38 = vmul.f32 %v5050_v15, %v2029_v30 }
 0x145   : > { %7730 = vst [vmem:[#allocation27_spill] sm:$0xff] %v5282_v53  ;;  %v5300_v8 = vmul.f32 %v5164_v44, %v2160_v35  ;;  %v2321_v26 = vsel %vm5023_vm5, %v2316_v28, %v2320_v19  ;;  %v3262_v55 = vrot.slane %v3260_v39, 5  ;;  %v5305_v45 = vmul.f32 %v5288_v33, %v2692_v10  ;;  %v2144_v53 = vld [vmem:[#allocation2 + $0x7c] sm:$0xf] }
 0x146   : > { %7731 = vst [vmem:[#allocation28_spill] sm:$0xff] %v5297_v38  ;;  %v3266_v34 = vrot.slane %v3264_v2, 4  ;;  %v3833_v29 = vrot.slane %v3102_v47, 5  ;;  %v5308_v1 = vadd.f32 %v1754_v16, %v1218_v57  ;;  %v3002_v11 = vunpack.c.l.bf16 %v2868_v21  ;;  %v1287_v47 = vld [vmem:[#allocation2 + $0x80] sm:$0x1] }
 0x147   : > { %7732 = vst [vmem:[#allocation29_spill] sm:$0xff] %v5305_v45  ;;  %v5311_v30 = vmul.f32 %v5180_v59, %v3134_v5  ;;  %v3263_v35 = vsel %vm5023_vm5, %v5201_v49, %v3262_v55  ;;  %v2693_v19 = vunpack.c.l.bf16 %v2321_v26  ;;  %v3272_v39 = vrot.slane %v3270_v54, 5  ;;  %v5323_v5 = vld [vmem:[%s7652_s3 + $0x5] ss:$0 sm:$0xff] }
 0x148   : > { %7733 = vst [vmem:[#allocation30_spill] sm:$0xff] %v5308_v1  ;;  %v3267_v28 = vor.u32 %v3266_v34, %v3262_v55  ;;  %v7734_v10 = vrot.slane %v5170_v50, 9  ;;  %v3835_v31 = vrot.slane %v3833_v29, 4  ;;  %v3836_v57 = vrot.slane %v3234_v40, 5  ;;  %v5328_v50 = vld [vmem:[%s7652_s3 + $0x7] ss:$0 sm:$0xff] }
 0x149   : > { %v1197_v16 = vunpack.c.l.bf16 %v1165_v0  ;;  %v1546_v21 = vshll.u32 %v1165_v0, 16  ;;  %v3666_v49 = vunpack.c.l.bf16 %v3263_v35  ;;  %v1550_v34 = vshrl.u32 %v1165_v0, 16 }
 0x14a   : > { %v3834_v2 = vsel %vm5029_vm8, %v7734_v10, %v3833_v29  ;;  %v3268_v38 = vrot.slane %v3267_v28, 4  ;;  %v3837_v29 = vsel %vm5029_vm8, %v3835_v31, %v3836_v57  ;;  %v1556_v54 = vshll.u32 %v1287_v47, 16 }
 0x14b   : > { %v3975_v26 = vunpack.c.l.bf16 %v3834_v2  ;;  %v1548_v40 = vrot.slane %v1546_v21, 5  ;;  %v1952_v55 = vrot.slane %v1165_v0, 5  ;;  %v5333_v10 = vmul.f32 %v5323_v5, %v3002_v11  ;;  %v5340_v2 = vld [vmem:[%s7652_s3 + $0x8] ss:$0 sm:$0xff] }
 0x14c   : > { %v3273_v28 = vsel %vm5023_vm5, %v3268_v38, %v3272_v39  ;;  %v3976_v35 = vunpack.c.l.bf16 %v3837_v29  ;;  %v1552_v1 = vrot.slane %v1550_v34, 4  ;;  %v5343_v45 = vmul.f32 %v5288_v33, %v2693_v19 }
 0x14d   : > { %7735 = vst [vmem:[#allocation31_spill] sm:$0xff] %v5333_v10  ;;  %v3667_v31 = vunpack.c.l.bf16 %v3273_v28  ;;  %v5346_v0 = vmul.f32 %v5036_v7, %v1197_v16  ;;  %v1954_v11 = vrot.slane %v1952_v55, 4  ;;  %v5349_v57 = vmul.f32 %v5328_v50, %v3666_v49  ;;  %v2267_v28 = vld [vmem:[#allocation2 + $0x80] sm:$0x1] }
 0x14e   : > { %7736 = vst [vmem:[#allocation32_spill] sm:$0xff] %v5343_v45  ;;  %v1549_v38 = vsel %vm5023_vm5, %v5214_v24, %v1548_v40  ;;  %v1553_v39 = vor.u32 %v1552_v1, %v1548_v40  ;;  %v1955_v21 = vrot.slane %v1287_v47, 5  ;;  %v5355_v34 = vmul.f32 %v5340_v2, %v3975_v26 }
 0x14f   : > { %v1558_v29 = vrot.slane %v1556_v54, 5  ;;  %v7737_v19 = vrot.slane %v5183_v6, 9  ;;  %v2500_v10 = vshll.u32 %v2144_v53, 16  ;;  %v5364_v49 = vmul.f32 %v5340_v2, %v3976_v35 }
 0x150   : > { %v1554_v45 = vrot.slane %v1553_v39, 4  ;;  %v1956_v24 = vsel %vm5029_vm8, %v1954_v11, %v1955_v21  ;;  %v2504_v1 = vshrl.u32 %v2144_v53, 16  ;;  %v5369_v47 = vmul.f32 %v5328_v50, %v3667_v31 }
 0x151   : > { %v5361_v16 = vsel %vm5029_vm8, %v7737_v19, %v1952_v55  ;;  %7739 = vst [vmem:[#allocation34_spill] sm:$0xff] %v5364_v49  ;;  %v1732_v26 = vunpack.c.l.bf16 %v1549_v38  ;;  %v2176_v40 = vunpack.c.l.bf16 %v2144_v53  ;;  %v2502_v6 = vrot.slane %v2500_v10, 5 }
 0x152   : > { %7738 = vst [vmem:[#allocation33_spill] sm:$0xff] %v5361_v16  ;;  %v1559_v54 = vsel %vm5023_vm5, %v1554_v45, %v1558_v29  ;;  %v2506_v55 = vrot.slane %v2504_v1, 4  ;;  %v2510_v19 = vshll.u32 %v2267_v28, 16  ;;  %v2920_v13 = vrot.slane %v2144_v53, 5  ;;  %v1147_v16 = vld [vmem:[#allocation2 + $0x10] sm:$0xf] }
 0x153   : > { %v1733_v35 = vunpack.c.l.bf16 %v1559_v54  ;;  %v2045_v49 = vunpack.c.l.bf16 %v1956_v24  ;;  %v2503_v11 = vsel %vm5023_vm5, %v5222_v61, %v2502_v6  ;;  %v7740_v38 = vrot.slane %v5190_v23, 9  ;;  %v3242_v23 = vld [vmem:[#allocation2 + $0x80] sm:$0x1] }
 0x154   : > { %v2507_v31 = vor.u32 %v2506_v55, %v2502_v6  ;;  %v2922_v45 = vrot.slane %v2920_v13, 4  ;;  %v2923_v21 = vrot.slane %v2267_v28, 5  ;;  %v5384_v53 = vmul.f32 %v5041_v9, %v1732_v26 }
 0x155   : > { %v5381_v10 = vsel %vm5029_vm8, %v7740_v38, %v2920_v13  ;;  %v5387_v29 = vmul.f32 %v5164_v44, %v2176_v40  ;;  %v2708_v24 = vunpack.c.l.bf16 %v2503_v11  ;;  %v3452_v1 = vshll.u32 %v3118_v63, 16  ;;  %v5396_v38 = vpop.f32.mrb[7].mxu1 }
 0x156   : > { %7741 = vst [vmem:[#allocation35_spill] sm:$0xff] %v5381_v10  ;;  %7742 = vst [vmem:[#allocation36_spill] sm:$0xff] %v5384_v53  ;;  %v2508_v54 = vrot.slane %v2507_v31, 4  ;;  %v2512_v39 = vrot.slane %v2510_v19, 5  ;;  %v2924_v61 = vsel %vm5029_vm8, %v2922_v45, %v2923_v21  ;;  %v3456_v6 = vshrl.u32 %v3118_v63, 16 }
 0x157   : > { %v1770_v55 = vmul.f32 %v5041_v9, %v1733_v35  ;;  %v5393_v13 = vmul.f32 %v5050_v15, %v2045_v49  ;;  %v3454_v26 = vrot.slane %v3452_v1, 5  ;;  %7744 = vst [vmem:[#allocation38_spill] sm:$0xff] %v5396_v38  ;;  %v3150_v11 = vunpack.c.l.bf16 %v3118_v63 }
 0x158   : > { %v2513_v40 = vsel %vm5023_vm5, %v2508_v54, %v2512_v39  ;;  %v3458_v19 = vrot.slane %v3456_v6, 4  ;;  %v3889_v31 = vrot.slane %v3118_v63, 5  ;;  %v5401_v45 = vmul.f32 %v5288_v33, %v2708_v24  ;;  %v1278_v24 = vld [vmem:[#allocation2 + $0x14] sm:$0x1] }
 0x159   : > { %7743 = vst [vmem:[#allocation37_spill] sm:$0xff] %v5393_v13  ;;  %v3018_v21 = vunpack.c.l.bf16 %v2924_v61  ;;  %v3455_v49 = vsel %vm5023_vm5, %v5228_v48, %v3454_v26  ;;  %v3462_v35 = vshll.u32 %v3242_v23, 16  ;;  %v2709_v28 = vunpack.c.l.bf16 %v2513_v40 }
 0x15a   : > { %7745 = vst [vmem:[#allocation39_spill] sm:$0xff] %v5401_v45  ;;  %v3459_v1 = vor.u32 %v3458_v19, %v3454_v26  ;;  %v7746_v13 = vrot.slane %v5207_v58, 9  ;;  %v3892_v54 = vrot.slane %v3242_v23, 5  ;;  %v3682_v6 = vunpack.c.l.bf16 %v3455_v49 }
 0x15b   : > { %v3891_v63 = vrot.slane %v3889_v31, 4  ;;  %v1179_v10 = vunpack.c.l.bf16 %v1147_v16  ;;  %v5411_v61 = vadd.f32 %v1770_v55, %v5346_v0  ;;  %v1330_v53 = vshll.u32 %v1147_v16, 16  ;;  %v2126_v55 = vld [vmem:[#allocation2 + $0x10] sm:$0xf] }
 0x15c   : > { %v3890_v39 = vsel %vm5029_vm8, %v7746_v13, %v3889_v31  ;;  %v3460_v45 = vrot.slane %v3459_v1, 4  ;;  %v1334_v48 = vshrl.u32 %v1147_v16, 16  ;;  %v5414_v40 = vmul.f32 %v5323_v5, %v3018_v21 }
 0x15d   : > { %v3991_v38 = vunpack.c.l.bf16 %v3890_v39  ;;  %v5417_v58 = vmul.f32 %v5180_v59, %v3150_v11  ;;  %v3464_v26 = vrot.slane %v3462_v35, 5  ;;  %v3893_v23 = vsel %vm5029_vm8, %v3891_v63, %v3892_v54  ;;  %v2258_v54 = vld [vmem:[#allocation2 + $0x14] sm:$0x1] }
 0x15e   : > { %v5422_v13 = vmul.f32 %v5288_v33, %v2709_v28  ;;  %v1332_v19 = vrot.slane %v1330_v53, 5  ;;  %v1336_v31 = vrot.slane %v1334_v48, 4  ;;  %v1340_v0 = vshll.u32 %v1278_v24, 16 }
 0x15f   : > { %7747 = vst [vmem:[#allocation40_spill] sm:$0xff] %v5417_v58  ;;  %v5425_v49 = vmul.f32 %v5328_v50, %v3682_v6  ;;  %v5428_v21 = vmul.f32 %v5340_v2, %v3991_v38  ;;  %v1216_v11 = vmul.f32 %v5036_v7, %v1179_v10  ;;  %v1889_v1 = vrot.slane %v1147_v16, 5 }
 0x160   : > { %v3465_v35 = vsel %vm5023_vm5, %v3460_v45, %v3464_v26  ;;  %v3992_v39 = vunpack.c.l.bf16 %v3893_v23  ;;  %v1333_v53 = vsel %vm5023_vm5, %v5239_v51, %v1332_v19  ;;  %v1337_v28 = vor.u32 %v1336_v31, %v1332_v19 }
 0x161   : > { %7748 = vst [vmem:[#allocation41_spill] sm:$0xff] %v5425_v49  ;;  %7749 = vst [vmem:[#allocation42_spill] sm:$0xff] %v5428_v21  ;;  %v7750_v63 = vrot.slane %v5209_v25, 9  ;;  %v1891_v38 = vrot.slane %v1889_v1, 4  ;;  %v1892_v48 = vrot.slane %v1278_v24, 5  ;;  %v2158_v21 = vunpack.c.l.bf16 %v2126_v55 }
 0x162   : > { %v1338_v7 = vrot.slane %v1337_v28, 4  ;;  %v1342_v16 = vrot.slane %v1340_v0, 5  ;;  %v1714_v10 = vunpack.c.l.bf16 %v1333_v53  ;;  %v2284_v58 = vshll.u32 %v2126_v55, 16  ;;  %v1092_v49 = vld [vmem:[#allocation2 + $0x74] sm:$0x1] }
 0x163   : > { %v1890_v6 = vsel %vm5029_vm8, %v7750_v63, %v1889_v1  ;;  %v3683_v45 = vunpack.c.l.bf16 %v3465_v35  ;;  %v1893_v26 = vsel %vm5029_vm8, %v1891_v38, %v1892_v48  ;;  %v2288_v23 = vshrl.u32 %v2126_v55, 16 }
 0x164   : > { %v2294_v51 = vshll.u32 %v2258_v54, 16  ;;  %v5443_v19 = vmul.f32 %v5340_v2, %v3992_v39  ;;  %v1343_v25 = vsel %vm5023_vm5, %v1338_v7, %v1342_v16  ;;  %v2026_v31 = vunpack.c.l.bf16 %v1890_v6 }
 0x165   : > { %v2027_v1 = vunpack.c.l.bf16 %v1893_v26  ;;  %v1715_v24 = vunpack.c.l.bf16 %v1343_v25  ;;  %v2195_v28 = vmul.f32 %v5164_v44, %v2158_v21  ;;  %v2286_v0 = vrot.slane %v2284_v58, 5 }
 0x166   : > { %7751 = vst [vmem:[#allocation43_spill] sm:$0xff] %v5443_v19  ;;  %v2290_v53 = vrot.slane %v2288_v23, 4  ;;  %v1751_v35 = vmul.f32 %v5041_v9, %v1714_v10  ;;  %v2296_v38 = vrot.slane %v2294_v51, 5  ;;  %v2857_v48 = vrot.slane %v2126_v55, 5 }
 0x167   : > { %v2064_v63 = vmul.f32 %v5050_v15, %v2027_v1  ;;  %v1752_v39 = vmul.f32 %v5041_v9, %v1715_v24  ;;  %v2287_v7 = vsel %vm5023_vm5, %v5244_v56, %v2286_v0  ;;  %v2860_v16 = vrot.slane %v2258_v54, 5 }
 0x168   : > { %v2291_v6 = vor.u32 %v2290_v53, %v2286_v0  ;;  %v2690_v26 = vunpack.c.l.bf16 %v2287_v7  ;;  %v7752_v21 = vrot.slane %v5212_v4, 9  ;;  %v2859_v10 = vrot.slane %v2857_v48, 4  ;;  %v1053_v7 = vld [vmem:[#allocation2 + $0x30] sm:$0xf] }
 0x169   : > { %v7753_v23 = vrot.slane %v5088_v18, 4  ;;  %v1784_v9 = vadd.f32 %v1752_v39, %v1216_v11  ;;  %v7754_v56 = vrot.slane %v5125_v62, 4  ;;  %v1783_v54 = vadd.f32 %v1751_v35, %v5225_v37 }
 0x16a   : > { %v2858_v58 = vsel %vm5029_vm8, %v7752_v21, %v2857_v48  ;;  %v2292_v51 = vrot.slane %v2291_v6, 4  ;;  %v2727_v1 = vmul.f32 %v5288_v33, %v2690_v26  ;;  %v2861_v18 = vsel %vm5029_vm8, %v2859_v10, %v2860_v16 }
 0x16b   : > { %v857_v55 = vsel %vm5111_vm13, %v7753_v23, %v5156_v27  ;;  %v2999_v25 = vunpack.c.l.bf16 %v2858_v58  ;;  %v1093_v4 = vsel %vm5118_vm14, %v7754_v56, %v1092_v49  ;;  %v758_v27 = vshrl.u32 %v5158_v42, 16  ;;  %v4491_v56 = vld [vmem:[%s7653_s4] ss:$0 sm:$0xff] }
 0x16c   : > { %1091 = vst.msk [vmem:[#allocation2 + $0x70] sm:$0xf] %vm567_vm1, %v857_v55  ;;  %1094 = vst [vmem:[#allocation2 + $0x74] sm:$0x1] %v1093_v4  ;;  %v2096_v11 = vadd.f32 %v2064_v63, %v1784_v9  ;;  %v2297_v24 = vsel %vm5023_vm5, %v2292_v51, %v2296_v38  ;;  %v3000_v0 = vunpack.c.l.bf16 %v2861_v18  ;;  %v761_v62 = vshll.u32 %v5158_v42, 16  ;;  %v7756_v18 = vld [vmem:[#allocation17_spill] sm:$0xff] }
 0x16d   : > { %v2691_v53 = vunpack.c.l.bf16 %v2297_v24  ;;  %v2759_v49 = vadd.f32 %v2727_v1, %v5231_v43  ;;  %v3036_v37 = vmul.f32 %v5323_v5, %v2999_v25  ;;  %v5478_v35 = vrot.slane %v758_v27, 7 }
 0x16e   : > { %v5481_v48 = vmul.f32 %v5328_v50, %v3683_v45  ;;  %v2063_v39 = vmul.f32 %v5050_v15, %v2026_v31  ;;  %v2227_v63 = vadd.f32 %v2195_v28, %v5153_v36  ;;  %v894_v38 = vshrl.u32 %v5172_v52, 16 }
 0x16f   : > { %v2728_v42 = vmul.f32 %v5288_v33, %v2691_v53  ;;  %v3068_v6 = vadd.f32 %v3036_v37, %v2759_v49  ;;  %v763_v43 = vor.u32 %v761_v62, %v5478_v35  ;;  %v5491_v16 = vadd.f32 %v5056_v20, %v5076_v12 }
 0x170   : > { %7755 = vst [vmem:[#allocation44_spill] sm:$0xff] %v5481_v48  ;;  %v5493_v45 = vadd.f32 %v2063_v39, %v1783_v54  ;;  %v5496_v15 = vadd.f32 %v5300_v8, %v2096_v11  ;;  %v3037_v36 = vmul.f32 %v5323_v5, %v3000_v0  ;;  %v897_v31 = vshll.u32 %v5172_v52, 16 }
 0x171   : > { %v2760_v28 = vadd.f32 %v2728_v42, %v2227_v63  ;;  %v3202_v26 = vadd.f32 %v5188_v22, %v3068_v6  ;;  %v1054_v20 = vsel %vm5082_vm12, %v763_v43, %v1053_v7  ;;  %v5504_v8 = vrot.slane %v894_v38, 7  ;;  %v7758_v63 = vld [vmem:[#allocation11_spill] sm:$0xff] }
 0x172   : > { %1055 = vst [vmem:[#allocation2 + $0x30] sm:$0xf] %v1054_v20  ;;  %v7757_v27 = vrot.slane %v7756_v18, 9  ;;  %v5527_v7 = vadd.f32 %v5291_v32, %v7758_v63  ;;  %v5536_v6 = vld [vmem:[%s7652_s3] ss:$0 sm:$0xff] }
 0x173   : > { %v1163_v21 = vld [vmem:[#allocation2 + $0x70] sm:$0xf]  ;;  %v1286_v12 = vld [vmem:[#allocation2 + $0x74] sm:$0x1]  ;;  %v3069_v9 = vadd.f32 %v3037_v36, %v2760_v28  ;;  %v3735_v51 = vadd.f32 %v5349_v57, %v3202_v26  ;;  %v5542_v32 = vld [vmem:[%s7652_s3 + $0x2] ss:$0 sm:$0xff] }
 0x174   : > { %v1522_v10 = vshll.u32 %v1163_v21, 16  ;;  %v1526_v23 = vshrl.u32 %v1163_v21, 16  ;;  %v1945_v55 = vrot.slane %v1163_v21, 5  ;;  %v1195_v22 = vunpack.c.l.bf16 %v1163_v21  ;;  %v2142_v39 = vld [vmem:[#allocation2 + $0x70] sm:$0xf]  ;;  %v7761_v21 = vld [vmem:[#allocation34_spill] sm:$0xff] }
 0x175   : > { %v1532_v1 = vshll.u32 %v1286_v12, 16  ;;  %v3203_v24 = vadd.f32 %v5311_v30, %v3069_v9  ;;  %v4044_v57 = vadd.f32 %v5355_v34, %v3735_v51  ;;  %v1948_v62 = vrot.slane %v1286_v12, 5  ;;  %v7762_v63 = vld [vmem:[#allocation19_spill] sm:$0xff] }
 0x176   : > { %v1524_v4 = vrot.slane %v1522_v10, 5  ;;  %v1528_v54 = vrot.slane %v1526_v23, 4  ;;  %v1946_v11 = vsel %vm5029_vm8, %v7757_v27, %v1945_v55  ;;  %v1947_v0 = vrot.slane %v1945_v55, 4  ;;  %v5553_v10 = vld [vmem:[%s7652_s3 + $0x1] ss:$0 sm:$0xff] }
 0x177   : > { %v2042_v37 = vunpack.c.l.bf16 %v1946_v11  ;;  %v3736_v38 = vadd.f32 %v5369_v47, %v3203_v24  ;;  %v4083_v42 = vadd.f32 %v4491_v56, %v4044_v57  ;;  %v1534_v36 = vrot.slane %v1532_v1, 5  ;;  %v7759_v47 = vld [vmem:[#allocation25_spill] sm:$0xff] }
 0x178   : > { %v1525_v53 = vsel %vm5023_vm5, %v5252_v17, %v1524_v4  ;;  %v1529_v49 = vor.u32 %v1528_v54, %v1524_v4  ;;  %v1949_v34 = vsel %vm5029_vm8, %v1947_v0, %v1948_v62  ;;  %v1232_v17 = vmul.f32 %v5536_v6, %v1195_v22  ;;  %v2266_v55 = vld [vmem:[#allocation2 + $0x74] sm:$0x1] }
 0x179   : > { %v1730_v30 = vunpack.c.l.bf16 %v1525_v53  ;;  %v7760_v28 = vunpack.c.l.bf16 %v7759_v47  ;;  %v4045_v20 = vadd.f32 %v7761_v21, %v3736_v38  ;;  %v4115_v12 = vmax.f32 %v4083_v42, 0.0  ;;  %v5639_v25 = vld [vmem:[#allocation2 + $0x30] sm:$0xe] }
 0x17a   : > { %v1530_v43 = vrot.slane %v1529_v49, 4  ;;  %v2476_v9 = vshll.u32 %v2142_v39, 16  ;;  %v2043_v22 = vunpack.c.l.bf16 %v1949_v34  ;;  %v2174_v4 = vunpack.c.l.bf16 %v2142_v39  ;;  %v5568_v34 = vpop.f32.mrb[8].mxu0 }
 0x17b   : > { %v5547_v26 = vmul.f32 %v5542_v32, %v7760_v28  ;;  %v1767_v23 = vmul.f32 %v5553_v10, %v1730_v30  ;;  %v2480_v54 = vshrl.u32 %v2142_v39, 16  ;;  %v4084_v1 = vadd.f32 %v4491_v56, %v4045_v20  ;;  %v3116_v30 = vld [vmem:[#allocation2 + $0x70] sm:$0xf]  ;;  %v7763_v56 = vld [vmem:[#allocation23_spill] sm:$0xff] }
 0x17c   : > { %v1535_v51 = vsel %vm5023_vm5, %v1530_v43, %v1534_v36  ;;  %v4560_v18 = vpack.c.bf16 %v4115_v12, %v4115_v12  ;;  %v2079_v11 = vmul.f32 %v5542_v32, %v2042_v37  ;;  %v2478_v24 = vrot.slane %v2476_v9, 5  ;;  %v7764_v36 = vld [vmem:[#allocation18_spill] sm:$0xff] }
 0x17d   : > { %v1731_v27 = vunpack.c.l.bf16 %v1535_v51  ;;  %v2482_v57 = vrot.slane %v2480_v54, 4  ;;  %v2486_v0 = vshll.u32 %v2266_v55, 16  ;;  %v2913_v62 = vrot.slane %v2142_v39, 5 }
 0x17e   : > { %v4116_v53 = vmax.f32 %v4084_v1, 0.0  ;;  %4275 = vst.msk [vmem:[%s5559_s28] sm:$0xf] %vm567_vm1, %v4560_v18  ;;  %v1799_v38 = vadd.f32 %v1767_v23, %v7762_v63  ;;  %v2916_v42 = vrot.slane %v2266_v55, 5  ;;  %v2479_v37 = vsel %vm5023_vm5, %v7763_v56, %v2478_v24  ;;  %v1152_v56 = vld [vmem:[#allocation2 + $0x30] sm:$0xf] }
 0x17f   : > { %v1768_v49 = vmul.f32 %v5553_v10, %v1731_v27  ;;  %v2483_v43 = vor.u32 %v2482_v57, %v2478_v24  ;;  %v7765_v47 = vrot.slane %v7764_v36, 9  ;;  %v2915_v28 = vrot.slane %v2913_v62, 4  ;;  %v3241_v24 = vld [vmem:[#allocation2 + $0x74] sm:$0x1]  ;;  %v7767_v57 = vld [vmem:[#allocation12_spill] sm:$0xff] }
 0x180   : > { %v4561_v21 = vpack.c.bf16 %v4116_v53, %v4116_v53  ;;  %v2706_v12 = vunpack.c.l.bf16 %v2479_v37  ;;  %v2488_v55 = vrot.slane %v2486_v0, 5  ;;  %v3428_v54 = vshll.u32 %v3116_v30, 16  ;;  %v7770_v37 = vld [vmem:[#allocation24_spill] sm:$0xff] }
 0x181   : > { %v2914_v39 = vsel %vm5029_vm8, %v7765_v47, %v2913_v62  ;;  %v1800_v20 = vadd.f32 %v1768_v49, %v1232_v17  ;;  %v2484_v9 = vrot.slane %v2483_v43, 4  ;;  %v2917_v51 = vsel %vm5029_vm8, %v2915_v28, %v2916_v42 }
 0x182   : > { %v3015_v23 = vunpack.c.l.bf16 %v2914_v39  ;;  %4276 = vst.msk [vmem:[%s5559_s28 + $0x4] sm:$0xf] %vm567_vm1, %v4561_v21  ;;  %v2080_v1 = vmul.f32 %v5542_v32, %v2043_v22  ;;  %v5583_v18 = vmul.f32 %v5164_v44, %v2174_v4  ;;  %v3148_v27 = vunpack.c.l.bf16 %v3116_v30 }
 0x183   : > { %v5587_v17 = vadd.f32 %v7767_v57, %v5493_v45  ;;  %v5589_v62 = vadd.f32 %v2079_v11, %v1799_v38  ;;  %v2489_v0 = vsel %vm5023_vm5, %v2484_v9, %v2488_v55  ;;  %v3430_v53 = vrot.slane %v3428_v54, 5 }
 0x184   : > { %7766 = vst [vmem:[#allocation17_spill] sm:$0xff] %v5583_v18  ;;  %v3432_v49 = vshrl.u32 %v3116_v30, 16  ;;  %v2112_v63 = vadd.f32 %v2080_v1, %v1800_v20  ;;  %v5594_v42 = vmul.f32 %v5288_v33, %v2706_v12  ;;  %v3016_v22 = vunpack.c.l.bf16 %v2917_v51  ;;  %v7772_v20 = vld [vmem:[#allocation20_spill] sm:$0xff] }
 0x185   : > { %v5597_v4 = vmul.f32 %v5323_v5, %v3015_v23  ;;  %v3431_v45 = vsel %vm5023_vm5, %v7770_v37, %v3430_v53  ;;  %v3438_v38 = vshll.u32 %v3241_v24, 16  ;;  %v3882_v43 = vrot.slane %v3116_v30, 5 }
 0x186   : > { %7768 = vst [vmem:[#allocation11_spill] sm:$0xff] %v5594_v42  ;;  %v3434_v11 = vrot.slane %v3432_v49, 4  ;;  %v2707_v36 = vunpack.c.l.bf16 %v2489_v0  ;;  %v5603_v47 = vmul.f32 %v5180_v59, %v3148_v27  ;;  %v3680_v39 = vunpack.c.l.bf16 %v3431_v45  ;;  %v2131_v27 = vld [vmem:[#allocation2 + $0x30] sm:$0xf] }
 0x187   : > { %7769 = vst [vmem:[#allocation25_spill] sm:$0xff] %v5597_v4  ;;  %v3885_v28 = vrot.slane %v3241_v24, 5  ;;  %v7773_v12 = vrot.slane %v7772_v20, 9  ;;  %v3884_v9 = vrot.slane %v3882_v43, 4  ;;  %v1393_v55 = vshrl.u32 %v1152_v56, 16  ;;  %v7806_v4 = vld [vmem:[#allocation38_spill] sm:$0xff] }
 0x188   : > { %7771 = vst [vmem:[#allocation34_spill] sm:$0xff] %v5603_v47  ;;  %v3435_v21 = vor.u32 %v3434_v11, %v3430_v53  ;;  %v5610_v51 = vadd.f32 %v5387_v29, %v2112_v63  ;;  %v5613_v54 = vmul.f32 %v5323_v5, %v3016_v22  ;;  %v1184_v30 = vunpack.c.l.bf16 %v1152_v56  ;;  %v3105_v45 = vld [vmem:[#allocation2 + $0x30] sm:$0xf]  ;;  %v5623_v22 = vpop.f32.mrb[8].mxu1 }
 0x189   : > { %v3883_v23 = vsel %vm5029_vm8, %v7773_v12, %v3882_v43  ;;  %v1396_v1 = vshll.u32 %v1152_v56, 16  ;;  %v3440_v0 = vrot.slane %v3438_v38, 5  ;;  %v3886_v24 = vsel %vm5029_vm8, %v3884_v9, %v3885_v28  ;;  %v5627_v38 = vld [vmem:[#allocation2 + $0x30] sm:$0xe] }
 0x18a   : > { %7774 = vst [vmem:[#allocation19_spill] sm:$0xff] %v5613_v54  ;;  %v3436_v57 = vrot.slane %v3435_v21, 4  ;;  %v1395_v53 = vrot.slane %v1393_v55, 4  ;;  %v5618_v49 = vmul.f32 %v5288_v33, %v2707_v36  ;;  %v5621_v37 = vmul.f32 %v5328_v50, %v3680_v39  ;;  %v5629_v21 = vld [vmem:[#allocation2 + $0x30] sm:$0xe] }
 0x18b   : > { %v3989_v29 = vunpack.c.l.bf16 %v3883_v23  ;;  %v1398_v63 = vrot.slane %v1396_v1, 5  ;;  %v3990_v11 = vunpack.c.l.bf16 %v3886_v24  ;;  %v2347_v43 = vshrl.u32 %v2131_v27, 16  ;;  %v1109_v1 = vld [vmem:[#allocation2 + $0x90] sm:$0xf] }
 0x18c   : > { %7775 = vst [vmem:[#allocation23_spill] sm:$0xff] %v5618_v49  ;;  %7776 = vst [vmem:[#allocation18_spill] sm:$0xff] %v5621_v37  ;;  %v3441_v56 = vsel %vm5023_vm5, %v3436_v57, %v3440_v0  ;;  %v2350_v28 = vshll.u32 %v2131_v27, 16  ;;  %v5632_v36 = vmul.f32 %v5536_v6, %v1184_v30  ;;  %v2163_v20 = vunpack.c.l.bf16 %v2131_v27  ;;  %v7790_v0 = vld [vmem:[#allocation27_spill] sm:$0xff] }
 0x18d   : > { %v3681_v33 = vunpack.c.l.bf16 %v3441_v56  ;;  %v1399_v39 = vor.u32 %v1398_v63, %v1395_v53  ;;  %v2349_v12 = vrot.slane %v2347_v43, 4  ;;  %v3137_v9 = vunpack.c.l.bf16 %v3105_v45 }
 0x18e   : > { %7777 = vst [vmem:[#allocation12_spill] sm:$0xff] %v5632_v36  ;;  %v2352_v23 = vrot.slane %v2350_v28, 5  ;;  %v3299_v55 = vshrl.u32 %v3105_v45, 16  ;;  %v5635_v57 = vmul.f32 %v5340_v2, %v3989_v29  ;;  %v3302_v58 = vshll.u32 %v3105_v45, 16 }
 0x18f   : > { %v5642_v30 = vmul.f32 %v5340_v2, %v3990_v11  ;;  %v899_v63 = vor.u32 %v897_v31, %v5504_v8  ;;  %v5648_v56 = vmul.f32 %v5328_v50, %v3681_v33  ;;  %v5651_v29 = vmul.f32 %v5164_v44, %v2163_v20  ;;  %v5664_v50 = vpop.f32.mrb[9].mxu0  ;;  %v1046_v11 = vld [vmem:[#allocation2 + $0x24] sm:$0xf] }
 0x190   : > { %7778 = vst [vmem:[#allocation24_spill] sm:$0xff] %v5635_v57  ;;  %v2353_v53 = vor.u32 %v2352_v23, %v2349_v12  ;;  %v3301_v27 = vrot.slane %v3299_v55, 4  ;;  %v3304_v43 = vrot.slane %v3302_v58, 5  ;;  %v7782_v45 = vmax.f32 %v5491_v16, 0.0  ;;  %7784 = vst [vmem:[#allocation48_spill] sm:$0xff] %v5664_v50  ;;  %v7785_v58 = vld [vmem:[#allocation6_spill] sm:$0xff] }
 0x191   : > { %7779 = vst [vmem:[#allocation20_spill] sm:$0xff] %v5642_v30  ;;  %7780 = vst [vmem:[#allocation45_spill] sm:$0xff] %v5648_v56  ;;  %v5656_v24 = vrot.slane %v1399_v39, 4  ;;  %v5659_v2 = vmul.f32 %v5180_v59, %v3137_v9  ;;  %v1110_v52 = vsel %vm5082_vm12, %v899_v63, %v1109_v1  ;;  %v5669_v16 = vadd.f32 %v5547_v26, %v5527_v7  ;;  %v5674_v59 = vld [vmem:[%s7651_s2] ss:$0 sm:$0xff]  ;;  %v7786_v12 = vld [vmem:[#allocation29_spill] sm:$0xff] }
 0x192   : > { %7781 = vst [vmem:[#allocation46_spill] sm:$0xff] %v5651_v29  ;;  %v4532_v28 = vpack.c.bf16 %v7782_v45, %v7782_v45  ;;  %1111 = vst [vmem:[#allocation2 + $0x90] sm:$0xf] %v1110_v52  ;;  %v473_v33 = vadd.f32 %v5674_v59, %v7785_v58  ;;  %v5678_v39 = vrot.slane %v2353_v53, 4  ;;  %v3305_v20 = vor.u32 %v3304_v43, %v3301_v27  ;;  %v7787_v9 = vld [vmem:[#allocation14_spill] sm:$0xff]  ;;  %v7788_v63 = vld [vmem:[#allocation13_spill] sm:$0xff] }
 0x193   : > { %7783 = vst [vmem:[#allocation47_spill] sm:$0xff] %v5659_v2  ;;  %v2761_v23 = vadd.f32 %v7786_v12, %v5587_v17  ;;  %v2244_v55 = vadd.f32 %v7787_v9, %v5589_v62  ;;  %v7789_v45 = vld [vmem:[#allocation36_spill] sm:$0xff]  ;;  %v7791_v44 = vunpack.c.l.bf16 %v7790_v0  ;;  %v7792_v58 = vld [vmem:[#allocation39_spill] sm:$0xff]  ;;  %v7793_v43 = vld [vmem:[#allocation10_spill] sm:$0xff] }
 0x194   : > { %v741_v31 = vshrl.u32 %v4532_v28, 16  ;;  %v744_v7 = vshll.u32 %v4532_v28, 16  ;;  %v539_v26 = vmax.f32 %v473_v33, 0.0  ;;  %v1801_v52 = vadd.f32 %v7789_v45, %v7788_v63  ;;  %v7794_v12 = vld [vmem:[#allocation16_spill] sm:$0xff]  ;;  %v7795_v33 = vld [vmem:[#allocation33_spill] sm:$0xff]  ;;  %v7797_v45 = vld [vmem:[#allocation26_spill] sm:$0xff] }
 0x195   : > { %v3038_v53 = vmul.f32 %v5323_v5, %v7791_v44  ;;  %v2777_v27 = vadd.f32 %v7792_v58, %v2244_v55  ;;  %v420_v17 = vadd.f32 %v5674_v59, %v7793_v43  ;;  %v484_v62 = vadd.f32 %v5674_v59, %v7794_v12  ;;  %v7798_v58 = vld [vmem:[#allocation35_spill] sm:$0xff] }
 0x196   : > { %v5684_v1 = vrot.slane %v741_v31, 7  ;;  %v5697_v28 = vpack.c.bf16 %v539_v26, %v539_v26  ;;  %v7796_v9 = vunpack.c.l.bf16 %v7795_v33  ;;  %v5704_v0 = vadd.f32 %v5674_v59, %v7797_v45 }
 0x197   : > { %v5706_v44 = vrot.slane %v3305_v20, 4  ;;  %v5708_v55 = vadd.f32 %v3038_v53, %v2761_v23  ;;  %v7799_v43 = vunpack.c.l.bf16 %v7798_v58  ;;  %v526_v30 = vmax.f32 %v420_v17, 0.0  ;;  %v7800_v58 = vld [vmem:[#allocation30_spill] sm:$0xff] }
 0x198   : > { %v746_v31 = vor.u32 %v744_v7, %v5684_v1  ;;  %v2081_v63 = vmul.f32 %v5542_v32, %v7796_v9  ;;  %v542_v9 = vmax.f32 %v484_v62, 0.0  ;;  %v877_v20 = vshrl.u32 %v5697_v28, 16 }
 0x199   : > { %v3054_v12 = vmul.f32 %v5323_v5, %v7799_v43  ;;  %v1168_v56 = vld [vmem:[#allocation2 + $0x90] sm:$0xf]  ;;  %v7801_v5 = vld [vmem:[#allocation28_spill] sm:$0xff]  ;;  %v5726_v57 = vpack.c.bf16 %v526_v30, %v526_v30 }
 0x19a   : > { %v1047_v26 = vsel %vm5082_vm12, %v746_v31, %v1046_v11  ;;  %v5716_v33 = vadd.f32 %v2081_v63, %v1801_v52  ;;  %v2147_v45 = vld [vmem:[#allocation2 + $0x90] sm:$0xf]  ;;  %v5724_v17 = vadd.f32 %v7801_v5, %v7800_v58  ;;  %v1585_v43 = vshrl.u32 %v1168_v56, 16 }
 0x19b   : > { %1048 = vst [vmem:[#allocation2 + $0x24] sm:$0xf] %v1047_v26  ;;  %v5720_v53 = vadd.f32 %v3054_v12, %v2777_v27  ;;  %v1588_v7 = vshll.u32 %v1168_v56, 16  ;;  %v524_v11 = vmax.f32 %v5704_v0, 0.0  ;;  %v1200_v52 = vunpack.c.l.bf16 %v1168_v56  ;;  %v5729_v62 = vld [vmem:[#allocation2 + $0x90] sm:$0xe] }
 0x19c   : > { %7802 = vst [vmem:[#allocation6_spill] sm:$0xff] %v5724_v17  ;;  %v2179_v31 = vunpack.c.l.bf16 %v2147_v45  ;;  %v2539_v63 = vshrl.u32 %v2147_v45, 16  ;;  %v2542_v26 = vshll.u32 %v2147_v45, 16  ;;  %v3121_v47 = vld [vmem:[#allocation2 + $0x90] sm:$0xf]  ;;  %v1587_v23 = vrot.slane %v1585_v43, 4 }
 0x19d   : > { %v1590_v27 = vrot.slane %v1588_v7, 5  ;;  %v5731_v12 = vld [vmem:[#allocation2 + $0x90] sm:$0xe]  ;;  %v3153_v37 = vunpack.c.l.bf16 %v3121_v47  ;;  %v5733_v58 = vpack.c.bf16 %v542_v9, %v542_v9  ;;  %v3491_v30 = vshrl.u32 %v3121_v47, 16  ;;  %v7805_v56 = vld [vmem:[#allocation32_spill] sm:$0xff]  ;;  %v7812_v17 = vld [vmem:[#allocation31_spill] sm:$0xff] }
 0x19e   : > { %7803 = vst [vmem:[#allocation29_spill] sm:$0xff] %v5731_v12  ;;  %v2541_v5 = vrot.slane %v2539_v63, 4  ;;  %v2544_v19 = vrot.slane %v2542_v26, 5  ;;  %v5735_v48 = vld [vmem:[#allocation2 + $0x90] sm:$0xe]  ;;  %v2762_v0 = vadd.f32 %v7805_v56, %v5496_v15  ;;  %v3494_v45 = vshll.u32 %v3121_v47, 16 }
 0x19f   : > { %7804 = vst [vmem:[#allocation14_spill] sm:$0xff] %v5735_v48  ;;  %v1591_v54 = vor.u32 %v1590_v27, %v1587_v23  ;;  %v5742_v7 = vadd.f32 %v5674_v59, %v7806_v4  ;;  %v5745_v43 = vmul.f32 %v5536_v6, %v1200_v52  ;;  %v5750_v9 = vld [vmem:[%s7652_s3 + $0x3] ss:$0 sm:$0xff]  ;;  %v3493_v23 = vrot.slane %v3491_v30, 4  ;;  %v5759_v4 = vld [vmem:[%s7652_s3 + $0x6] ss:$0 sm:$0xff] }
 0x1a0   : > { %v5753_v63 = vmul.f32 %v5750_v9, %v2179_v31  ;;  %v2545_v26 = vor.u32 %v2544_v19, %v2541_v5  ;;  %v5762_v47 = vmul.f32 %v5759_v4, %v3153_v37  ;;  %v3496_v52 = vrot.slane %v3494_v45, 5  ;;  %v5769_v19 = vpop.f32.mrb[9].mxu1 }
 0x1a1   : > { %7807 = vst [vmem:[#allocation13_spill] sm:$0xff] %v5745_v43  ;;  %v5767_v30 = vrot.slane %v877_v20, 7  ;;  %7811 = vst [vmem:[#allocation10_spill] sm:$0xff] %v5769_v19  ;;  %v5771_v5 = vrot.slane %v1591_v54, 4  ;;  %v766_v45 = vshrl.u32 %v5726_v57, 16  ;;  %v4533_v20 = vpack.c.bf16 %v524_v11, %v524_v11 }
 0x1a2   : > { %7808 = vst [vmem:[#allocation36_spill] sm:$0xff] %v5753_v63  ;;  %7809 = vst [vmem:[#allocation27_spill] sm:$0xff] %v5762_v47  ;;  %v1150_v56 = vld [vmem:[#allocation2 + $0x24] sm:$0xf]  ;;  %v3497_v29 = vor.u32 %v3496_v52, %v3493_v23  ;;  %v5774_v50 = vrot.slane %v2545_v26, 4  ;;  %v5780_v19 = vadd.f32 %v7812_v17, %v2762_v0  ;;  %v905_v14 = vshll.u32 %v5733_v58, 16 }
 0x1a3   : > { %v5765_v49 = vld [vmem:[#allocation2 + $0x24] sm:$0xe]  ;;  %v1182_v31 = vunpack.c.l.bf16 %v1150_v56  ;;  %v1369_v18 = vshrl.u32 %v1150_v56, 16  ;;  %v1372_v42 = vshll.u32 %v1150_v56, 16  ;;  %v7814_v56 = vshll.u32 %v5697_v28, 16 }
 0x1a4   : > { %7810 = vst [vmem:[#allocation39_spill] sm:$0xff] %v5765_v49  ;;  %v2129_v15 = vld [vmem:[#allocation2 + $0x24] sm:$0xf]  ;;  %7813 = vst [vmem:[#allocation16_spill] sm:$0xff] %v5780_v19  ;;  %v5791_v49 = vrot.slane %v3497_v29, 4  ;;  %v769_v29 = vshll.u32 %v5726_v57, 16 }
 0x1a5   : > { %v2161_v63 = vunpack.c.l.bf16 %v2129_v15  ;;  %v2323_v43 = vshrl.u32 %v2129_v15, 16  ;;  %v3103_v37 = vld [vmem:[#allocation2 + $0x24] sm:$0xf]  ;;  %v1371_v27 = vrot.slane %v1369_v18, 4  ;;  %v1374_v47 = vrot.slane %v1372_v42, 5 }
 0x1a6   : > { %v2326_v36 = vshll.u32 %v2129_v15, 16  ;;  %v5777_v2 = vld [vmem:[#allocation2 + $0x24] sm:$0xe]  ;;  %v5783_v54 = vmul.f32 %v5536_v6, %v1182_v31  ;;  %v3275_v23 = vshrl.u32 %v3103_v37, 16  ;;  %v3278_v26 = vshll.u32 %v3103_v37, 16 }
 0x1a7   : > { %v1375_v48 = vor.u32 %v1374_v47, %v1371_v27  ;;  %v2198_v12 = vmul.f32 %v5750_v9, %v2161_v63  ;;  %v1102_v18 = vld [vmem:[#allocation2 + $0x84] sm:$0xf]  ;;  %v2325_v42 = vrot.slane %v2323_v43, 4  ;;  %v882_v11 = vor.u32 %v7814_v56, %v5767_v30  ;;  %v1057_v28 = vld [vmem:[#allocation2 + $0x38] sm:$0x1] }
 0x1a8   : > { %v2328_v15 = vrot.slane %v2326_v36, 5  ;;  %v5786_v52 = vld [vmem:[#allocation2 + $0x24] sm:$0xe]  ;;  %v3135_v0 = vunpack.c.l.bf16 %v3103_v37  ;;  %v3277_v31 = vrot.slane %v3275_v23, 4  ;;  %v3280_v63 = vrot.slane %v3278_v26, 5 }
 0x1a9   : > { %v5795_v47 = vadd.f32 %v2198_v12, %v5669_v16  ;;  %v1103_v36 = vsel %vm5082_vm12, %v882_v11, %v1102_v18  ;;  %v768_v43 = vrot.slane %v766_v45, 7  ;;  %v5799_v27 = vrot.slane %v1375_v48, 4  ;;  %v1113_v11 = vld [vmem:[#allocation2 + $0x98] sm:$0x1] }
 0x1aa   : > { %1104 = vst [vmem:[#allocation2 + $0x84] sm:$0xf] %v1103_v36  ;;  %v902_v56 = vshrl.u32 %v5733_v58, 16  ;;  %v2329_v37 = vor.u32 %v2328_v15, %v2325_v42  ;;  %v3281_v23 = vor.u32 %v3280_v63, %v3277_v31  ;;  %v749_v16 = vshrl.u32 %v4533_v20, 16  ;;  %v1050_v63 = vld [vmem:[#allocation2 + $0x2c] sm:$0x1] }
 0x1ab   : > { %v773_v17 = vrot.slane %v768_v43, 4  ;;  %v771_v12 = vor.u32 %v769_v29, %v768_v43  ;;  %v540_v45 = vmax.f32 %v5742_v7, 0.0  ;;  %v3172_v48 = vmul.f32 %v5759_v4, %v3135_v0 }
 0x1ac   : > { %v904_v26 = vrot.slane %v902_v56, 7  ;;  %v751_v57 = vrot.slane %v749_v16, 7  ;;  %v752_v36 = vshll.u32 %v4533_v20, 16  ;;  %v7815_v19 = vrot.slane %v5478_v35, 4 }
 0x1ad   : > { %v1058_v18 = vsel %vm5118_vm14, %v773_v17, %v1057_v28  ;;  %v5813_v58 = vpack.c.bf16 %v540_v45, %v540_v45  ;;  %v5815_v7 = vrot.slane %v2329_v37, 4  ;;  %v5820_v20 = vadd.f32 %v3172_v48, %v5708_v55 }
 0x1ae   : > { %v772_v42 = vsel %vm5111_vm13, %v7815_v19, %v771_v12  ;;  %1059 = vst [vmem:[#allocation2 + $0x38] sm:$0x1] %v1058_v18  ;;  %v907_v15 = vor.u32 %v905_v14, %v904_v26  ;;  %v909_v31 = vrot.slane %v904_v26, 4  ;;  %v754_v17 = vor.u32 %v752_v36, %v751_v57 }
 0x1af   : > { %1056 = vst.msk [vmem:[#allocation2 + $0x34] sm:$0xf] %vm567_vm1, %v772_v42  ;;  %v756_v43 = vrot.slane %v751_v57, 4  ;;  %v5822_v35 = vrot.slane %v3281_v23, 4  ;;  %v7816_v19 = vrot.slane %v5504_v8, 4  ;;  %v7817_v37 = vrot.slane %v5684_v1, 4 }
 0x1b0   : > { %v1114_v29 = vsel %vm5118_vm14, %v909_v31, %v1113_v11  ;;  %v7818_v8 = vld [vmem:[#allocation37_spill] sm:$0xff]  ;;  %v2778_v12 = vadd.f32 %v5422_v13, %v5610_v51  ;;  %v5847_v48 = vadd.f32 %v5674_v59, %v5568_v34 }
 0x1b1   : > { %v908_v14 = vsel %vm5111_vm13, %v7816_v19, %v907_v15  ;;  %v1166_v28 = vld [vmem:[#allocation2 + $0x84] sm:$0xf]  ;;  %1115 = vst [vmem:[#allocation2 + $0x98] sm:$0x1] %v1114_v29  ;;  %v755_v55 = vsel %vm5111_vm13, %v7817_v37, %v754_v17  ;;  %v1051_v23 = vsel %vm5118_vm14, %v756_v43, %v1050_v63  ;;  %v5839_v16 = vadd.f32 %v7818_v8, %v5411_v61  ;;  %v5854_v17 = vpop.f32.mrb[10].mxu0 }
 0x1b2   : > { %v2145_v56 = vld [vmem:[#allocation2 + $0x84] sm:$0xf]  ;;  %1112 = vst.msk [vmem:[#allocation2 + $0x94] sm:$0xf] %vm567_vm1, %v908_v14  ;;  %v1561_v26 = vshrl.u32 %v1166_v28, 16  ;;  %v1564_v45 = vshll.u32 %v1166_v28, 16  ;;  %v1198_v18 = vunpack.c.l.bf16 %v1166_v28  ;;  %v5857_v14 = vadd.f32 %v5414_v40, %v2778_v12 }
 0x1b3   : > { %7819 = vst [vmem:[#allocation33_spill] sm:$0xff] %v5839_v16  ;;  %1049 = vst.msk [vmem:[#allocation2 + $0x28] sm:$0xf] %vm567_vm1, %v755_v55  ;;  %v5849_v11 = vld [vmem:[#allocation2 + $0x84] sm:$0xe]  ;;  %v2177_v57 = vunpack.c.l.bf16 %v2145_v56  ;;  %v2515_v61 = vshrl.u32 %v2145_v56, 16 }
 0x1b4   : > { %1052 = vst [vmem:[#allocation2 + $0x2c] sm:$0x1] %v1051_v23  ;;  %v2518_v36 = vshll.u32 %v2145_v56, 16  ;;  %v3119_v42 = vld [vmem:[#allocation2 + $0x84] sm:$0xf]  ;;  %v1563_v15 = vrot.slane %v1561_v26, 4  ;;  %v5864_v23 = vadd.f32 %v5674_v59, %v5623_v22  ;;  %v5867_v8 = vmul.f32 %v5536_v6, %v1198_v18 }
 0x1b5   : > { %v1566_v13 = vrot.slane %v1564_v45, 5  ;;  %v5851_v51 = vld [vmem:[#allocation2 + $0x84] sm:$0xe]  ;;  %v3151_v31 = vunpack.c.l.bf16 %v3119_v42  ;;  %7821 = vst [vmem:[#allocation35_spill] sm:$0xff] %v5854_v17  ;;  %v2517_v43 = vrot.slane %v2515_v61, 4  ;;  %v3467_v34 = vshrl.u32 %v3119_v42, 16 }
 0x1b6   : > { %7820 = vst [vmem:[#allocation26_spill] sm:$0xff] %v5851_v51  ;;  %v2520_v19 = vrot.slane %v2518_v36, 5  ;;  %7822 = vst [vmem:[#allocation30_spill] sm:$0xff] %v5857_v14  ;;  %v3470_v56 = vshll.u32 %v3119_v42, 16  ;;  %v5860_v37 = vld [vmem:[#allocation2 + $0x84] sm:$0xe]  ;;  %v2214_v26 = vmul.f32 %v5750_v9, %v2177_v57 }
 0x1b7   : > { %v1567_v29 = vor.u32 %v1566_v13, %v1563_v15  ;;  %7823 = vst [vmem:[#allocation28_spill] sm:$0xff] %v5860_v37  ;;  %v1153_v55 = vld [vmem:[#allocation2 + $0x34] sm:$0xf]  ;;  %7824 = vst [vmem:[#allocation32_spill] sm:$0xff] %v5867_v8  ;;  %v3469_v40 = vrot.slane %v3467_v34, 4  ;;  %v3188_v36 = vmul.f32 %v5759_v4, %v3151_v31 }
 0x1b8   : > { %v1281_v12 = vld [vmem:[#allocation2 + $0x38] sm:$0x1]  ;;  %v2521_v61 = vor.u32 %v2520_v19, %v2517_v43  ;;  %v3472_v42 = vrot.slane %v3470_v56, 5  ;;  %v1402_v15 = vshll.u32 %v1153_v55, 16  ;;  %v2132_v13 = vld [vmem:[#allocation2 + $0x34] sm:$0xf]  ;;  %v5873_v28 = vadd.f32 %v2214_v26, %v5716_v33 }
 0x1b9   : > { %v1185_v0 = vunpack.c.l.bf16 %v1153_v55  ;;  %v1406_v18 = vshrl.u32 %v1153_v55, 16  ;;  %v5876_v63 = vrot.slane %v1567_v29, 4  ;;  %v1412_v1 = vshll.u32 %v1281_v12, 16  ;;  %v3122_v16 = vld [vmem:[#allocation2 + $0x94] sm:$0xf] }
 0x1ba   : > { %7825 = vst [vmem:[#allocation38_spill] sm:$0xff] %v5873_v28  ;;  %v1404_v57 = vrot.slane %v1402_v15, 5  ;;  %v1910_v45 = vrot.slane %v1153_v55, 5  ;;  %v5879_v34 = vadd.f32 %v3188_v36, %v5720_v53  ;;  %v3473_v43 = vor.u32 %v3472_v42, %v3469_v40  ;;  %v2261_v36 = vld [vmem:[#allocation2 + $0x38] sm:$0x1] }
 0x1bb   : > { %v1408_v31 = vrot.slane %v1406_v18, 4  ;;  %v2356_v19 = vshll.u32 %v2132_v13, 16  ;;  %v5881_v56 = vrot.slane %v2521_v61, 4  ;;  %v1913_v22 = vrot.slane %v1281_v12, 5 }
 0x1bc   : > { %7826 = vst [vmem:[#allocation31_spill] sm:$0xff] %v5879_v34  ;;  %v1405_v33 = vsel %vm5023_vm5, %v5656_v24, %v1404_v57  ;;  %v1912_v26 = vrot.slane %v1910_v45, 4  ;;  %v5887_v29 = vmul.f32 %v5536_v6, %v1185_v0  ;;  %v7827_v55 = vrot.slane %v5627_v38, 9 }
 0x1bd   : > { %v1409_v15 = vor.u32 %v1408_v31, %v1404_v57  ;;  %v2164_v40 = vunpack.c.l.bf16 %v2132_v13  ;;  %v1414_v61 = vrot.slane %v1412_v1, 5  ;;  %v2358_v18 = vrot.slane %v2356_v19, 5 }
 0x1be   : > { %v5893_v53 = vsel %vm5029_vm8, %v7827_v55, %v1910_v45  ;;  %v1914_v42 = vsel %vm5029_vm8, %v1912_v26, %v1913_v22  ;;  %v2360_v24 = vshrl.u32 %v2132_v13, 16  ;;  %v5897_v17 = vrot.slane %v3473_v43, 4  ;;  %v3106_v55 = vld [vmem:[#allocation2 + $0x34] sm:$0xf]  ;;  %v3236_v26 = vld [vmem:[#allocation2 + $0x38] sm:$0x1] }
 0x1bf   : > { %7828 = vst [vmem:[#allocation37_spill] sm:$0xff] %v5893_v53  ;;  %v1410_v12 = vrot.slane %v1409_v15, 4  ;;  %v1720_v0 = vunpack.c.l.bf16 %v1405_v33  ;;  %v2878_v34 = vrot.slane %v2132_v13, 5  ;;  %v2359_v38 = vsel %vm5023_vm5, %v5678_v39, %v2358_v18 }
 0x1c0   : > { %7829 = vst [vmem:[#allocation49_spill] sm:$0xff] %v5897_v17  ;;  %v2362_v45 = vrot.slane %v2360_v24, 4  ;;  %v2366_v31 = vshll.u32 %v2261_v36, 16  ;;  %v2033_v22 = vunpack.c.l.bf16 %v1914_v42  ;;  %v5906_v19 = vmul.f32 %v5750_v9, %v2164_v40 }
 0x1c1   : > { %v1415_v1 = vsel %vm5023_vm5, %v1410_v12, %v1414_v61  ;;  %v2881_v43 = vrot.slane %v2261_v36, 5  ;;  %v2696_v13 = vunpack.c.l.bf16 %v2359_v38  ;;  %v7830_v15 = vrot.slane %v5629_v21, 9  ;;  %v1169_v21 = vld [vmem:[#allocation2 + $0x94] sm:$0xf] }
 0x1c2   : > { %v2363_v33 = vor.u32 %v2362_v45, %v2358_v18  ;;  %v2880_v39 = vrot.slane %v2878_v34, 4  ;;  %v1721_v24 = vunpack.c.l.bf16 %v1415_v1  ;;  %v5915_v53 = vmul.f32 %v5553_v10, %v1720_v0 }
 0x1c3   : > { %v5912_v57 = vsel %vm5029_vm8, %v7830_v15, %v2878_v34  ;;  %v3308_v61 = vshll.u32 %v3106_v55, 16  ;;  %v3312_v42 = vshrl.u32 %v3106_v55, 16  ;;  %v2368_v40 = vrot.slane %v2366_v31, 5  ;;  %v5923_v34 = vpop.f32.mrb[10].mxu1  ;;  %v5930_v31 = vld [vmem:[%s7652_s3 + $0x4] ss:$0 sm:$0xff] }
 0x1c4   : > { %7831 = vst [vmem:[#allocation50_spill] sm:$0xff] %v5912_v57  ;;  %v2364_v12 = vrot.slane %v2363_v33, 4  ;;  %v2882_v36 = vsel %vm5029_vm8, %v2880_v39, %v2881_v43  ;;  %v3318_v18 = vshll.u32 %v3236_v26, 16  ;;  %v5920_v38 = vmul.f32 %v5542_v32, %v2033_v22  ;;  %7833 = vst [vmem:[#allocation52_spill] sm:$0xff] %v5923_v34 }
 0x1c5   : > { %v3310_v45 = vrot.slane %v3308_v61, 5  ;;  %v3314_v15 = vrot.slane %v3312_v42, 4  ;;  %v5933_v1 = vmul.f32 %v5930_v31, %v2696_v13  ;;  %v3138_v43 = vunpack.c.l.bf16 %v3106_v55 }
 0x1c6   : > { %7832 = vst [vmem:[#allocation51_spill] sm:$0xff] %v5920_v38  ;;  %v2369_v0 = vsel %vm5023_vm5, %v2364_v12, %v2368_v40  ;;  %v3847_v22 = vrot.slane %v3106_v55, 5  ;;  %v1758_v33 = vmul.f32 %v5553_v10, %v1721_v24  ;;  %v3006_v39 = vunpack.c.l.bf16 %v2882_v36  ;;  %v1289_v24 = vld [vmem:[#allocation2 + $0x98] sm:$0x1] }
 0x1c7   : > { %7834 = vst [vmem:[#allocation53_spill] sm:$0xff] %v5933_v1  ;;  %v3311_v61 = vsel %vm5023_vm5, %v5706_v44, %v3310_v45  ;;  %v3315_v42 = vor.u32 %v3314_v15, %v3310_v45  ;;  %v3320_v12 = vrot.slane %v3318_v18, 5  ;;  %v7835_v40 = vrot.slane %v5639_v25, 9 }
 0x1c8   : > { %v3849_v34 = vrot.slane %v3847_v22, 4  ;;  %v3850_v13 = vrot.slane %v3236_v26, 5  ;;  %v2697_v1 = vunpack.c.l.bf16 %v2369_v0  ;;  %v3670_v55 = vunpack.c.l.bf16 %v3311_v61 }
 0x1c9   : > { %v3848_v38 = vsel %vm5029_vm8, %v7835_v40, %v3847_v22  ;;  %v3316_v57 = vrot.slane %v3315_v42, 4  ;;  %v1201_v17 = vunpack.c.l.bf16 %v1169_v21  ;;  %v1594_v44 = vshll.u32 %v1169_v21, 16 }
 0x1ca   : > { %v3979_v37 = vunpack.c.l.bf16 %v3848_v38  ;;  %v3851_v36 = vsel %vm5029_vm8, %v3849_v34, %v3850_v13  ;;  %v1598_v45 = vshrl.u32 %v1169_v21, 16  ;;  %v5946_v18 = vadd.f32 %v1758_v33, %v5887_v29  ;;  %v5956_v38 = vld [vmem:[%s7652_s3 + $0x5] ss:$0 sm:$0xff]  ;;  %v2148_v29 = vld [vmem:[#allocation2 + $0x94] sm:$0xf] }
 0x1cb   : > { %v5949_v25 = vmul.f32 %v5759_v4, %v3138_v43  ;;  %v3321_v26 = vsel %vm5023_vm5, %v3316_v57, %v3320_v12  ;;  %v3980_v15 = vunpack.c.l.bf16 %v3851_v36  ;;  %v5959_v34 = vmul.f32 %v5956_v38, %v3006_v39  ;;  %v5967_v57 = vld [vmem:[%s7652_s3 + $0x7] ss:$0 sm:$0xff]  ;;  %v5975_v39 = vld [vmem:[%s7652_s3 + $0x8] ss:$0 sm:$0xff] }
 0x1cc   : > { %7836 = vst [vmem:[#allocation54_spill] sm:$0xff] %v5946_v18  ;;  %v1596_v0 = vrot.slane %v1594_v44, 5  ;;  %v1600_v22 = vrot.slane %v1598_v45, 4  ;;  %v1604_v61 = vshll.u32 %v1289_v24, 16  ;;  %v5962_v33 = vmul.f32 %v5930_v31, %v2697_v1  ;;  %v2269_v44 = vld [vmem:[#allocation2 + $0x98] sm:$0x1] }
 0x1cd   : > { %7837 = vst [vmem:[#allocation55_spill] sm:$0xff] %v5959_v34  ;;  %v3671_v43 = vunpack.c.l.bf16 %v3321_v26  ;;  %v5970_v42 = vmul.f32 %v5967_v57, %v3670_v55  ;;  %v1966_v12 = vrot.slane %v1169_v21, 5  ;;  %v5978_v40 = vmul.f32 %v5975_v39, %v3979_v37 }
 0x1ce   : > { %7838 = vst [vmem:[#allocation56_spill] sm:$0xff] %v5962_v33  ;;  %v5981_v1 = vmul.f32 %v5975_v39, %v3980_v15  ;;  %v1238_v13 = vmul.f32 %v5536_v6, %v1201_v17  ;;  %v1601_v36 = vor.u32 %v1600_v22, %v1596_v0  ;;  %v1597_v55 = vsel %vm5023_vm5, %v5771_v5, %v1596_v0 }
 0x1cf   : > { %v1968_v21 = vrot.slane %v1966_v12, 4  ;;  %v1969_v45 = vrot.slane %v1289_v24, 5  ;;  %v2180_v26 = vunpack.c.l.bf16 %v2148_v29  ;;  %v1606_v18 = vrot.slane %v1604_v61, 5 }
 0x1d0   : > { %v1602_v34 = vrot.slane %v1601_v36, 4  ;;  %v2548_v33 = vshll.u32 %v2148_v29, 16  ;;  %v2552_v14 = vshrl.u32 %v2148_v29, 16  ;;  %v5988_v37 = vmul.f32 %v5967_v57, %v3671_v43 }
 0x1d1   : > { %v1970_v15 = vsel %vm5029_vm8, %v1968_v21, %v1969_v45  ;;  %v2558_v17 = vshll.u32 %v2269_v44, 16  ;;  %v2934_v22 = vrot.slane %v2148_v29, 5  ;;  %v7839_v5 = vrot.slane %v5729_v62, 9  ;;  %v7841_v45 = vld [vmem:[#allocation29_spill] sm:$0xff] }
 0x1d2   : > { %v1607_v28 = vsel %vm5023_vm5, %v1602_v34, %v1606_v18  ;;  %v2550_v0 = vrot.slane %v2548_v33, 5  ;;  %v2554_v61 = vrot.slane %v2552_v14, 4  ;;  %v1736_v36 = vunpack.c.l.bf16 %v1597_v55 }
 0x1d3   : > { %v5998_v24 = vsel %vm5029_vm8, %v7839_v5, %v1966_v12  ;;  %v1737_v8 = vunpack.c.l.bf16 %v1607_v28  ;;  %v2049_v43 = vunpack.c.l.bf16 %v1970_v15  ;;  %v2936_v51 = vrot.slane %v2934_v22, 4  ;;  %v3244_v15 = vld [vmem:[#allocation2 + $0x98] sm:$0x1] }
 0x1d4   : > { %7840 = vst [vmem:[#allocation57_spill] sm:$0xff] %v5998_v24  ;;  %v2551_v29 = vsel %vm5023_vm5, %v5774_v50, %v2550_v0  ;;  %v2555_v21 = vor.u32 %v2554_v61, %v2550_v0  ;;  %v7842_v18 = vrot.slane %v7841_v45, 9  ;;  %v2937_v34 = vrot.slane %v2269_v44, 5  ;;  %v1151_v45 = vld [vmem:[#allocation2 + $0x28] sm:$0xf] }
 0x1d5   : > { %v1774_v33 = vmul.f32 %v5553_v10, %v1737_v8  ;;  %v6012_v28 = vmul.f32 %v5750_v9, %v2180_v26  ;;  %v2560_v12 = vrot.slane %v2558_v17, 5  ;;  %v3500_v5 = vshll.u32 %v3122_v16, 16  ;;  %v6023_v26 = vpop.f32.mrb[11].mxu0 }
 0x1d6   : > { %v6007_v62 = vsel %vm5029_vm8, %v7842_v18, %v2934_v22  ;;  %v2556_v55 = vrot.slane %v2555_v21, 4  ;;  %v2938_v50 = vsel %vm5029_vm8, %v2936_v51, %v2937_v34  ;;  %v3504_v0 = vshrl.u32 %v3122_v16, 16  ;;  %7847 = vst [vmem:[#allocation61_spill] sm:$0xff] %v6023_v26  ;;  %v7849_v26 = vld [vmem:[#allocation14_spill] sm:$0xff] }
 0x1d7   : > { %7843 = vst [vmem:[#allocation29_spill] sm:$0xff] %v6007_v62  ;;  %7844 = vst [vmem:[#allocation58_spill] sm:$0xff] %v6012_v28  ;;  %v6017_v61 = vmul.f32 %v5553_v10, %v1736_v36  ;;  %v6020_v44 = vmul.f32 %v5542_v32, %v2049_v43  ;;  %v2712_v8 = vunpack.c.l.bf16 %v2551_v29  ;;  %v3154_v21 = vunpack.c.l.bf16 %v3122_v16 }
 0x1d8   : > { %v2561_v17 = vsel %vm5023_vm5, %v2556_v55, %v2560_v12  ;;  %v3502_v51 = vrot.slane %v3500_v5, 5  ;;  %v3506_v18 = vrot.slane %v3504_v0, 4  ;;  %v6027_v34 = vadd.f32 %v1774_v33, %v1238_v13 }
 0x1d9   : > { %7845 = vst [vmem:[#allocation59_spill] sm:$0xff] %v6017_v61  ;;  %7846 = vst [vmem:[#allocation60_spill] sm:$0xff] %v6020_v44  ;;  %v3022_v14 = vunpack.c.l.bf16 %v2938_v50  ;;  %v3510_v36 = vshll.u32 %v3244_v15, 16  ;;  %v3903_v24 = vrot.slane %v3122_v16, 5  ;;  %v2713_v61 = vunpack.c.l.bf16 %v2561_v17  ;;  %v1280_v50 = vld [vmem:[#allocation2 + $0x2c] sm:$0x1] }
 0x1da   : > { %7848 = vst [vmem:[#allocation62_spill] sm:$0xff] %v6027_v34  ;;  %v3503_v43 = vsel %vm5023_vm5, %v5791_v49, %v3502_v51  ;;  %v3507_v29 = vor.u32 %v3506_v18, %v3502_v51  ;;  %v1183_v22 = vunpack.c.l.bf16 %v1151_v45  ;;  %v7850_v62 = vrot.slane %v7849_v26, 9 }
 0x1db   : > { %v3686_v44 = vunpack.c.l.bf16 %v3503_v43  ;;  %v3905_v55 = vrot.slane %v3903_v24, 4  ;;  %v3906_v5 = vrot.slane %v3244_v15, 5  ;;  %v6037_v13 = vmul.f32 %v5930_v31, %v2712_v8 }
 0x1dc   : > { %v3904_v12 = vsel %vm5029_vm8, %v7850_v62, %v3903_v24  ;;  %v6040_v16 = vmul.f32 %v5759_v4, %v3154_v21  ;;  %v3508_v33 = vrot.slane %v3507_v29, 4  ;;  %v1378_v0 = vshll.u32 %v1151_v45, 16  ;;  %v2130_v24 = vld [vmem:[#allocation2 + $0x28] sm:$0xf] }
 0x1dd   : > { %7851 = vst [vmem:[#allocation14_spill] sm:$0xff] %v6037_v13  ;;  %v6043_v49 = vmul.f32 %v5956_v38, %v3022_v14  ;;  %v6047_v26 = vsel %vm5029_vm8, %v3905_v55, %v3906_v5  ;;  %v3995_v17 = vunpack.c.l.bf16 %v3904_v12  ;;  %v1382_v62 = vshrl.u32 %v1151_v45, 16 }
 0x1de   : > { %v6050_v15 = vmul.f32 %v5930_v31, %v2713_v61  ;;  %v3512_v8 = vrot.slane %v3510_v36, 5  ;;  %v1220_v21 = vmul.f32 %v5536_v6, %v1183_v22  ;;  %v1380_v51 = vrot.slane %v1378_v0, 5  ;;  %v2260_v36 = vld [vmem:[#allocation2 + $0x2c] sm:$0x1]  ;;  %v7855_v0 = vld [vmem:[#allocation39_spill] sm:$0xff] }
 0x1df   : > { %7852 = vst [vmem:[#allocation63_spill] sm:$0xff] %v6043_v49  ;;  %v6054_v18 = vmul.f32 %v5967_v57, %v3686_v44  ;;  %v1384_v43 = vrot.slane %v1382_v62, 4  ;;  %v1388_v14 = vshll.u32 %v1280_v50, 16  ;;  %v1903_v29 = vrot.slane %v1151_v45, 5 }
 0x1e0   : > { %7853 = vst [vmem:[#allocation64_spill] sm:$0xff] %v6050_v15  ;;  %v3513_v55 = vsel %vm5023_vm5, %v3508_v33, %v3512_v8  ;;  %v1381_v61 = vsel %vm5023_vm5, %v5799_v27, %v1380_v51  ;;  %v2162_v5 = vunpack.c.l.bf16 %v2130_v24  ;;  %v6063_v6 = vmul.f32 %v5975_v39, %v3995_v17 }
 0x1e1   : > { %v1385_v22 = vor.u32 %v1384_v43, %v1380_v51  ;;  %v1718_v44 = vunpack.c.l.bf16 %v1381_v61  ;;  %v7856_v62 = vrot.slane %v7855_v0, 9  ;;  %v1905_v49 = vrot.slane %v1903_v29, 4  ;;  %v7857_v0 = vld [vmem:[#allocation6_spill] sm:$0xff] }
 0x1e2   : > { %7854 = vst [vmem:[#allocation65_spill] sm:$0xff] %v6063_v6  ;;  %v1906_v33 = vrot.slane %v1280_v50, 5  ;;  %v2332_v12 = vshll.u32 %v2130_v24, 16  ;;  %v1390_v34 = vrot.slane %v1388_v14, 5  ;;  %v2336_v13 = vshrl.u32 %v2130_v24, 16 }
 0x1e3   : > { %v1904_v45 = vsel %vm5029_vm8, %v7856_v62, %v1903_v29  ;;  %v1386_v15 = vrot.slane %v1385_v22, 4  ;;  %v2342_v27 = vshll.u32 %v2260_v36, 16  ;;  %v6069_v28 = vunpack.c.l.bf16 %v3513_v55 }
 0x1e4   : > { %v2030_v8 = vunpack.c.l.bf16 %v1904_v45  ;;  %v1907_v17 = vsel %vm5029_vm8, %v1905_v49, %v1906_v33  ;;  %v2199_v51 = vmul.f32 %v5750_v9, %v2162_v5  ;;  %v2334_v43 = vrot.slane %v2332_v12, 5  ;;  %v3104_v45 = vld [vmem:[#allocation2 + $0x28] sm:$0xf] }
 0x1e5   : > { %v1391_v61 = vsel %vm5023_vm5, %v1386_v15, %v1390_v34  ;;  %v1755_v29 = vmul.f32 %v5553_v10, %v1718_v44  ;;  %v2338_v22 = vrot.slane %v2336_v13, 4  ;;  %v2871_v49 = vrot.slane %v2130_v24, 5 }
 0x1e6   : > { %v6078_v50 = vmul.f32 %v5542_v32, %v2030_v8  ;;  %v1719_v14 = vunpack.c.l.bf16 %v1391_v61  ;;  %v2231_v62 = vadd.f32 %v2199_v51, %v7857_v0  ;;  %v2335_v55 = vsel %vm5023_vm5, %v5815_v7, %v2334_v43 }
 0x1e7   : > { %v2031_v5 = vunpack.c.l.bf16 %v1907_v17  ;;  %v2339_v12 = vor.u32 %v2338_v22, %v2334_v43  ;;  %v2344_v33 = vrot.slane %v2342_v27, 5  ;;  %v2694_v6 = vunpack.c.l.bf16 %v2335_v55  ;;  %v3235_v17 = vld [vmem:[#allocation2 + $0x2c] sm:$0x1] }
 0x1e8   : > { %v1756_v34 = vmul.f32 %v5553_v10, %v1719_v14  ;;  %v7858_v15 = vrot.slane %v5777_v2, 9  ;;  %v2873_v13 = vrot.slane %v2871_v49, 4  ;;  %v2874_v44 = vrot.slane %v2260_v36, 5 }
 0x1e9   : > { %v2340_v8 = vrot.slane %v2339_v12, 4  ;;  %v2731_v51 = vmul.f32 %v5930_v31, %v2694_v6  ;;  %v3136_v7 = vunpack.c.l.bf16 %v3104_v45  ;;  %v6091_v24 = vadd.f32 %v1755_v29, %v5783_v54  ;;  %v6102_v6 = vld [vmem:[%s7652_s3 + $0x2] ss:$0 sm:$0xff] }
 0x1ea   : > { %v2872_v32 = vsel %vm5029_vm8, %v7858_v15, %v2871_v49  ;;  %v2875_v27 = vsel %vm5029_vm8, %v2873_v13, %v2874_v44  ;;  %v3284_v10 = vshll.u32 %v3104_v45, 16  ;;  %v3288_v43 = vshrl.u32 %v3104_v45, 16  ;;  %v7859_v44 = vld [vmem:[#allocation16_spill] sm:$0xff] }
 0x1eb   : > { %v3003_v61 = vunpack.c.l.bf16 %v2872_v32  ;;  %v2345_v2 = vsel %vm5023_vm5, %v2340_v8, %v2344_v33  ;;  %v2763_v22 = vadd.f32 %v2731_v51, %v5795_v47  ;;  %v3004_v36 = vunpack.c.l.bf16 %v2875_v27  ;;  %v6106_v32 = vpop.f32.mrb[11].mxu1  ;;  %v7860_v51 = vld [vmem:[#allocation47_spill] sm:$0xff] }
 0x1ec   : > { %v2068_v54 = vmul.f32 %v6102_v6, %v2031_v5  ;;  %v2695_v29 = vunpack.c.l.bf16 %v2345_v2  ;;  %v3173_v0 = vmul.f32 %v5759_v4, %v3136_v7  ;;  %v3286_v55 = vrot.slane %v3284_v10, 5 }
 0x1ed   : > { %v3040_v14 = vmul.f32 %v5956_v38, %v3003_v61  ;;  %v1788_v49 = vadd.f32 %v1756_v34, %v1220_v21  ;;  %v3290_v15 = vrot.slane %v3288_v43, 4  ;;  %v3294_v33 = vshll.u32 %v3235_v17, 16 }
 0x1ee   : > { %v2732_v47 = vmul.f32 %v5930_v31, %v2695_v29  ;;  %v3041_v13 = vmul.f32 %v5956_v38, %v3004_v36  ;;  %v3205_v8 = vadd.f32 %v3173_v0, %v7859_v44  ;;  %v3287_v5 = vsel %vm5023_vm5, %v5822_v35, %v3286_v55 }
 0x1ef   : > { %v3072_v12 = vadd.f32 %v3040_v14, %v2763_v22  ;;  %v3291_v7 = vor.u32 %v3290_v15, %v3286_v55  ;;  %v3296_v27 = vrot.slane %v3294_v33, 5  ;;  %v3668_v21 = vunpack.c.l.bf16 %v3287_v5  ;;  %v1106_v5 = vld [vmem:[#allocation2 + $0x8c] sm:$0x1] }
 0x1f0   : > { %v2764_v34 = vadd.f32 %v2732_v47, %v2231_v62  ;;  %v3840_v10 = vrot.slane %v3104_v45, 5  ;;  %v3843_v43 = vrot.slane %v3235_v17, 5  ;;  %v7861_v2 = vshrl.u32 %v5813_v58, 16 }
 0x1f1   : > { %v3206_v61 = vadd.f32 %v7860_v51, %v3072_v12  ;;  %v3292_v14 = vrot.slane %v3291_v7, 4  ;;  %v3705_v36 = vmul.f32 %v5967_v57, %v3668_v21  ;;  %v529_v0 = vmax.f32 %v5847_v48, 0.0 }
 0x1f2   : > { %v887_v22 = vrot.slane %v7861_v2, 7  ;;  %v3073_v44 = vadd.f32 %v3041_v13, %v2764_v34  ;;  %v7862_v35 = vrot.slane %v5786_v52, 9  ;;  %v3842_v12 = vrot.slane %v3840_v10, 4 }
 0x1f3   : > { %v3739_v29 = vadd.f32 %v5970_v42, %v3206_v61  ;;  %v7863_v62 = vshll.u32 %v5813_v58, 16  ;;  %v3297_v17 = vsel %vm5023_vm5, %v3292_v14, %v3296_v27  ;;  %v3737_v15 = vadd.f32 %v3705_v36, %v5820_v20  ;;  %v6141_v20 = vld [vmem:[%s7653_s4] ss:$0 sm:$0xff] }
 0x1f4   : > { %v3841_v55 = vsel %vm5029_vm8, %v7862_v35, %v3840_v10  ;;  %v3207_v48 = vadd.f32 %v5949_v25, %v3073_v44  ;;  %v3669_v47 = vunpack.c.l.bf16 %v3297_v17  ;;  %v3844_v52 = vsel %vm5029_vm8, %v3842_v12, %v3843_v43 }
 0x1f5   : > { %v890_v45 = vor.u32 %v7863_v62, %v887_v22  ;;  %v3977_v33 = vunpack.c.l.bf16 %v3841_v55  ;;  %v4048_v42 = vadd.f32 %v5978_v40, %v3739_v29  ;;  %v7864_v13 = vrot.slane %v5767_v30, 4  ;;  %v7866_v62 = vld [vmem:[#allocation48_spill] sm:$0xff] }
 0x1f6   : > { %v3978_v51 = vunpack.c.l.bf16 %v3844_v52  ;;  %v892_v40 = vrot.slane %v887_v22, 4  ;;  %v3706_v7 = vmul.f32 %v5967_v57, %v3669_v47  ;;  %v3740_v30 = vadd.f32 %v5988_v37, %v3207_v48 }
 0x1f7   : > { %v891_v58 = vsel %vm5111_vm13, %v7864_v13, %v890_v45  ;;  %v4014_v61 = vmul.f32 %v5975_v39, %v3977_v33  ;;  %v4087_v25 = vadd.f32 %v6141_v20, %v4048_v42  ;;  %v4538_v27 = vpack.c.bf16 %v529_v0, %v529_v0 }
 0x1f8   : > { %1105 = vst.msk [vmem:[#allocation2 + $0x88] sm:$0xf] %vm567_vm1, %v891_v58  ;;  %v545_v21 = vmax.f32 %v5864_v23, 0.0  ;;  %v2100_v34 = vadd.f32 %v2068_v54, %v1788_v49  ;;  %v1107_v2 = vsel %vm5118_vm14, %v892_v40, %v1106_v5  ;;  %v3738_v14 = vadd.f32 %v3706_v7, %v3205_v8 }
 0x1f9   : > { %v4046_v10 = vadd.f32 %v4014_v61, %v3737_v15  ;;  %v4119_v43 = vmax.f32 %v4087_v25, 0.0  ;;  %v4015_v36 = vmul.f32 %v5975_v39, %v3978_v51  ;;  %v4049_v22 = vadd.f32 %v5981_v1, %v3740_v30  ;;  %1108 = vst [vmem:[#allocation2 + $0x8c] sm:$0x1] %v1107_v2  ;;  %v7867_v15 = vld [vmem:[#allocation12_spill] sm:$0xff] }
 0x1fa   : > { %v792_v29 = vshrl.u32 %v4538_v27, 16  ;;  %v7865_v44 = vunpack.c.l.bf16 %v6047_v26  ;;  %v6158_v49 = vpack.c.bf16 %v545_v21, %v545_v21  ;;  %v6162_v0 = vmul.f32 %v5967_v57, %v6069_v28 }
 0x1fb   : > { %v4085_v23 = vadd.f32 %v6141_v20, %v4046_v10  ;;  %v4564_v54 = vpack.c.bf16 %v4119_v43, %v4119_v43  ;;  %v6166_v8 = vadd.f32 %v6078_v50, %v6091_v24  ;;  %v4047_v1 = vadd.f32 %v4015_v36, %v3738_v14  ;;  %v6205_v36 = vld [vmem:[%s7652_s3] ss:$0 sm:$0xff] }
 0x1fc   : > { %v6155_v37 = vmul.f32 %v5975_v39, %v7865_v44  ;;  %v4088_v35 = vadd.f32 %v6141_v20, %v4049_v22  ;;  %v6170_v26 = vadd.f32 %v5906_v19, %v2100_v34  ;;  %v795_v12 = vshll.u32 %v4538_v27, 16 }
 0x1fd   : > { %v4117_v55 = vmax.f32 %v4085_v23, 0.0  ;;  %4279 = vst.msk [vmem:[%s5559_s28 + $0x10] sm:$0xf] %vm567_vm1, %v4564_v54  ;;  %v6176_v45 = vadd.f32 %v5674_v59, %v7866_v62  ;;  %v4086_v28 = vadd.f32 %v6141_v20, %v4047_v1  ;;  %v6179_v24 = vrot.slane %v792_v29, 7  ;;  %v6219_v62 = vld [vmem:[%s7652_s3 + $0x1] ss:$0 sm:$0xff] }
 0x1fe   : > { %v4120_v17 = vmax.f32 %v4088_v35, 0.0  ;;  %v6183_v33 = vadd.f32 %v5915_v53, %v7867_v15  ;;  %v928_v52 = vshrl.u32 %v6158_v49, 16  ;;  %v931_v53 = vshll.u32 %v6158_v49, 16 }
 0x1ff   : > { %v1167_v50 = vld [vmem:[#allocation2 + $0x88] sm:$0xf]  ;;  %v4562_v19 = vpack.c.bf16 %v4117_v55, %v4117_v55  ;;  %v4118_v13 = vmax.f32 %v4086_v28, 0.0  ;;  %v527_v40 = vmax.f32 %v6176_v45, 0.0  ;;  %v6198_v14 = vor.u32 %v795_v12, %v6179_v24 }
 0x200   : > { %v1570_v42 = vshll.u32 %v1167_v50, 16  ;;  %v1574_v48 = vshrl.u32 %v1167_v50, 16  ;;  %v2146_v47 = vld [vmem:[#allocation2 + $0x88] sm:$0xf]  ;;  %v4565_v59 = vpack.c.bf16 %v4120_v17, %v4120_v17  ;;  %v1199_v58 = vunpack.c.l.bf16 %v1167_v50  ;;  %v1288_v51 = vld [vmem:[#allocation2 + $0x8c] sm:$0x1] }
 0x201   : > { %v1959_v5 = vrot.slane %v1167_v50, 5  ;;  %4277 = vst.msk [vmem:[%s5559_s28 + $0x8] sm:$0xf] %vm567_vm1, %v4562_v19  ;;  %v4563_v7 = vpack.c.bf16 %v4118_v13, %v4118_v13  ;;  %v1580_v30 = vshll.u32 %v1288_v51, 16  ;;  %v2178_v21 = vunpack.c.l.bf16 %v2146_v47  ;;  %v6195_v2 = vld [vmem:[#allocation2 + $0x88] sm:$0xf] }
 0x202   : > { %v1572_v61 = vrot.slane %v1570_v42, 5  ;;  %v1576_v25 = vrot.slane %v1574_v48, 4  ;;  %4280 = vst.msk [vmem:[%s5559_s28 + $0x14] sm:$0xf] %vm567_vm1, %v4565_v59  ;;  %v1962_v43 = vrot.slane %v1288_v51, 5  ;;  %v1236_v22 = vmul.f32 %v6205_v36, %v1199_v58  ;;  %v7869_v51 = vld [vmem:[#allocation33_spill] sm:$0xff] }
 0x203   : > { %v1961_v27 = vrot.slane %v1959_v5, 4  ;;  %4278 = vst.msk [vmem:[%s5559_s28 + $0xc] sm:$0xf] %vm567_vm1, %v4563_v7  ;;  %v7868_v44 = vrot.slane %v5849_v11, 9  ;;  %v2268_v23 = vld [vmem:[#allocation2 + $0x8c] sm:$0x1]  ;;  %v2215_v11 = vmul.f32 %v5750_v9, %v2178_v21  ;;  %v3152_v50 = vunpack.c.l.bf16 %v6195_v2 }
 0x204   : > { %v1573_v34 = vsel %vm5023_vm5, %v5876_v63, %v1572_v61  ;;  %v1577_v10 = vor.u32 %v1576_v25, %v1572_v61  ;;  %v2524_v54 = vshll.u32 %v2146_v47, 16  ;;  %v1582_v35 = vrot.slane %v1580_v30, 5  ;;  %v7870_v7 = vld [vmem:[#allocation26_spill] sm:$0xff] }
 0x205   : > { %v1734_v29 = vunpack.c.l.bf16 %v1573_v34  ;;  %v6212_v63 = vsel %vm5029_vm8, %v7868_v44, %v1959_v5  ;;  %v1963_v55 = vsel %vm5029_vm8, %v1961_v27, %v1962_v43  ;;  %v2528_v12 = vshrl.u32 %v2146_v47, 16 }
 0x206   : > { %v1578_v1 = vrot.slane %v1577_v10, 4  ;;  %v2526_v17 = vrot.slane %v2524_v54, 5  ;;  %v2534_v42 = vshll.u32 %v2268_v23, 16  ;;  %v2927_v48 = vrot.slane %v2146_v47, 5  ;;  %v7872_v47 = vld [vmem:[#allocation32_spill] sm:$0xff] }
 0x207   : > { %v1771_v28 = vmul.f32 %v6219_v62, %v1734_v29  ;;  %v2530_v19 = vrot.slane %v2528_v12, 4  ;;  %v2046_v59 = vunpack.c.l.bf16 %v6212_v63  ;;  %v2047_v58 = vunpack.c.l.bf16 %v1963_v55  ;;  %v3243_v55 = vld [vmem:[#allocation2 + $0x8c] sm:$0x1] }
 0x208   : > { %v1583_v15 = vsel %vm5023_vm5, %v1578_v1, %v1582_v35  ;;  %v2527_v5 = vsel %vm5023_vm5, %v5881_v56, %v2526_v17  ;;  %v2247_v61 = vadd.f32 %v2215_v11, %v7869_v51  ;;  %v7871_v30 = vrot.slane %v7870_v7, 9  ;;  %v6250_v51 = vpop.f32.mrb[12].mxu0 }
 0x209   : > { %v1735_v13 = vunpack.c.l.bf16 %v1583_v15  ;;  %v2531_v9 = vor.u32 %v2530_v19, %v2526_v17  ;;  %v2710_v25 = vunpack.c.l.bf16 %v2527_v5  ;;  %v6237_v34 = vadd.f32 %v1771_v28, %v7872_v47  ;;  %v7873_v17 = vld [vmem:[#allocation38_spill] sm:$0xff]  ;;  %v7875_v47 = vld [vmem:[#allocation49_spill] sm:$0xff] }
 0x20a   : > { %v2928_v27 = vsel %vm5029_vm8, %v7871_v30, %v2927_v48  ;;  %v2929_v10 = vrot.slane %v2927_v48, 4  ;;  %v2930_v43 = vrot.slane %v2268_v23, 5  ;;  %v2536_v44 = vrot.slane %v2534_v42, 5 }
 0x20b   : > { %v1772_v21 = vmul.f32 %v6219_v62, %v1735_v13  ;;  %v2532_v29 = vrot.slane %v2531_v9, 4  ;;  %v2747_v56 = vmul.f32 %v5930_v31, %v2710_v25  ;;  %v3019_v54 = vunpack.c.l.bf16 %v2928_v27 }
 0x20c   : > { %v2931_v1 = vsel %vm5029_vm8, %v2929_v10, %v2930_v43  ;;  %v3189_v35 = vmul.f32 %v5759_v4, %v3152_v50  ;;  %v3476_v12 = vshll.u32 %v6195_v2, 16  ;;  %v3480_v11 = vshrl.u32 %v6195_v2, 16  ;;  %v7874_v50 = vld [vmem:[#allocation30_spill] sm:$0xff] }
 0x20d   : > { %v2537_v28 = vsel %vm5023_vm5, %v2532_v29, %v2536_v44  ;;  %v2779_v23 = vadd.f32 %v2747_v56, %v7873_v17  ;;  %v3020_v15 = vunpack.c.l.bf16 %v2931_v1  ;;  %v3056_v19 = vmul.f32 %v5956_v38, %v3019_v54  ;;  %v1067_v56 = vld [vmem:[#allocation2 + $0x48] sm:$0xf] }
 0x20e   : > { %v1804_v42 = vadd.f32 %v1772_v21, %v1236_v22  ;;  %v2084_v48 = vmul.f32 %v6102_v6, %v2047_v58  ;;  %v2711_v13 = vunpack.c.l.bf16 %v2537_v28  ;;  %v3478_v5 = vrot.slane %v3476_v12, 5  ;;  %v7876_v58 = vld [vmem:[#allocation27_spill] sm:$0xff]  ;;  %v7877_v1 = vld [vmem:[#allocation28_spill] sm:$0xff] }
 0x20f   : > { %v3088_v4 = vadd.f32 %v3056_v19, %v2779_v23  ;;  %v3221_v9 = vadd.f32 %v3189_v35, %v7874_v50  ;;  %v3482_v25 = vrot.slane %v3480_v11, 4  ;;  %v3486_v7 = vshll.u32 %v3243_v55, 16 }
 0x210   : > { %v2748_v30 = vmul.f32 %v5930_v31, %v2711_v13  ;;  %v3057_v27 = vmul.f32 %v5956_v38, %v3020_v15  ;;  %v3479_v10 = vsel %vm5023_vm5, %v7875_v47, %v3478_v5  ;;  %v3896_v22 = vrot.slane %v6195_v2, 5  ;;  %v7881_v47 = vld [vmem:[#allocation65_spill] sm:$0xff] }
 0x211   : > { %v3222_v21 = vadd.f32 %v7876_v58, %v3088_v4  ;;  %v3483_v43 = vor.u32 %v3482_v25, %v3478_v5  ;;  %v3488_v29 = vrot.slane %v3486_v7, 5  ;;  %v3684_v44 = vunpack.c.l.bf16 %v3479_v10  ;;  %v7880_v4 = vld [vmem:[#allocation31_spill] sm:$0xff]  ;;  %v1123_v7 = vld [vmem:[#allocation2 + $0xa8] sm:$0xf] }
 0x212   : > { %v2780_v54 = vadd.f32 %v2748_v30, %v2247_v61  ;;  %v7878_v35 = vrot.slane %v7877_v1, 9  ;;  %v3898_v12 = vrot.slane %v3896_v22, 4  ;;  %v3899_v11 = vrot.slane %v3243_v55, 5 }
 0x213   : > { %v3484_v28 = vrot.slane %v3483_v43, 4  ;;  %v3721_v17 = vmul.f32 %v5967_v57, %v3684_v44  ;;  %v3755_v23 = vadd.f32 %v6054_v18, %v3222_v21  ;;  %v1068_v61 = vsel %vm5082_vm12, %v6198_v14, %v1067_v56 }
 0x214   : > { %v3897_v31 = vsel %vm5029_vm8, %v7878_v35, %v3896_v22  ;;  %v3089_v15 = vadd.f32 %v3057_v27, %v2780_v54  ;;  %v3900_v19 = vsel %vm5029_vm8, %v3898_v12, %v3899_v11  ;;  %v6273_v5 = vrot.slane %v928_v52, 7  ;;  %1069 = vst [vmem:[#allocation2 + $0x48] sm:$0xf] %v1068_v61 }
 0x215   : > { %v3993_v2 = vunpack.c.l.bf16 %v3897_v31  ;;  %v3489_v55 = vsel %vm5023_vm5, %v3484_v28, %v3488_v29  ;;  %v3753_v50 = vadd.f32 %v3721_v17, %v7880_v4  ;;  %v3994_v25 = vunpack.c.l.bf16 %v3900_v19 }
 0x216   : > { %v3223_v30 = vadd.f32 %v6040_v16, %v3089_v15  ;;  %v3685_v27 = vunpack.c.l.bf16 %v3489_v55  ;;  %v4064_v10 = vadd.f32 %v7881_v47, %v3755_v23  ;;  %v933_v52 = vor.u32 %v931_v53, %v6273_v5 }
 0x217   : > { %v4030_v18 = vmul.f32 %v5975_v39, %v3993_v2  ;;  %v2083_v14 = vmul.f32 %v6102_v6, %v2046_v59  ;;  %v2116_v22 = vadd.f32 %v2084_v48, %v1804_v42  ;;  %v6290_v21 = vpack.c.bf16 %v527_v40, %v527_v40  ;;  %v7882_v48 = vld [vmem:[#allocation58_spill] sm:$0xff] }
 0x218   : > { %v3722_v16 = vmul.f32 %v5967_v57, %v3685_v27  ;;  %v3756_v43 = vadd.f32 %v6162_v0, %v3223_v30  ;;  %v4103_v29 = vadd.f32 %v6141_v20, %v4064_v10  ;;  %v1124_v49 = vsel %vm5082_vm12, %v933_v52, %v1123_v7  ;;  %v7885_v2 = vld [vmem:[#allocation46_spill] sm:$0xff]  ;;  %v6323_v27 = vpop.f32.mrb[12].mxu1 }
 0x219   : > { %v4062_v58 = vadd.f32 %v4030_v18, %v3753_v50  ;;  %v6298_v53 = vadd.f32 %v2083_v14, %v6237_v34  ;;  %v4031_v63 = vmul.f32 %v5975_v39, %v3994_v25  ;;  %1125 = vst [vmem:[#allocation2 + $0xa8] sm:$0xf] %v1124_v49  ;;  %v775_v0 = vshrl.u32 %v6290_v21, 16  ;;  %v7901_v34 = vld [vmem:[#allocation57_spill] sm:$0xff] }
 0x21a   : > { %v3754_v40 = vadd.f32 %v3722_v16, %v3221_v9  ;;  %v4065_v57 = vadd.f32 %v6155_v37, %v3756_v43  ;;  %v4135_v42 = vmax.f32 %v4103_v29, 0.0  ;;  %v6306_v44 = vadd.f32 %v7882_v48, %v2116_v22  ;;  %v7883_v37 = vld [vmem:[#allocation37_spill] sm:$0xff]  ;;  %v7886_v43 = vld [vmem:[#allocation50_spill] sm:$0xff]  ;;  %v6346_v48 = vld [vmem:[%s7652_s3 + $0x3] ss:$0 sm:$0xff] }
 0x21b   : > { %v4101_v59 = vadd.f32 %v6141_v20, %v4062_v58  ;;  %v778_v39 = vshll.u32 %v6290_v21, 16  ;;  %v1156_v9 = vld [vmem:[#allocation2 + $0x48] sm:$0xf]  ;;  %v7884_v12 = vunpack.c.l.bf16 %v7883_v37  ;;  %v2232_v15 = vadd.f32 %v7885_v2, %v6166_v8  ;;  %v6366_v2 = vld [vmem:[%s7652_s3 + $0x6] ss:$0 sm:$0xff] }
 0x21c   : > { %v4063_v54 = vadd.f32 %v4031_v63, %v3754_v40  ;;  %v4104_v1 = vadd.f32 %v6141_v20, %v4065_v57  ;;  %v4580_v35 = vpack.c.bf16 %v4135_v42, %v4135_v42  ;;  %v2135_v31 = vld [vmem:[#allocation2 + $0x48] sm:$0xf]  ;;  %v1441_v17 = vshrl.u32 %v1156_v9, 16  ;;  %v6405_v21 = vld [vmem:[%s7651_s2] ss:$0 sm:$0xff] }
 0x21d   : > { %v4133_v56 = vmax.f32 %v4101_v59, 0.0  ;;  %v2069_v11 = vmul.f32 %v6102_v6, %v7884_v12  ;;  %v1444_v23 = vshll.u32 %v1156_v9, 16  ;;  %v1188_v55 = vunpack.c.l.bf16 %v1156_v9  ;;  %v3109_v4 = vld [vmem:[#allocation2 + $0x48] sm:$0xf] }
 0x21e   : > { %v4102_v19 = vadd.f32 %v6141_v20, %v4063_v54  ;;  %v4136_v61 = vmax.f32 %v4104_v1, 0.0  ;;  %4295 = vst.msk [vmem:[%s5559_s28 + $0x50] sm:$0xf] %vm567_vm1, %v4580_v35  ;;  %v6319_v50 = vrot.slane %v775_v0, 7  ;;  %v1443_v25 = vrot.slane %v1441_v17, 4  ;;  %v7890_v35 = vld [vmem:[#allocation53_spill] sm:$0xff] }
 0x21f   : > { %v4578_v28 = vpack.c.bf16 %v4133_v56, %v4133_v56  ;;  %v1446_v18 = vrot.slane %v1444_v23, 5  ;;  %v2167_v7 = vunpack.c.l.bf16 %v2135_v31  ;;  %v2395_v30 = vshrl.u32 %v2135_v31, 16  ;;  %v6325_v10 = vld [vmem:[#allocation2 + $0x48] sm:$0xe] }
 0x220   : > { %v4134_v47 = vmax.f32 %v4102_v19, 0.0  ;;  %v4581_v8 = vpack.c.bf16 %v4136_v61, %v4136_v61  ;;  %v2398_v20 = vshll.u32 %v2135_v31, 16  ;;  %v6328_v52 = vadd.f32 %v2069_v11, %v6183_v33  ;;  %v1172_v16 = vld [vmem:[#allocation2 + $0xa8] sm:$0xf] }
 0x221   : > { %4293 = vst.msk [vmem:[%s5559_s28 + $0x48] sm:$0xf] %vm567_vm1, %v4578_v28  ;;  %v1447_v14 = vor.u32 %v1446_v18, %v1443_v25  ;;  %v2397_v22 = vrot.slane %v2395_v30, 4  ;;  %v3141_v58 = vunpack.c.l.bf16 %v3109_v4  ;;  %v7887_v29 = vunpack.c.l.bf16 %v7886_v43  ;;  %v6337_v40 = vld [vmem:[#allocation2 + $0x48] sm:$0xe] }
 0x222   : > { %v4579_v63 = vpack.c.bf16 %v4134_v47, %v4134_v47  ;;  %4296 = vst.msk [vmem:[%s5559_s28 + $0x54] sm:$0xf] %vm567_vm1, %v4581_v8  ;;  %v2400_v59 = vrot.slane %v2398_v20, 5  ;;  %v3347_v57 = vshrl.u32 %v3109_v4, 16  ;;  %v3350_v42 = vshll.u32 %v3109_v4, 16  ;;  %v7900_v0 = vld [vmem:[#allocation52_spill] sm:$0xff] }
 0x223   : > { %v6333_v49 = vmul.f32 %v5956_v38, %v7887_v29  ;;  %v6340_v33 = vmul.f32 %v6205_v36, %v1188_v55  ;;  %v6349_v56 = vmul.f32 %v6346_v48, %v2167_v7  ;;  %v6351_v54 = vld [vmem:[#allocation2 + $0x48] sm:$0xe]  ;;  %v6354_v9 = vadd.f32 %v7890_v35, %v2232_v15  ;;  %v6371_v55 = vpop.f32.mrb[13].mxu0  ;;  %v1060_v35 = vld [vmem:[#allocation2 + $0x3c] sm:$0xf] }
 0x224   : > { %v2151_v1 = vld [vmem:[#allocation2 + $0xa8] sm:$0xf]  ;;  %4294 = vst.msk [vmem:[%s5559_s28 + $0x4c] sm:$0xf] %vm567_vm1, %v4579_v63  ;;  %v3349_v31 = vrot.slane %v3347_v57, 4  ;;  %v3352_v37 = vrot.slane %v3350_v42, 5  ;;  %v1204_v12 = vunpack.c.l.bf16 %v1172_v16  ;;  %v6369_v15 = vmul.f32 %v6366_v2, %v3141_v58 }
 0x225   : > { %7888 = vst [vmem:[#allocation39_spill] sm:$0xff] %v6340_v33  ;;  %7889 = vst [vmem:[#allocation6_spill] sm:$0xff] %v6349_v56  ;;  %v1633_v11 = vshrl.u32 %v1172_v16, 16  ;;  %v6358_v28 = vld [vmem:[#allocation2 + $0xa8] sm:$0xe]  ;;  %v6360_v17 = vrot.slane %v1447_v14, 4  ;;  %v2401_v4 = vor.u32 %v2400_v59, %v2397_v22  ;;  %v2183_v18 = vunpack.c.l.bf16 %v2151_v1 }
 0x226   : > { %7891 = vst [vmem:[#allocation16_spill] sm:$0xff] %v6369_v15  ;;  %v1636_v19 = vshll.u32 %v1172_v16, 16  ;;  %v3125_v61 = vld [vmem:[#allocation2 + $0xa8] sm:$0xf]  ;;  %v2587_v7 = vshrl.u32 %v2151_v1, 16  ;;  %v3353_v30 = vor.u32 %v3352_v37, %v3349_v31  ;;  %v2590_v20 = vshll.u32 %v2151_v1, 16 }
 0x227   : > { %v1635_v25 = vrot.slane %v1633_v11, 4  ;;  %v6375_v14 = vmul.f32 %v6205_v36, %v1204_v12  ;;  %v6378_v58 = vld [vmem:[#allocation2 + $0xa8] sm:$0xe]  ;;  %v3157_v16 = vunpack.c.l.bf16 %v3125_v61  ;;  %v3539_v29 = vshrl.u32 %v3125_v61, 16 }
 0x228   : > { %v1638_v8 = vrot.slane %v1636_v19, 5  ;;  %v6380_v63 = vld [vmem:[#allocation2 + $0xa8] sm:$0xe]  ;;  %v2589_v59 = vrot.slane %v2587_v7, 4  ;;  %v2592_v57 = vrot.slane %v2590_v20, 5  ;;  %v3542_v42 = vshll.u32 %v3125_v61, 16 }
 0x229   : > { %7892 = vst [vmem:[#allocation47_spill] sm:$0xff] %v6375_v14  ;;  %v6382_v31 = vrot.slane %v2401_v4, 4  ;;  %v6385_v1 = vmul.f32 %v6346_v48, %v2183_v18  ;;  %v3541_v37 = vrot.slane %v3539_v29, 4  ;;  %v780_v12 = vor.u32 %v778_v39, %v6319_v50  ;;  %v6394_v7 = vpop.f32.mrb[13].mxu1  ;;  %v7895_v39 = vld [vmem:[#allocation10_spill] sm:$0xff]  ;;  %v7896_v29 = vld [vmem:[#allocation13_spill] sm:$0xff] }
 0x22a   : > { %v1639_v22 = vor.u32 %v1638_v8, %v1635_v25  ;;  %v6390_v11 = vrot.slane %v3353_v30, 4  ;;  %v3544_v43 = vrot.slane %v3542_v42, 5  ;;  %v6397_v61 = vmul.f32 %v6366_v2, %v3157_v16  ;;  %v7897_v16 = vld [vmem:[#allocation59_spill] sm:$0xff]  ;;  %v7898_v25 = vld [vmem:[#allocation36_spill] sm:$0xff] }
 0x22b   : > { %7893 = vst [vmem:[#allocation48_spill] sm:$0xff] %v6385_v1  ;;  %v1061_v18 = vsel %vm5082_vm12, %v780_v12, %v1060_v35  ;;  %v489_v30 = vadd.f32 %v6405_v21, %v7895_v39  ;;  %v2593_v20 = vor.u32 %v2592_v57, %v2589_v59  ;;  %v1805_v42 = vadd.f32 %v7897_v16, %v7896_v29  ;;  %v7899_v12 = vld [vmem:[#allocation35_spill] sm:$0xff]  ;;  %v7903_v59 = vld [vmem:[#allocation14_spill] sm:$0xff]  ;;  %v7906_v16 = vld [vmem:[#allocation61_spill] sm:$0xff] }
 0x22c   : > { %7894 = vst [vmem:[#allocation12_spill] sm:$0xff] %v6397_v61  ;;  %v6409_v8 = vrot.slane %v1639_v22, 4  ;;  %1062 = vst [vmem:[#allocation2 + $0x3c] sm:$0xf] %v1061_v18  ;;  %v2248_v19 = vadd.f32 %v7898_v25, %v6298_v53  ;;  %v3545_v47 = vor.u32 %v3544_v43, %v3541_v37  ;;  %v436_v23 = vadd.f32 %v6405_v21, %v7899_v12  ;;  %v7904_v18 = vld [vmem:[#allocation29_spill] sm:$0xff] }
 0x22d   : > { %v543_v35 = vmax.f32 %v489_v30, 0.0  ;;  %v500_v4 = vadd.f32 %v6405_v21, %v7900_v0  ;;  %v7902_v39 = vunpack.c.l.bf16 %v7901_v34  ;;  %v7905_v45 = vunpack.c.l.bf16 %v7904_v18  ;;  %v7907_v30 = vld [vmem:[#allocation56_spill] sm:$0xff] }
 0x22e   : > { %v2781_v57 = vadd.f32 %v7903_v59, %v2248_v19  ;;  %v428_v53 = vadd.f32 %v6405_v21, %v7906_v16  ;;  %v530_v37 = vmax.f32 %v436_v23, 0.0  ;;  %v2766_v12 = vadd.f32 %v7907_v30, %v6170_v26  ;;  %v7908_v23 = vld [vmem:[#allocation54_spill] sm:$0xff] }
 0x22f   : > { %v2085_v22 = vmul.f32 %v6102_v6, %v7902_v39  ;;  %v3058_v29 = vmul.f32 %v5956_v38, %v7905_v45  ;;  %v4552_v43 = vpack.c.bf16 %v543_v35, %v543_v35  ;;  %v546_v25 = vmax.f32 %v500_v4, 0.0  ;;  %v7909_v4 = vld [vmem:[#allocation51_spill] sm:$0xff]  ;;  %v7911_v16 = vld [vmem:[#allocation62_spill] sm:$0xff] }
 0x230   : > { %v6430_v0 = vrot.slane %v2593_v20, 4  ;;  %v6434_v34 = vadd.f32 %v6333_v49, %v6354_v9  ;;  %v528_v19 = vmax.f32 %v428_v53, 0.0  ;;  %v492_v39 = vadd.f32 %v6405_v21, %v6106_v32  ;;  %v7912_v49 = vld [vmem:[#allocation60_spill] sm:$0xff] }
 0x231   : > { %v6438_v38 = vrot.slane %v3545_v47, 4  ;;  %v6440_v45 = vadd.f32 %v2085_v22, %v1805_v42  ;;  %v6442_v35 = vadd.f32 %v3058_v29, %v2781_v57  ;;  %v6446_v59 = vadd.f32 %v7909_v4, %v7908_v23  ;;  %v7914_v42 = vld [vmem:[#allocation55_spill] sm:$0xff]  ;;  %v7916_v4 = vld [vmem:[#allocation64_spill] sm:$0xff] }
 0x232   : > { %v911_v26 = vshrl.u32 %v4552_v43, 16  ;;  %v914_v20 = vshll.u32 %v4552_v43, 16  ;;  %v4539_v18 = vpack.c.bf16 %v530_v37, %v530_v37  ;;  %v6450_v9 = vadd.f32 %v7912_v49, %v7911_v16 }
 0x233   : > { %7910 = vst [vmem:[#allocation33_spill] sm:$0xff] %v6446_v59  ;;  %v1154_v53 = vld [vmem:[#allocation2 + $0x3c] sm:$0xf]  ;;  %v6452_v32 = vpack.c.bf16 %v546_v25, %v546_v25  ;;  %v6454_v47 = vpack.c.bf16 %v528_v19, %v528_v19  ;;  %v6457_v22 = vadd.f32 %v7914_v42, %v2766_v12  ;;  %v544_v57 = vmax.f32 %v492_v39, 0.0 }
 0x234   : > { %7913 = vst [vmem:[#allocation26_spill] sm:$0xff] %v6450_v9  ;;  %v2133_v30 = vld [vmem:[#allocation2 + $0x3c] sm:$0xf]  ;;  %v1417_v29 = vshrl.u32 %v1154_v53, 16  ;;  %v1420_v23 = vshll.u32 %v1154_v53, 16  ;;  %v6461_v43 = vadd.f32 %v7916_v4, %v6306_v44  ;;  %v6465_v37 = vadd.f32 %v6405_v21, %v6250_v51 }
 0x235   : > { %7915 = vst [vmem:[#allocation32_spill] sm:$0xff] %v6457_v22  ;;  %v6467_v16 = vld [vmem:[#allocation2 + $0x3c] sm:$0xe]  ;;  %v2165_v25 = vunpack.c.l.bf16 %v2133_v30  ;;  %v2371_v49 = vshrl.u32 %v2133_v30, 16  ;;  %v2374_v19 = vshll.u32 %v2133_v30, 16  ;;  %v6471_v12 = vadd.f32 %v6405_v21, %v6323_v27 }
 0x236   : > { %v3107_v1 = vld [vmem:[#allocation2 + $0x3c] sm:$0xf]  ;;  %v1186_v39 = vunpack.c.l.bf16 %v1154_v53  ;;  %v1419_v42 = vrot.slane %v1417_v29, 4  ;;  %v1422_v14 = vrot.slane %v1420_v23, 5  ;;  %v6481_v61 = vadd.f32 %v6405_v21, %v6371_v55 }
 0x237   : > { %v6473_v56 = vld [vmem:[#allocation2 + $0x3c] sm:$0xe]  ;;  %v3139_v44 = vunpack.c.l.bf16 %v3107_v1  ;;  %v6475_v4 = vrot.slane %v2371_v49, 4  ;;  %v6477_v51 = vrot.slane %v2374_v19, 5  ;;  %v3323_v33 = vshrl.u32 %v3107_v1, 16 }
 0x238   : > { %7917 = vst [vmem:[#allocation38_spill] sm:$0xff] %v6473_v56  ;;  %v1423_v30 = vor.u32 %v1422_v14, %v1419_v42  ;;  %v3326_v27 = vshll.u32 %v3107_v1, 16  ;;  %v6484_v22 = vld [vmem:[#allocation2 + $0x3c] sm:$0xe]  ;;  %v6488_v53 = vadd.f32 %v6405_v21, %v6394_v7  ;;  %v2202_v29 = vmul.f32 %v6346_v48, %v2165_v25  ;;  %v1127_v25 = vld [vmem:[#allocation2 + $0xb0] sm:$0x1] }
 0x239   : > { %7918 = vst [vmem:[#allocation30_spill] sm:$0xff] %v6484_v22  ;;  %v3325_v49 = vrot.slane %v3323_v33, 4  ;;  %v913_v19 = vrot.slane %v911_v26, 7  ;;  %v6493_v15 = vmul.f32 %v6205_v36, %v1186_v39  ;;  %v3176_v55 = vmul.f32 %v6366_v2, %v3139_v44  ;;  %v1116_v42 = vld [vmem:[#allocation2 + $0x9c] sm:$0xf] }
 0x23a   : > { %7919 = vst [vmem:[#allocation49_spill] sm:$0xff] %v6488_v53  ;;  %v3328_v14 = vrot.slane %v3326_v27, 5  ;;  %v800_v1 = vshrl.u32 %v4539_v18, 16  ;;  %v6497_v9 = vadd.f32 %v2202_v29, %v6328_v52  ;;  %v2377_v7 = vor.u32 %v6477_v51, %v6475_v4  ;;  %v1071_v27 = vld [vmem:[#allocation2 + $0x50] sm:$0x1] }
 0x23b   : > { %v916_v59 = vor.u32 %v914_v20, %v913_v19  ;;  %v6502_v23 = vrot.slane %v1423_v30, 4  ;;  %v803_v26 = vshll.u32 %v4539_v18, 16  ;;  %v936_v39 = vshrl.u32 %v6452_v32, 16  ;;  %v4626_v30 = vpop.f32.mrb[14].mxu0 }
 0x23c   : > { %7920 = vst [vmem:[#allocation27_spill] sm:$0xff] %v6497_v9  ;;  %v802_v33 = vrot.slane %v800_v1, 7  ;;  %v3329_v56 = vor.u32 %v3328_v14, %v3325_v49  ;;  %v783_v52 = vshrl.u32 %v6454_v47, 16  ;;  %v4553_v29 = vpack.c.bf16 %v544_v57, %v544_v57 }
 0x23d   : > { %v1117_v44 = vsel %vm5082_vm12, %v916_v59, %v1116_v42  ;;  %v938_v51 = vrot.slane %v936_v39, 7  ;;  %v939_v20 = vshll.u32 %v6452_v32, 16  ;;  %v786_v18 = vshll.u32 %v6454_v47, 16 }
 0x23e   : > { %1118 = vst [vmem:[#allocation2 + $0x9c] sm:$0xf] %v1117_v44  ;;  %v805_v9 = vor.u32 %v803_v26, %v802_v33  ;;  %v807_v4 = vrot.slane %v802_v33, 4  ;;  %v785_v1 = vrot.slane %v783_v52, 7  ;;  %v919_v22 = vshrl.u32 %v4553_v29, 16 }
 0x23f   : > { %v922_v49 = vshll.u32 %v4553_v29, 16  ;;  %v7921_v14 = vrot.slane %v6179_v24, 4  ;;  %v941_v42 = vor.u32 %v939_v20, %v938_v51  ;;  %v943_v33 = vrot.slane %v938_v51, 4  ;;  %v1064_v26 = vld [vmem:[#allocation2 + $0x44] sm:$0x1] }
 0x240   : > { %v1072_v57 = vsel %vm5118_vm14, %v807_v4, %v1071_v27  ;;  %v788_v32 = vor.u32 %v786_v18, %v785_v1  ;;  %v790_v39 = vrot.slane %v785_v1, 4  ;;  %v921_v44 = vrot.slane %v919_v22, 7  ;;  %v1120_v29 = vld [vmem:[#allocation2 + $0xa4] sm:$0x1] }
 0x241   : > { %v806_v59 = vsel %vm5111_vm13, %v7921_v14, %v805_v9  ;;  %1073 = vst [vmem:[#allocation2 + $0x50] sm:$0x1] %v1072_v57  ;;  %v533_v47 = vmax.f32 %v6465_v37, 0.0  ;;  %v917_v52 = vrot.slane %v913_v19, 4  ;;  %v7922_v24 = vrot.slane %v6273_v5, 4 }
 0x242   : > { %1070 = vst.msk [vmem:[#allocation2 + $0x4c] sm:$0xf] %vm567_vm1, %v806_v59  ;;  %v1128_v27 = vsel %vm5118_vm14, %v943_v33, %v1127_v25  ;;  %v549_v4 = vmax.f32 %v6471_v12, 0.0  ;;  %v7923_v51 = vrot.slane %v6319_v50, 4  ;;  %v1065_v5 = vsel %vm5118_vm14, %v790_v39, %v1064_v26 }
 0x243   : > { %v942_v9 = vsel %vm5111_vm13, %v7922_v24, %v941_v42  ;;  %1129 = vst [vmem:[#allocation2 + $0xb0] sm:$0x1] %v1128_v27  ;;  %v924_v37 = vor.u32 %v922_v49, %v921_v44  ;;  %v926_v19 = vrot.slane %v921_v44, 4  ;;  %v6532_v20 = vrot.slane %v2377_v7, 4  ;;  %1066 = vst [vmem:[#allocation2 + $0x44] sm:$0x1] %v1065_v5 }
 0x244   : > { %1126 = vst.msk [vmem:[#allocation2 + $0xac] sm:$0xf] %vm567_vm1, %v942_v9  ;;  %v789_v22 = vsel %vm5111_vm13, %v7923_v51, %v788_v32  ;;  %v6535_v25 = vadd.f32 %v3176_v55, %v6434_v34  ;;  %v6537_v1 = vrot.slane %v3329_v56, 4  ;;  %v531_v50 = vmax.f32 %v6481_v61, 0.0  ;;  %v7924_v7 = vld [vmem:[#allocation63_spill] sm:$0xff] }
 0x245   : > { %1063 = vst.msk [vmem:[#allocation2 + $0x40] sm:$0xf] %vm567_vm1, %v789_v22  ;;  %v1170_v12 = vld [vmem:[#allocation2 + $0x9c] sm:$0xf]  ;;  %v925_v14 = vsel %vm5111_vm13, %v917_v52, %v924_v37  ;;  %v1121_v49 = vsel %vm5118_vm14, %v926_v19, %v1120_v29  ;;  %v6547_v59 = vadd.f32 %v7924_v7, %v6461_v43  ;;  %v6549_v34 = vpack.c.bf16 %v533_v47, %v533_v47 }
 0x246   : > { %v2149_v18 = vld [vmem:[#allocation2 + $0x9c] sm:$0xf]  ;;  %v1609_v56 = vshrl.u32 %v1170_v12, 16  ;;  %v1612_v55 = vshll.u32 %v1170_v12, 16  ;;  %1119 = vst.msk [vmem:[#allocation2 + $0xa0] sm:$0xf] %vm567_vm1, %v925_v14  ;;  %v6552_v61 = vpack.c.bf16 %v549_v4, %v549_v4  ;;  %v1202_v42 = vunpack.c.l.bf16 %v1170_v12 }
 0x247   : > { %1122 = vst [vmem:[#allocation2 + $0xa4] sm:$0x1] %v1121_v49  ;;  %v6555_v33 = vld [vmem:[#allocation2 + $0x9c] sm:$0xe]  ;;  %v2181_v26 = vunpack.c.l.bf16 %v2149_v18  ;;  %v2563_v32 = vshrl.u32 %v2149_v18, 16  ;;  %v2566_v39 = vshll.u32 %v2149_v18, 16  ;;  %v6561_v27 = vpack.c.bf16 %v531_v50, %v531_v50 }
 0x248   : > { %v3123_v44 = vld [vmem:[#allocation2 + $0x9c] sm:$0xf]  ;;  %v1611_v43 = vrot.slane %v1609_v56, 4  ;;  %v1614_v52 = vrot.slane %v1612_v55, 5  ;;  %v6564_v5 = vadd.f32 %v6405_v21, %v4626_v30  ;;  %v1283_v14 = vld [vmem:[#allocation2 + $0x50] sm:$0x1]  ;;  %v6569_v49 = vmul.f32 %v6205_v36, %v1202_v42 }
 0x249   : > { %v6557_v47 = vld [vmem:[#allocation2 + $0x9c] sm:$0xe]  ;;  %v3155_v24 = vunpack.c.l.bf16 %v3123_v44  ;;  %7925 = vst [vmem:[#allocation28_spill] sm:$0xff] %v6561_v27  ;;  %v2565_v29 = vrot.slane %v2563_v32, 4  ;;  %v2568_v4 = vrot.slane %v2566_v39, 5  ;;  %v3515_v51 = vshrl.u32 %v3123_v44, 16 }
 0x24a   : > { %v6559_v9 = vld [vmem:[#allocation2 + $0x9c] sm:$0xe]  ;;  %v1157_v22 = vld [vmem:[#allocation2 + $0x4c] sm:$0xf]  ;;  %7926 = vst [vmem:[#allocation31_spill] sm:$0xff] %v6564_v5  ;;  %v1615_v37 = vor.u32 %v1614_v52, %v1611_v43  ;;  %v2218_v12 = vmul.f32 %v6346_v48, %v2181_v26  ;;  %v3518_v18 = vshll.u32 %v3123_v44, 16 }
 0x24b   : > { %v3192_v7 = vmul.f32 %v6366_v2, %v3155_v24  ;;  %v3517_v56 = vrot.slane %v3515_v51, 4  ;;  %v1450_v32 = vshll.u32 %v1157_v22, 16  ;;  %v2136_v39 = vld [vmem:[#allocation2 + $0x4c] sm:$0xf]  ;;  %v2569_v43 = vor.u32 %v2568_v4, %v2565_v29  ;;  %v6598_v30 = vpop.f32.mrb[14].mxu1 }
 0x24c   : > { %v6574_v55 = vadd.f32 %v2218_v12, %v6440_v45  ;;  %v3520_v21 = vrot.slane %v3518_v18, 5  ;;  %v1189_v26 = vunpack.c.l.bf16 %v1157_v22  ;;  %v1454_v44 = vshrl.u32 %v1157_v22, 16  ;;  %7929 = vst [vmem:[#allocation58_spill] sm:$0xff] %v6598_v30 }
 0x24d   : > { %v1460_v52 = vshll.u32 %v1283_v14, 16  ;;  %v6577_v57 = vrot.slane %v1615_v37, 4  ;;  %v1452_v19 = vrot.slane %v1450_v32, 5  ;;  %v1924_v50 = vrot.slane %v1157_v22, 5 }
 0x24e   : > { %v3521_v42 = vor.u32 %v3520_v21, %v3517_v56  ;;  %v6580_v24 = vadd.f32 %v3192_v7, %v6442_v35  ;;  %v1456_v51 = vrot.slane %v1454_v44, 4  ;;  %v1927_v45 = vrot.slane %v1283_v14, 5  ;;  %v2263_v14 = vld [vmem:[#allocation2 + $0x50] sm:$0x1] }
 0x24f   : > { %v2404_v12 = vshll.u32 %v2136_v39, 16  ;;  %v1453_v18 = vsel %vm5023_vm5, %v6360_v17, %v1452_v19  ;;  %v7927_v29 = vrot.slane %v6325_v10, 9  ;;  %v1926_v37 = vrot.slane %v1924_v50, 4 }
 0x250   : > { %v2168_v56 = vunpack.c.l.bf16 %v2136_v39  ;;  %v6591_v21 = vrot.slane %v2569_v43, 4  ;;  %v1226_v35 = vmul.f32 %v6205_v36, %v1189_v26  ;;  %v1457_v22 = vor.u32 %v1456_v51, %v1452_v19 }
 0x251   : > { %v6589_v4 = vsel %vm5029_vm8, %v7927_v29, %v1924_v50  ;;  %v1462_v7 = vrot.slane %v1460_v52, 5  ;;  %v6594_v32 = vrot.slane %v3521_v42, 4  ;;  %v1928_v17 = vsel %vm5029_vm8, %v1926_v37, %v1927_v45  ;;  %v3110_v42 = vld [vmem:[#allocation2 + $0x4c] sm:$0xf] }
 0x252   : > { %7928 = vst [vmem:[#allocation65_spill] sm:$0xff] %v6589_v4  ;;  %v2406_v44 = vrot.slane %v2404_v12, 5  ;;  %v2408_v10 = vshrl.u32 %v2136_v39, 16  ;;  %v1458_v29 = vrot.slane %v1457_v22, 4  ;;  %v1724_v46 = vunpack.c.l.bf16 %v1453_v18  ;;  %v3238_v18 = vld [vmem:[#allocation2 + $0x50] sm:$0x1] }
 0x253   : > { %v2892_v43 = vrot.slane %v2136_v39, 5  ;;  %v6602_v41 = vmul.f32 %v6346_v48, %v2168_v56  ;;  %v2414_v52 = vshll.u32 %v2263_v14, 16  ;;  %v2037_v45 = vunpack.c.l.bf16 %v1928_v17 }
 0x254   : > { %v2407_v19 = vsel %vm5023_vm5, %v6382_v31, %v2406_v44  ;;  %v2410_v26 = vrot.slane %v2408_v10, 4  ;;  %v1463_v51 = vsel %vm5023_vm5, %v1458_v29, %v1462_v7  ;;  %v2895_v37 = vrot.slane %v2263_v14, 5 }
 0x255   : > { %v2700_v12 = vunpack.c.l.bf16 %v2407_v19  ;;  %v1725_v22 = vunpack.c.l.bf16 %v1463_v51  ;;  %v7930_v39 = vrot.slane %v6337_v40, 9  ;;  %v2894_v5 = vrot.slane %v2892_v43, 4 }
 0x256   : > { %v2411_v50 = vor.u32 %v2410_v26, %v2406_v44  ;;  %v6616_v31 = vmul.f32 %v6219_v62, %v1724_v46  ;;  %v3142_v10 = vunpack.c.l.bf16 %v3110_v42  ;;  %v3356_v30 = vshll.u32 %v3110_v42, 16 }
 0x257   : > { %v6613_v56 = vsel %vm5029_vm8, %v7930_v39, %v2892_v43  ;;  %v3360_v53 = vshrl.u32 %v3110_v42, 16  ;;  %v2416_v17 = vrot.slane %v2414_v52, 5  ;;  %v2896_v14 = vsel %vm5029_vm8, %v2894_v5, %v2895_v37 }
 0x258   : > { %7931 = vst [vmem:[#allocation37_spill] sm:$0xff] %v6613_v56  ;;  %7932 = vst [vmem:[#allocation46_spill] sm:$0xff] %v6616_v31  ;;  %v2412_v7 = vrot.slane %v2411_v50, 4  ;;  %v3366_v29 = vshll.u32 %v3238_v18, 16  ;;  %v6621_v44 = vmul.f32 %v6102_v6, %v2037_v45  ;;  %v3358_v19 = vrot.slane %v3356_v30, 5 }
 0x259   : > { %v3362_v26 = vrot.slane %v3360_v53, 4  ;;  %v1762_v43 = vmul.f32 %v6219_v62, %v1725_v22  ;;  %v6630_v50 = vld [vmem:[%s7652_s3 + $0x4] ss:$0 sm:$0xff]  ;;  %v3861_v52 = vrot.slane %v3110_v42, 5  ;;  %v3010_v6 = vunpack.c.l.bf16 %v2896_v14  ;;  %v1173_v45 = vld [vmem:[#allocation2 + $0xac] sm:$0xf] }
 0x25a   : > { %7933 = vst [vmem:[#allocation50_spill] sm:$0xff] %v6621_v44  ;;  %v2417_v46 = vsel %vm5023_vm5, %v2412_v7, %v2416_v17  ;;  %v6633_v5 = vmul.f32 %v6630_v50, %v2700_v12  ;;  %v6636_v51 = vmul.f32 %v6366_v2, %v3142_v10  ;;  %v3359_v53 = vsel %vm5023_vm5, %v6390_v11, %v3358_v19  ;;  %v1291_v10 = vld [vmem:[#allocation2 + $0xb0] sm:$0x1] }
 0x25b   : > { %v3363_v30 = vor.u32 %v3362_v26, %v3358_v19  ;;  %v3368_v37 = vrot.slane %v3366_v29, 5  ;;  %v7935_v22 = vrot.slane %v6351_v54, 9  ;;  %v3863_v7 = vrot.slane %v3861_v52, 4  ;;  %v6652_v54 = vld [vmem:[%s7652_s3 + $0x5] ss:$0 sm:$0xff] }
 0x25c   : > { %7934 = vst [vmem:[#allocation53_spill] sm:$0xff] %v6633_v5  ;;  %v3864_v12 = vrot.slane %v3238_v18, 5  ;;  %v2701_v17 = vunpack.c.l.bf16 %v2417_v46  ;;  %v3674_v14 = vunpack.c.l.bf16 %v3359_v53  ;;  %v1205_v5 = vunpack.c.l.bf16 %v1173_v45 }
 0x25d   : > { %v3862_v39 = vsel %vm5029_vm8, %v7935_v22, %v3861_v52  ;;  %v3364_v42 = vrot.slane %v3363_v30, 4  ;;  %v1642_v11 = vshll.u32 %v1173_v45, 16  ;;  %v1646_v19 = vshrl.u32 %v1173_v45, 16 }
 0x25e   : > { %v3983_v40 = vunpack.c.l.bf16 %v3862_v39  ;;  %v3865_v44 = vsel %vm5029_vm8, %v3863_v7, %v3864_v12  ;;  %v6647_v26 = vadd.f32 %v1762_v43, %v1226_v35  ;;  %v6655_v18 = vmul.f32 %v6652_v54, %v3010_v6  ;;  %v2152_v39 = vld [vmem:[#allocation2 + $0xac] sm:$0xf]  ;;  %v6665_v43 = vld [vmem:[%s7652_s3 + $0x7] ss:$0 sm:$0xff]  ;;  %v6678_v12 = vpop.f32.mrb[15].mxu0 }
 0x25f   : > { %v3369_v29 = vsel %vm5023_vm5, %v3364_v42, %v3368_v37  ;;  %v3984_v46 = vunpack.c.l.bf16 %v3865_v44  ;;  %v1644_v53 = vrot.slane %v1642_v11, 5  ;;  %v1648_v30 = vrot.slane %v1646_v19, 4  ;;  %v6673_v44 = vld [vmem:[%s7652_s3 + $0x8] ss:$0 sm:$0xff]  ;;  %7939 = vst [vmem:[#allocation36_spill] sm:$0xff] %v6678_v12 }
 0x260   : > { %7936 = vst [vmem:[#allocation10_spill] sm:$0xff] %v6647_v26  ;;  %7937 = vst [vmem:[#allocation13_spill] sm:$0xff] %v6655_v18  ;;  %v3675_v52 = vunpack.c.l.bf16 %v3369_v29  ;;  %v1652_v22 = vshll.u32 %v1291_v10, 16  ;;  %v6660_v35 = vmul.f32 %v6630_v50, %v2701_v17  ;;  %v6668_v6 = vmul.f32 %v6665_v43, %v3674_v14  ;;  %v2271_v19 = vld [vmem:[#allocation2 + $0xb0] sm:$0x1] }
 0x261   : > { %v6676_v37 = vmul.f32 %v6673_v44, %v3983_v40  ;;  %v1980_v7 = vrot.slane %v1173_v45, 5  ;;  %v6681_v17 = vmul.f32 %v6673_v44, %v3984_v46  ;;  %v1242_v42 = vmul.f32 %v6205_v36, %v1205_v5 }
 0x262   : > { %7938 = vst [vmem:[#allocation59_spill] sm:$0xff] %v6660_v35  ;;  %v1645_v14 = vsel %vm5023_vm5, %v6409_v8, %v1644_v53  ;;  %v1649_v11 = vor.u32 %v1648_v30, %v1644_v53  ;;  %v6688_v29 = vmul.f32 %v6665_v43, %v3675_v52  ;;  %v1983_v40 = vrot.slane %v1291_v10, 5 }
 0x263   : > { %v1982_v18 = vrot.slane %v1980_v7, 4  ;;  %v2184_v26 = vunpack.c.l.bf16 %v2152_v39  ;;  %v1654_v35 = vrot.slane %v1652_v22, 5  ;;  %v2596_v12 = vshll.u32 %v2152_v39, 16 }
 0x264   : > { %v1650_v45 = vrot.slane %v1649_v11, 4  ;;  %v2600_v56 = vshrl.u32 %v2152_v39, 16  ;;  %v1740_v46 = vunpack.c.l.bf16 %v1645_v14  ;;  %v2606_v5 = vshll.u32 %v2271_v19, 16 }
 0x265   : > { %v1984_v36 = vsel %vm5029_vm8, %v1982_v18, %v1983_v40  ;;  %v2948_v4 = vrot.slane %v2152_v39, 5  ;;  %v7940_v53 = vrot.slane %v6358_v28, 9  ;;  %v2598_v10 = vrot.slane %v2596_v12, 5  ;;  %v3126_v18 = vld [vmem:[#allocation2 + $0xac] sm:$0xf] }
 0x266   : > { %v1655_v8 = vsel %vm5023_vm5, %v1650_v45, %v1654_v35  ;;  %v2602_v30 = vrot.slane %v2600_v56, 4  ;;  %v2053_v11 = vunpack.c.l.bf16 %v1984_v36  ;;  %v6701_v14 = vmul.f32 %v6346_v48, %v2184_v26  ;;  %v3246_v36 = vld [vmem:[#allocation2 + $0xb0] sm:$0x1] }
 0x267   : > { %v6698_v52 = vsel %vm5029_vm8, %v7940_v53, %v1980_v7  ;;  %v1741_v22 = vunpack.c.l.bf16 %v1655_v8  ;;  %v2950_v31 = vrot.slane %v2948_v4, 4  ;;  %v2599_v39 = vsel %vm5023_vm5, %v6430_v0, %v2598_v10 }
 0x268   : > { %7941 = vst [vmem:[#allocation35_spill] sm:$0xff] %v6698_v52  ;;  %7942 = vst [vmem:[#allocation52_spill] sm:$0xff] %v6701_v14  ;;  %v2603_v35 = vor.u32 %v2602_v30, %v2598_v10  ;;  %v7943_v28 = vrot.slane %v6378_v58, 9  ;;  %v2951_v12 = vrot.slane %v2271_v19, 5  ;;  %v2608_v26 = vrot.slane %v2606_v5, 5 }
 0x269   : > { %v1778_v56 = vmul.f32 %v6219_v62, %v1741_v22  ;;  %v2716_v45 = vunpack.c.l.bf16 %v2599_v39  ;;  %v3548_v0 = vshll.u32 %v3126_v18, 16  ;;  %v3552_v10 = vshrl.u32 %v3126_v18, 16  ;;  %v1155_v22 = vld [vmem:[#allocation2 + $0x40] sm:$0xf] }
 0x26a   : > { %v6710_v7 = vsel %vm5029_vm8, %v7943_v28, %v2948_v4  ;;  %v2604_v8 = vrot.slane %v2603_v35, 4  ;;  %v2952_v53 = vsel %vm5029_vm8, %v2950_v31, %v2951_v12  ;;  %v6717_v58 = vmul.f32 %v6219_v62, %v1740_v46  ;;  %v6722_v4 = vld [vmem:[%s7652_s3 + $0x2] ss:$0 sm:$0xff] }
 0x26b   : > { %7944 = vst [vmem:[#allocation57_spill] sm:$0xff] %v6710_v7  ;;  %v6725_v19 = vmul.f32 %v6722_v4, %v2053_v11  ;;  %v3158_v30 = vunpack.c.l.bf16 %v3126_v18  ;;  %v3550_v39 = vrot.slane %v3548_v0, 5  ;;  %v3554_v35 = vrot.slane %v3552_v10, 4  ;;  %v3108_v14 = vld [vmem:[#allocation2 + $0x40] sm:$0xf] }
 0x26c   : > { %7945 = vst [vmem:[#allocation14_spill] sm:$0xff] %v6717_v58  ;;  %v2609_v31 = vsel %vm5023_vm5, %v2604_v8, %v2608_v26  ;;  %v3558_v28 = vshll.u32 %v3246_v36, 16  ;;  %v6730_v62 = vadd.f32 %v1778_v56, %v1242_v42  ;;  %v6733_v46 = vmul.f32 %v6630_v50, %v2716_v45 }
 0x26d   : > { %7946 = vst [vmem:[#allocation29_spill] sm:$0xff] %v6725_v19  ;;  %v3026_v12 = vunpack.c.l.bf16 %v2952_v53  ;;  %v3917_v40 = vrot.slane %v3126_v18, 5  ;;  %v2717_v52 = vunpack.c.l.bf16 %v2609_v31  ;;  %v3551_v11 = vsel %vm5023_vm5, %v6438_v38, %v3550_v39  ;;  %v1282_v53 = vld [vmem:[#allocation2 + $0x44] sm:$0x1] }
 0x26e   : > { %7947 = vst [vmem:[#allocation61_spill] sm:$0xff] %v6730_v62  ;;  %7948 = vst [vmem:[#allocation56_spill] sm:$0xff] %v6733_v46  ;;  %v3555_v5 = vor.u32 %v3554_v35, %v3550_v39  ;;  %v1187_v19 = vunpack.c.l.bf16 %v1155_v22  ;;  %v3690_v7 = vunpack.c.l.bf16 %v3551_v11  ;;  %v7949_v26 = vrot.slane %v6380_v63, 9  ;;  %v6779_v46 = vld [vmem:[%s7652_s3 + $0x1] ss:$0 sm:$0xff] }
 0x26f   : > { %v3919_v42 = vrot.slane %v3917_v40, 4  ;;  %v3920_v56 = vrot.slane %v3246_v36, 5  ;;  %v3560_v45 = vrot.slane %v3558_v28, 5  ;;  %v1426_v18 = vshll.u32 %v1155_v22, 16  ;;  %v6758_v36 = vld [vmem:[%s7652_s3] ss:$0 sm:$0xff] }
 0x270   : > { %v3918_v8 = vsel %vm5029_vm8, %v7949_v26, %v3917_v40  ;;  %v3556_v0 = vrot.slane %v3555_v5, 4  ;;  %v6743_v31 = vmul.f32 %v6652_v54, %v3026_v12  ;;  %v6746_v38 = vmul.f32 %v6366_v2, %v3158_v30  ;;  %v2134_v28 = vld [vmem:[#allocation2 + $0x40] sm:$0xf] }
 0x271   : > { %v3999_v10 = vunpack.c.l.bf16 %v3918_v8  ;;  %v3921_v39 = vsel %vm5029_vm8, %v3919_v42, %v3920_v56  ;;  %v1430_v63 = vshrl.u32 %v1155_v22, 16  ;;  %v6751_v35 = vmul.f32 %v6630_v50, %v2717_v52 }
 0x272   : > { %7950 = vst [vmem:[#allocation54_spill] sm:$0xff] %v6743_v31  ;;  %v3561_v40 = vsel %vm5023_vm5, %v3556_v0, %v3560_v45  ;;  %v6761_v5 = vmul.f32 %v6758_v36, %v1187_v19  ;;  %v1428_v30 = vrot.slane %v1426_v18, 5  ;;  %v6764_v12 = vmul.f32 %v6665_v43, %v3690_v7 }
 0x273   : > { %7951 = vst [vmem:[#allocation51_spill] sm:$0xff] %v6751_v35  ;;  %v1432_v11 = vrot.slane %v1430_v63, 4  ;;  %v1436_v26 = vshll.u32 %v1282_v53, 16  ;;  %v1917_v52 = vrot.slane %v1155_v22, 5  ;;  %v3691_v8 = vunpack.c.l.bf16 %v3561_v40  ;;  %v2262_v63 = vld [vmem:[#allocation2 + $0x44] sm:$0x1] }
 0x274   : > { %v4000_v42 = vunpack.c.l.bf16 %v3921_v39  ;;  %v6767_v56 = vmul.f32 %v6673_v44, %v3999_v10  ;;  %v1429_v0 = vsel %vm5023_vm5, %v6502_v23, %v1428_v30  ;;  %v7952_v18 = vrot.slane %v6467_v16, 9 }
 0x275   : > { %v1433_v45 = vor.u32 %v1432_v11, %v1428_v30  ;;  %v1722_v19 = vunpack.c.l.bf16 %v1429_v0  ;;  %v2166_v31 = vunpack.c.l.bf16 %v2134_v28  ;;  %v1919_v35 = vrot.slane %v1917_v52, 4 }
 0x276   : > { %v1918_v7 = vsel %vm5029_vm8, %v7952_v18, %v1917_v52  ;;  %v1920_v22 = vrot.slane %v1282_v53, 5  ;;  %v2380_v39 = vshll.u32 %v2134_v28, 16  ;;  %v1438_v10 = vrot.slane %v1436_v26, 5 }
 0x277   : > { %v2034_v40 = vunpack.c.l.bf16 %v1918_v7  ;;  %v1434_v62 = vrot.slane %v1433_v45, 4  ;;  %v1759_v23 = vmul.f32 %v6779_v46, %v1722_v19  ;;  %v2384_v30 = vshrl.u32 %v2134_v28, 16 }
 0x278   : > { %v6783_v16 = vmul.f32 %v6673_v44, %v4000_v42  ;;  %v1921_v11 = vsel %vm5029_vm8, %v1919_v35, %v1920_v22  ;;  %v2382_v52 = vrot.slane %v2380_v39, 5  ;;  %v2390_v53 = vshll.u32 %v2262_v63, 16 }
 0x279   : > { %v6788_v0 = vmul.f32 %v6665_v43, %v3691_v8  ;;  %v1439_v26 = vsel %vm5023_vm5, %v1434_v62, %v1438_v10  ;;  %v2203_v45 = vmul.f32 %v6346_v48, %v2166_v31  ;;  %v2386_v18 = vrot.slane %v2384_v30, 4  ;;  %v7956_v10 = vld [vmem:[#allocation38_spill] sm:$0xff] }
 0x27a   : > { %7953 = vst [vmem:[#allocation62_spill] sm:$0xff] %v6783_v16  ;;  %v1723_v7 = vunpack.c.l.bf16 %v1439_v26  ;;  %v2071_v19 = vmul.f32 %v6722_v4, %v2034_v40  ;;  %v2383_v42 = vsel %vm5023_vm5, %v6532_v20, %v2382_v52  ;;  %v2885_v58 = vrot.slane %v2134_v28, 5  ;;  %v6798_v16 = vpop.f32.mrb[15].mxu1 }
 0x27b   : > { %7954 = vst [vmem:[#allocation60_spill] sm:$0xff] %v6788_v0  ;;  %v1791_v35 = vadd.f32 %v1759_v23, %v6493_v15  ;;  %v2035_v22 = vunpack.c.l.bf16 %v1921_v11  ;;  %v2387_v39 = vor.u32 %v2386_v18, %v2382_v52  ;;  %v2698_v8 = vunpack.c.l.bf16 %v2383_v42  ;;  %7955 = vst [vmem:[#allocation55_spill] sm:$0xff] %v6798_v16  ;;  %v3237_v52 = vld [vmem:[#allocation2 + $0x44] sm:$0x1] }
 0x27c   : > { %v2392_v62 = vrot.slane %v2390_v53, 5  ;;  %v7957_v48 = vrot.slane %v7956_v10, 9  ;;  %v2887_v40 = vrot.slane %v2885_v58, 4  ;;  %v2888_v30 = vrot.slane %v2262_v63, 5  ;;  %v7958_v10 = vld [vmem:[#allocation27_spill] sm:$0xff] }
 0x27d   : > { %v1760_v26 = vmul.f32 %v6779_v46, %v1723_v7  ;;  %v2388_v20 = vrot.slane %v2387_v39, 4  ;;  %v2735_v28 = vmul.f32 %v6630_v50, %v2698_v8  ;;  %v3140_v11 = vunpack.c.l.bf16 %v3108_v14  ;;  %v7959_v39 = vld [vmem:[#allocation33_spill] sm:$0xff] }
 0x27e   : > { %v2886_v31 = vsel %vm5029_vm8, %v7957_v48, %v2885_v58  ;;  %v2889_v23 = vsel %vm5029_vm8, %v2887_v40, %v2888_v30  ;;  %v3332_v18 = vshll.u32 %v3108_v14, 16  ;;  %v3336_v53 = vshrl.u32 %v3108_v14, 16 }
 0x27f   : > { %v3007_v15 = vunpack.c.l.bf16 %v2886_v31  ;;  %v2393_v42 = vsel %vm5023_vm5, %v2388_v20, %v2392_v62  ;;  %v2767_v48 = vadd.f32 %v2735_v28, %v7958_v10  ;;  %v3008_v58 = vunpack.c.l.bf16 %v2889_v23 }
 0x280   : > { %v2072_v7 = vmul.f32 %v6722_v4, %v2035_v22  ;;  %v2235_v8 = vadd.f32 %v2203_v45, %v7959_v39  ;;  %v2699_v31 = vunpack.c.l.bf16 %v2393_v42  ;;  %v3334_v16 = vrot.slane %v3332_v18, 5  ;;  %v6822_v22 = vld [vmem:[#allocation2 + $0xa0] sm:$0xf] }
 0x281   : > { %v3044_v63 = vmul.f32 %v6652_v54, %v3007_v15  ;;  %v6814_v13 = vadd.f32 %v2071_v19, %v1791_v35  ;;  %v3338_v30 = vrot.slane %v3336_v53, 4  ;;  %v3342_v27 = vshll.u32 %v3237_v52, 16  ;;  %v7960_v15 = vld [vmem:[#allocation16_spill] sm:$0xff] }
 0x282   : > { %v1792_v0 = vadd.f32 %v1760_v26, %v6761_v5  ;;  %v2736_v62 = vmul.f32 %v6630_v50, %v2699_v31  ;;  %v3177_v20 = vmul.f32 %v6366_v2, %v3140_v11  ;;  %v3335_v28 = vsel %vm5023_vm5, %v6537_v1, %v3334_v16  ;;  %v7961_v53 = vld [vmem:[#allocation32_spill] sm:$0xff] }
 0x283   : > { %v3076_v40 = vadd.f32 %v3044_v63, %v2767_v48  ;;  %v3045_v45 = vmul.f32 %v6652_v54, %v3008_v58  ;;  %v3339_v35 = vor.u32 %v3338_v30, %v3334_v16  ;;  %v3672_v23 = vunpack.c.l.bf16 %v3335_v28  ;;  %v7962_v63 = vld [vmem:[#allocation30_spill] sm:$0xff]  ;;  %v1290_v30 = vld [vmem:[#allocation2 + $0xa4] sm:$0x1] }
 0x284   : > { %v2768_v18 = vadd.f32 %v2736_v62, %v2235_v8  ;;  %v3209_v42 = vadd.f32 %v3177_v20, %v7961_v53  ;;  %v3344_v5 = vrot.slane %v3342_v27, 5  ;;  %v3854_v26 = vrot.slane %v3108_v14, 5 }
 0x285   : > { %v3210_v19 = vadd.f32 %v7960_v15, %v3076_v40  ;;  %v3340_v10 = vrot.slane %v3339_v35, 4  ;;  %v3709_v2 = vmul.f32 %v6665_v43, %v3672_v23  ;;  %v1618_v1 = vshll.u32 %v6822_v22, 16 }
 0x286   : > { %v3077_v48 = vadd.f32 %v3045_v45, %v2768_v18  ;;  %v7963_v39 = vrot.slane %v7962_v63, 9  ;;  %v3856_v16 = vrot.slane %v3854_v26, 4  ;;  %v3857_v31 = vrot.slane %v3237_v52, 5  ;;  %v6845_v52 = vld [vmem:[%s7653_s4] ss:$0 sm:$0xff] }
 0x287   : > { %v3743_v11 = vadd.f32 %v6668_v6, %v3210_v19  ;;  %v3345_v8 = vsel %vm5023_vm5, %v3340_v10, %v3344_v5  ;;  %v3741_v27 = vadd.f32 %v3709_v2, %v6535_v25  ;;  %v1620_v28 = vrot.slane %v1618_v1, 5 }
 0x288   : > { %v3855_v58 = vsel %vm5029_vm8, %v7963_v39, %v3854_v26  ;;  %v3211_v6 = vadd.f32 %v6636_v51, %v3077_v48  ;;  %v3673_v62 = vunpack.c.l.bf16 %v3345_v8  ;;  %v3858_v20 = vsel %vm5029_vm8, %v3856_v16, %v3857_v31  ;;  %v2150_v16 = vld [vmem:[#allocation2 + $0xa0] sm:$0xf] }
 0x289   : > { %v3981_v14 = vunpack.c.l.bf16 %v3855_v58  ;;  %v4052_v40 = vadd.f32 %v6676_v37, %v3743_v11  ;;  %v3982_v45 = vunpack.c.l.bf16 %v3858_v20  ;;  %v1622_v37 = vshrl.u32 %v6822_v22, 16 }
 0x28a   : > { %v3710_v19 = vmul.f32 %v6665_v43, %v3673_v62  ;;  %v3744_v51 = vadd.f32 %v6688_v29, %v3211_v6  ;;  %v1621_v35 = vsel %vm5023_vm5, %v6577_v57, %v1620_v28  ;;  %v1628_v23 = vshll.u32 %v1290_v30, 16 }
 0x28b   : > { %v4018_v15 = vmul.f32 %v6673_v44, %v3981_v14  ;;  %v4091_v25 = vadd.f32 %v6845_v52, %v4052_v40  ;;  %v2104_v18 = vadd.f32 %v2072_v7, %v1792_v0  ;;  %v1624_v26 = vrot.slane %v1622_v37, 4 }
 0x28c   : > { %v3742_v10 = vadd.f32 %v3710_v19, %v3209_v42  ;;  %v4019_v2 = vmul.f32 %v6673_v44, %v3982_v45  ;;  %v4053_v11 = vadd.f32 %v6681_v17, %v3744_v51  ;;  %v1738_v1 = vunpack.c.l.bf16 %v1621_v35  ;;  %v2270_v19 = vld [vmem:[#allocation2 + $0xa4] sm:$0x1] }
 0x28d   : > { %v4050_v53 = vadd.f32 %v4018_v15, %v3741_v27  ;;  %v4123_v5 = vmax.f32 %v4091_v25, 0.0  ;;  %v1625_v29 = vor.u32 %v1624_v26, %v1620_v28  ;;  %v1973_v39 = vrot.slane %v6822_v22, 5 }
 0x28e   : > { %v4051_v58 = vadd.f32 %v4019_v2, %v3742_v10  ;;  %v4092_v57 = vadd.f32 %v6845_v52, %v4053_v11  ;;  %v1203_v0 = vunpack.c.l.bf16 %v6822_v22  ;;  %v1630_v7 = vrot.slane %v1628_v23, 5  ;;  %v3124_v10 = vld [vmem:[#allocation2 + $0xa0] sm:$0xf] }
 0x28f   : > { %v4089_v48 = vadd.f32 %v6845_v52, %v4050_v53  ;;  %v4568_v63 = vpack.c.bf16 %v4123_v5, %v4123_v5  ;;  %v1626_v42 = vrot.slane %v1625_v29, 4  ;;  %v1975_v8 = vrot.slane %v1973_v39, 4 }
 0x290   : > { %v1976_v17 = vrot.slane %v1290_v30, 5  ;;  %v4090_v27 = vadd.f32 %v6845_v52, %v4051_v58  ;;  %v4124_v14 = vmax.f32 %v4092_v57, 0.0  ;;  %v1775_v40 = vmul.f32 %v6779_v46, %v1738_v1 }
 0x291   : > { %v4121_v31 = vmax.f32 %v4089_v48, 0.0  ;;  %4283 = vst.msk [vmem:[%s5559_s28 + $0x20] sm:$0xf] %vm567_vm1, %v4568_v63  ;;  %v7964_v6 = vrot.slane %v6555_v33, 9  ;;  %v1631_v20 = vsel %vm5023_vm5, %v1626_v42, %v1630_v7  ;;  %v2182_v30 = vunpack.c.l.bf16 %v2150_v16 }
 0x292   : > { %v1977_v28 = vsel %vm5029_vm8, %v1975_v8, %v1976_v17  ;;  %v4122_v45 = vmax.f32 %v4090_v27, 0.0  ;;  %v4569_v15 = vpack.c.bf16 %v4124_v14, %v4124_v14  ;;  %v1739_v25 = vunpack.c.l.bf16 %v1631_v20 }
 0x293   : > { %v6868_v62 = vsel %vm5029_vm8, %v7964_v6, %v1973_v39  ;;  %v4566_v22 = vpack.c.bf16 %v4121_v31, %v4121_v31  ;;  %v2051_v37 = vunpack.c.l.bf16 %v1977_v28  ;;  %v6875_v33 = vadd.f32 %v6602_v41, %v2104_v18  ;;  %v6889_v41 = vld [vmem:[%s7652_s3 + $0x3] ss:$0 sm:$0xff]  ;;  %v3245_v28 = vld [vmem:[#allocation2 + $0xa4] sm:$0x1] }
 0x294   : > { %v1240_v51 = vmul.f32 %v6758_v36, %v1203_v0  ;;  %v2572_v35 = vshll.u32 %v2150_v16, 16  ;;  %v2576_v23 = vshrl.u32 %v2150_v16, 16  ;;  %v4567_v53 = vpack.c.bf16 %v4122_v45, %v4122_v45  ;;  %4284 = vst.msk [vmem:[%s5559_s28 + $0x24] sm:$0xf] %vm567_vm1, %v4569_v15 }
 0x295   : > { %4281 = vst.msk [vmem:[%s5559_s28 + $0x18] sm:$0xf] %vm567_vm1, %v4566_v22  ;;  %v1776_v5 = vmul.f32 %v6779_v46, %v1739_v25  ;;  %v6884_v26 = vadd.f32 %v1775_v40, %v6569_v49  ;;  %v2219_v18 = vmul.f32 %v6889_v41, %v2182_v30  ;;  %v2050_v2 = vunpack.c.l.bf16 %v6868_v62  ;;  %v7965_v49 = vld [vmem:[#allocation26_spill] sm:$0xff] }
 0x296   : > { %v2574_v11 = vrot.slane %v2572_v35, 5  ;;  %v2578_v1 = vrot.slane %v2576_v23, 4  ;;  %v2582_v48 = vshll.u32 %v2270_v19, 16  ;;  %4282 = vst.msk [vmem:[%s5559_s28 + $0x1c] sm:$0xf] %vm567_vm1, %v4567_v53  ;;  %v2088_v29 = vmul.f32 %v6722_v4, %v2051_v37 }
 0x297   : > { %v1808_v63 = vadd.f32 %v1776_v5, %v1240_v51  ;;  %v2251_v39 = vadd.f32 %v2219_v18, %v7965_v49  ;;  %v2941_v58 = vrot.slane %v2150_v16, 5  ;;  %v3156_v7 = vunpack.c.l.bf16 %v3124_v10  ;;  %v6907_v16 = vld [vmem:[%s7652_s3 + $0x6] ss:$0 sm:$0xff] }
 0x298   : > { %v2575_v57 = vsel %vm5023_vm5, %v6591_v21, %v2574_v11  ;;  %v2579_v0 = vor.u32 %v2578_v1, %v2574_v11  ;;  %v3524_v31 = vshll.u32 %v3124_v10, 16  ;;  %v7966_v8 = vrot.slane %v6557_v47, 9 }
 0x299   : > { %v2714_v42 = vunpack.c.l.bf16 %v2575_v57  ;;  %v2943_v27 = vrot.slane %v2941_v58, 4  ;;  %v2944_v14 = vrot.slane %v2270_v19, 5  ;;  %v2584_v6 = vrot.slane %v2582_v48, 5 }
 0x29a   : > { %v2942_v17 = vsel %vm5029_vm8, %v7966_v8, %v2941_v58  ;;  %v2580_v40 = vrot.slane %v2579_v0, 4  ;;  %v3193_v21 = vmul.f32 %v6907_v16, %v3156_v7  ;;  %v3526_v30 = vrot.slane %v3524_v31, 5 }
 0x29b   : > { %v3023_v22 = vunpack.c.l.bf16 %v2942_v17  ;;  %v2751_v20 = vmul.f32 %v6630_v50, %v2714_v42  ;;  %v2945_v47 = vsel %vm5029_vm8, %v2943_v27, %v2944_v14  ;;  %v3528_v45 = vshrl.u32 %v3124_v10, 16  ;;  %v7968_v42 = vld [vmem:[#allocation12_spill] sm:$0xff] }
 0x29c   : > { %v2585_v15 = vsel %vm5023_vm5, %v2580_v40, %v2584_v6  ;;  %v3024_v25 = vunpack.c.l.bf16 %v2945_v47  ;;  %v3225_v19 = vadd.f32 %v3193_v21, %v6547_v59  ;;  %v3527_v23 = vsel %vm5023_vm5, %v6594_v32, %v3526_v30 }
 0x29d   : > { %v3060_v37 = vmul.f32 %v6652_v54, %v3023_v22  ;;  %v2715_v51 = vunpack.c.l.bf16 %v2585_v15  ;;  %v2783_v35 = vadd.f32 %v2751_v20, %v6574_v55  ;;  %v3530_v53 = vrot.slane %v3528_v45, 4  ;;  %v1081_v15 = vld [vmem:[#allocation2 + $0x60] sm:$0xf] }
 0x29e   : > { %v3061_v5 = vmul.f32 %v6652_v54, %v3024_v25  ;;  %v3534_v18 = vshll.u32 %v3245_v28, 16  ;;  %v3688_v11 = vunpack.c.l.bf16 %v3527_v23  ;;  %v3910_v1 = vrot.slane %v3124_v10, 5 }
 0x29f   : > { %v2752_v48 = vmul.f32 %v6630_v50, %v2715_v51  ;;  %v3092_v49 = vadd.f32 %v3060_v37, %v2783_v35  ;;  %v3531_v58 = vor.u32 %v3530_v53, %v3526_v30  ;;  %v3913_v57 = vrot.slane %v3245_v28, 5  ;;  %v7969_v35 = vld [vmem:[#allocation60_spill] sm:$0xff] }
 0x2a0   : > { %v3536_v0 = vrot.slane %v3534_v18, 5  ;;  %v3725_v59 = vmul.f32 %v6665_v43, %v3688_v11  ;;  %v7967_v55 = vrot.slane %v6559_v9, 9  ;;  %v3912_v32 = vrot.slane %v3910_v1, 4  ;;  %v1137_v18 = vld [vmem:[#allocation2 + $0xc0] sm:$0xf] }
 0x2a1   : > { %v2784_v31 = vadd.f32 %v2752_v48, %v2251_v39  ;;  %v3226_v8 = vadd.f32 %v7968_v42, %v3092_v49  ;;  %v3532_v17 = vrot.slane %v3531_v58, 4  ;;  %v826_v14 = vshrl.u32 %v6549_v34, 16  ;;  %v7975_v42 = vld [vmem:[#allocation52_spill] sm:$0xff] }
 0x2a2   : > { %v3911_v7 = vsel %vm5029_vm8, %v7967_v55, %v3910_v1  ;;  %v3757_v10 = vadd.f32 %v3725_v59, %v6580_v24  ;;  %v3914_v50 = vsel %vm5029_vm8, %v3912_v32, %v3913_v57  ;;  %v829_v40 = vshll.u32 %v6549_v34, 16  ;;  %v1074_v55 = vld [vmem:[#allocation2 + $0x54] sm:$0xf]  ;;  %v7974_v32 = vld [vmem:[#allocation46_spill] sm:$0xff] }
 0x2a3   : > { %v3997_v27 = vunpack.c.l.bf16 %v3911_v7  ;;  %v3093_v6 = vadd.f32 %v3061_v5, %v2784_v31  ;;  %v3537_v9 = vsel %vm5023_vm5, %v3532_v17, %v3536_v0  ;;  %v3759_v22 = vadd.f32 %v6764_v12, %v3226_v8  ;;  %v7973_v7 = vld [vmem:[#allocation39_spill] sm:$0xff]  ;;  %v8000_v5 = vld [vmem:[#allocation50_spill] sm:$0xff] }
 0x2a4   : > { %v3998_v39 = vunpack.c.l.bf16 %v3914_v50  ;;  %v3689_v21 = vunpack.c.l.bf16 %v3537_v9  ;;  %v6938_v47 = vrot.slane %v826_v14, 7  ;;  %v962_v24 = vshrl.u32 %v6552_v61, 16  ;;  %v1078_v14 = vld [vmem:[#allocation2 + $0x5c] sm:$0x1] }
 0x2a5   : > { %v4034_v20 = vmul.f32 %v6673_v44, %v3997_v27  ;;  %v2087_v28 = vmul.f32 %v6722_v4, %v2050_v2  ;;  %v2120_v30 = vadd.f32 %v2088_v29, %v1808_v63  ;;  %v3227_v34 = vadd.f32 %v6746_v38, %v3093_v6  ;;  %v7970_v2 = vld [vmem:[#allocation28_spill] sm:$0xff] }
 0x2a6   : > { %v4068_v45 = vadd.f32 %v6767_v56, %v3759_v22  ;;  %v3726_v12 = vmul.f32 %v6665_v43, %v3689_v21  ;;  %v831_v37 = vor.u32 %v829_v40, %v6938_v47  ;;  %v965_v51 = vshll.u32 %v6552_v61, 16  ;;  %v7972_v61 = vld [vmem:[#allocation62_spill] sm:$0xff]  ;;  %v7976_v40 = vld [vmem:[#allocation65_spill] sm:$0xff] }
 0x2a7   : > { %v4066_v25 = vadd.f32 %v4034_v20, %v3757_v10  ;;  %v3760_v23 = vadd.f32 %v7969_v35, %v3227_v34  ;;  %v6951_v62 = vrot.slane %v962_v24, 7  ;;  %v809_v63 = vshrl.u32 %v7970_v2, 16  ;;  %v7978_v22 = vld [vmem:[#allocation6_spill] sm:$0xff] }
 0x2a8   : > { %v4107_v53 = vadd.f32 %v6845_v52, %v4068_v45  ;;  %v3758_v29 = vadd.f32 %v3726_v12, %v3225_v19  ;;  %v4035_v38 = vmul.f32 %v6673_v44, %v3998_v39  ;;  %v1082_v43 = vsel %vm5082_vm12, %v831_v37, %v1081_v15  ;;  %v7979_v45 = vld [vmem:[#allocation37_spill] sm:$0xff] }
 0x2a9   : > { %v4105_v56 = vadd.f32 %v6845_v52, %v4066_v25  ;;  %v2119_v11 = vadd.f32 %v2087_v28, %v6884_v26  ;;  %v4069_v1 = vadd.f32 %v7972_v61, %v3760_v23  ;;  %1083 = vst [vmem:[#allocation2 + $0x60] sm:$0xf] %v1082_v43  ;;  %v967_v49 = vor.u32 %v965_v51, %v6951_v62  ;;  %v7981_v12 = vld [vmem:[#allocation49_spill] sm:$0xff] }
 0x2aa   : > { %v4139_v48 = vmax.f32 %v4107_v53, 0.0  ;;  %v4067_v58 = vadd.f32 %v4035_v38, %v3758_v29  ;;  %v6961_v19 = vrot.slane %v809_v63, 7  ;;  %v812_v44 = vshll.u32 %v7970_v2, 16  ;;  %v7983_v53 = vld [vmem:[#allocation53_spill] sm:$0xff]  ;;  %v7984_v63 = vld [vmem:[#allocation47_spill] sm:$0xff]  ;;  %v7985_v29 = vld [vmem:[#allocation14_spill] sm:$0xff] }
 0x2ab   : > { %v4137_v57 = vmax.f32 %v4105_v56, 0.0  ;;  %v4108_v0 = vadd.f32 %v6845_v52, %v4069_v1  ;;  %v1138_v26 = vsel %vm5082_vm12, %v967_v49, %v1137_v18  ;;  %v1793_v31 = vadd.f32 %v7974_v32, %v7973_v7  ;;  %v7986_v56 = vld [vmem:[#allocation35_spill] sm:$0xff] }
 0x2ac   : > { %v4584_v59 = vpack.c.bf16 %v4139_v48, %v4139_v48  ;;  %v6970_v8 = vadd.f32 %v7975_v42, %v2120_v30  ;;  %v4106_v17 = vadd.f32 %v6845_v52, %v4067_v58  ;;  %1139 = vst [vmem:[#allocation2 + $0xc0] sm:$0xf] %v1138_v26  ;;  %v814_v10 = vor.u32 %v812_v44, %v6961_v19  ;;  %v7988_v58 = vld [vmem:[#allocation48_spill] sm:$0xff] }
 0x2ad   : > { %v4582_v27 = vpack.c.bf16 %v4137_v57, %v4137_v57  ;;  %v4140_v50 = vmax.f32 %v4108_v0, 0.0  ;;  %v7977_v6 = vunpack.c.l.bf16 %v7976_v40  ;;  %v2236_v39 = vadd.f32 %v7978_v22, %v6814_v13 }
 0x2ae   : > { %4299 = vst.msk [vmem:[%s5559_s28 + $0x60] sm:$0xf] %vm567_vm1, %v4584_v59  ;;  %v4138_v21 = vmax.f32 %v4106_v17, 0.0  ;;  %v1075_v28 = vsel %vm5082_vm12, %v814_v10, %v1074_v55  ;;  %v7980_v15 = vunpack.c.l.bf16 %v7979_v45  ;;  %v7982_v25 = vmax.f32 %v7981_v12, 0.0  ;;  %v7991_v10 = vld [vmem:[#allocation58_spill] sm:$0xff]  ;;  %v7992_v45 = vld [vmem:[#allocation36_spill] sm:$0xff] }
 0x2af   : > { %v2073_v9 = vmul.f32 %v6722_v4, %v7977_v6  ;;  %4297 = vst.msk [vmem:[%s5559_s28 + $0x58] sm:$0xf] %vm567_vm1, %v4582_v27  ;;  %v4585_v30 = vpack.c.bf16 %v4140_v50, %v4140_v50  ;;  %1076 = vst [vmem:[#allocation2 + $0x54] sm:$0xf] %v1075_v28  ;;  %v7001_v2 = vadd.f32 %v7983_v53, %v2236_v39  ;;  %v7987_v43 = vunpack.c.l.bf16 %v7986_v56 }
 0x2b0   : > { %v6993_v13 = vmul.f32 %v6652_v54, %v7980_v15  ;;  %v6998_v37 = vpack.c.bf16 %v7982_v25, %v7982_v25  ;;  %v4583_v51 = vpack.c.bf16 %v4138_v21, %v4138_v21  ;;  %v1160_v35 = vld [vmem:[#allocation2 + $0x60] sm:$0xf]  ;;  %v7005_v38 = vadd.f32 %v7985_v29, %v7984_v63 }
 0x2b1   : > { %v6988_v34 = vadd.f32 %v2073_v9, %v1793_v31  ;;  %v2139_v23 = vld [vmem:[#allocation2 + $0x60] sm:$0xf]  ;;  %v7010_v18 = vmul.f32 %v6722_v4, %v7987_v43  ;;  %4300 = vst.msk [vmem:[%s5559_s28 + $0x64] sm:$0xf] %vm567_vm1, %v4585_v30  ;;  %v1192_v61 = vunpack.c.l.bf16 %v1160_v35  ;;  %v1489_v1 = vshrl.u32 %v1160_v35, 16  ;;  %v7989_v4 = vld [vmem:[#allocation57_spill] sm:$0xff] }
 0x2b2   : > { %v1492_v48 = vshll.u32 %v1160_v35, 16  ;;  %v7014_v49 = vld [vmem:[#allocation2 + $0x60] sm:$0xe]  ;;  %v7017_v57 = vadd.f32 %v7988_v58, %v2119_v11  ;;  %4298 = vst.msk [vmem:[%s5559_s28 + $0x5c] sm:$0xf] %vm567_vm1, %v4583_v51  ;;  %v2171_v44 = vunpack.c.l.bf16 %v2139_v23  ;;  %v2443_v0 = vshrl.u32 %v2139_v23, 16 }
 0x2b3   : > { %v2446_v59 = vshll.u32 %v2139_v23, 16  ;;  %v7021_v26 = vld [vmem:[#allocation2 + $0x60] sm:$0xe]  ;;  %v7990_v7 = vunpack.c.l.bf16 %v7989_v4  ;;  %v1491_v31 = vrot.slane %v1489_v1, 4  ;;  %v7031_v11 = vld [vmem:[%s7651_s2] ss:$0 sm:$0xff] }
 0x2b4   : > { %v3113_v55 = vld [vmem:[#allocation2 + $0x60] sm:$0xf]  ;;  %v1494_v42 = vrot.slane %v1492_v48, 5  ;;  %v7035_v50 = vadd.f32 %v7031_v11, %v7991_v10  ;;  %v2445_v6 = vrot.slane %v2443_v0, 4  ;;  %v7046_v15 = vadd.f32 %v7031_v11, %v7992_v45 }
 0x2b5   : > { %v7026_v32 = vmul.f32 %v6652_v54, %v7990_v7  ;;  %v3145_v17 = vunpack.c.l.bf16 %v3113_v55  ;;  %v2155_v27 = vld [vmem:[#allocation2 + $0xc0] sm:$0xf]  ;;  %v2448_v9 = vrot.slane %v2446_v59, 5  ;;  %v3395_v22 = vshrl.u32 %v3113_v55, 16 }
 0x2b6   : > { %v7039_v54 = vmul.f32 %v6758_v36, %v1192_v61  ;;  %v3398_v21 = vshll.u32 %v3113_v55, 16  ;;  %v7042_v28 = vld [vmem:[#allocation2 + $0x60] sm:$0xe]  ;;  %v1495_v12 = vor.u32 %v1494_v42, %v1491_v31  ;;  %v7049_v25 = vmul.f32 %v6889_v41, %v2171_v44  ;;  %v1158_v43 = vld [vmem:[#allocation2 + $0x54] sm:$0xf] }
 0x2b7   : > { %v3129_v30 = vld [vmem:[#allocation2 + $0xc0] sm:$0xf]  ;;  %v3397_v51 = vrot.slane %v3395_v22, 4  ;;  %v2635_v35 = vshrl.u32 %v2155_v27, 16  ;;  %v2449_v23 = vor.u32 %v2448_v9, %v2445_v6  ;;  %v7052_v53 = vmul.f32 %v6907_v16, %v3145_v17  ;;  %v2137_v10 = vld [vmem:[#allocation2 + $0x54] sm:$0xf] }
 0x2b8   : > { %v3400_v63 = vrot.slane %v3398_v21, 5  ;;  %v2638_v29 = vshll.u32 %v2155_v27, 16  ;;  %v7054_v56 = vld [vmem:[#allocation2 + $0xc0] sm:$0xe]  ;;  %v2187_v1 = vunpack.c.l.bf16 %v2155_v27  ;;  %v3161_v58 = vunpack.c.l.bf16 %v3129_v30 }
 0x2b9   : > { %v2637_v48 = vrot.slane %v2635_v35, 4  ;;  %v3587_v44 = vshrl.u32 %v3129_v30, 16  ;;  %v3590_v55 = vshll.u32 %v3129_v30, 16  ;;  %v7057_v4 = vld [vmem:[#allocation2 + $0xc0] sm:$0xe]  ;;  %v7059_v7 = vrot.slane %v1495_v12, 4 }
 0x2ba   : > { %v3401_v0 = vor.u32 %v3400_v63, %v3397_v51  ;;  %v2640_v59 = vrot.slane %v2638_v29, 5  ;;  %v1190_v42 = vunpack.c.l.bf16 %v1158_v43  ;;  %v1465_v17 = vshrl.u32 %v1158_v43, 16  ;;  %v7070_v12 = vld [vmem:[#allocation2 + $0x54] sm:$0xe] }
 0x2bb   : > { %v7062_v6 = vrot.slane %v2449_v23, 4  ;;  %v3589_v22 = vrot.slane %v3587_v44, 4  ;;  %v3592_v27 = vrot.slane %v3590_v55, 5  ;;  %v7065_v21 = vmul.f32 %v6889_v41, %v2187_v1  ;;  %v3111_v35 = vld [vmem:[#allocation2 + $0x54] sm:$0xf] }
 0x2bc   : > { %v2641_v9 = vor.u32 %v2640_v59, %v2637_v48  ;;  %v7068_v45 = vmul.f32 %v6907_v16, %v3161_v58  ;;  %v1467_v30 = vrot.slane %v1465_v17, 4  ;;  %v1468_v51 = vshll.u32 %v1158_v43, 16  ;;  %v7078_v55 = vld [vmem:[#allocation2 + $0x54] sm:$0xe] }
 0x2bd   : > { %7993 = vst [vmem:[#allocation64_spill] sm:$0xff] %v7065_v21  ;;  %v7072_v63 = vrot.slane %v3401_v0, 4  ;;  %v2169_v23 = vunpack.c.l.bf16 %v2137_v10  ;;  %v2419_v31 = vshrl.u32 %v2137_v10, 16  ;;  %v3593_v48 = vor.u32 %v3592_v27, %v3589_v22  ;;  %v1130_v22 = vld [vmem:[#allocation2 + $0xb4] sm:$0xf] }
 0x2be   : > { %7994 = vst [vmem:[#allocation63_spill] sm:$0xff] %v7068_v45  ;;  %v7076_v59 = vmul.f32 %v6758_v36, %v1190_v42  ;;  %v1470_v1 = vrot.slane %v1468_v51, 5  ;;  %v2422_v44 = vshll.u32 %v2137_v10, 16  ;;  %v7080_v58 = vrot.slane %v2641_v9, 4  ;;  %v7087_v10 = vld [vmem:[#allocation2 + $0x54] sm:$0xe] }
 0x2bf   : > { %v2421_v17 = vrot.slane %v2419_v31, 4  ;;  %v3143_v61 = vunpack.c.l.bf16 %v3111_v35  ;;  %v3371_v40 = vshrl.u32 %v3111_v35, 16  ;;  %v3374_v29 = vshll.u32 %v3111_v35, 16  ;;  %v8004_v45 = vld [vmem:[#allocation13_spill] sm:$0xff] }
 0x2c0   : > { %v1471_v0 = vor.u32 %v1470_v1, %v1467_v30  ;;  %v2424_v39 = vrot.slane %v2422_v44, 5  ;;  %v2206_v24 = vmul.f32 %v6889_v41, %v2169_v23  ;;  %v3078_v42 = vadd.f32 %v6993_v13, %v7001_v2  ;;  %v1141_v2 = vld [vmem:[#allocation2 + $0xc8] sm:$0x1] }
 0x2c1   : > { %v945_v9 = vshrl.u32 %v6998_v37, 16  ;;  %v7090_v27 = vrot.slane %v3593_v48, 4  ;;  %v3373_v31 = vrot.slane %v3371_v40, 4  ;;  %v3376_v43 = vrot.slane %v3374_v29, 5  ;;  %v7995_v48 = vld [vmem:[#allocation31_spill] sm:$0xff] }
 0x2c2   : > { %v2425_v51 = vor.u32 %v2424_v39, %v2421_v17  ;;  %v7093_v30 = vadd.f32 %v2206_v24, %v6988_v34  ;;  %v3180_v35 = vmul.f32 %v6907_v16, %v3143_v61  ;;  %v948_v1 = vshll.u32 %v6998_v37, 16  ;;  %v7996_v39 = vld [vmem:[#allocation56_spill] sm:$0xff] }
 0x2c3   : > { %v7096_v23 = vrot.slane %v945_v9, 7  ;;  %v7099_v44 = vrot.slane %v1471_v0, 4  ;;  %v3377_v13 = vor.u32 %v3376_v43, %v3373_v31  ;;  %v534_v20 = vmax.f32 %v7995_v48, 0.0  ;;  %v7999_v48 = vld [vmem:[#allocation10_spill] sm:$0xff] }
 0x2c4   : > { %v2785_v24 = vadd.f32 %v7996_v39, %v7017_v57  ;;  %v550_v34 = vmax.f32 %v7035_v50, 0.0  ;;  %v532_v61 = vmax.f32 %v7046_v15, 0.0  ;;  %v7108_v29 = vrot.slane %v2425_v51, 4  ;;  %v7997_v15 = vld [vmem:[#allocation59_spill] sm:$0xff] }
 0x2c5   : > { %v950_v40 = vor.u32 %v948_v1, %v7096_v23  ;;  %v7110_v37 = vadd.f32 %v3180_v35, %v3078_v42  ;;  %v7114_v43 = vadd.f32 %v7010_v18, %v7005_v38  ;;  %v4543_v17 = vpack.c.bf16 %v534_v20, %v534_v20  ;;  %v7998_v51 = vld [vmem:[#allocation55_spill] sm:$0xff] }
 0x2c6   : > { %v4559_v31 = vpack.c.bf16 %v550_v34, %v550_v34  ;;  %v4541_v57 = vpack.c.bf16 %v532_v61, %v532_v61  ;;  %v7119_v1 = vrot.slane %v3377_v13, 4  ;;  %v2770_v42 = vadd.f32 %v7997_v15, %v6875_v33  ;;  %v8001_v34 = vld [vmem:[#allocation61_spill] sm:$0xff]  ;;  %v1085_v33 = vld [vmem:[#allocation2 + $0x68] sm:$0x1] }
 0x2c7   : > { %v1131_v9 = vsel %vm5082_vm12, %v950_v40, %v1130_v22  ;;  %v834_v50 = vshrl.u32 %v4543_v17, 16  ;;  %v508_v35 = vadd.f32 %v7031_v11, %v7998_v51  ;;  %v7126_v38 = vadd.f32 %v7026_v32, %v2785_v24  ;;  %v8002_v61 = vld [vmem:[#allocation29_spill] sm:$0xff] }
 0x2c8   : > { %1132 = vst [vmem:[#allocation2 + $0xb4] sm:$0xf] %v1131_v9  ;;  %v970_v20 = vshrl.u32 %v4559_v31, 16  ;;  %v817_v18 = vshrl.u32 %v4541_v57, 16  ;;  %v7130_v22 = vadd.f32 %v8000_v5, %v7999_v48  ;;  %v837_v13 = vshll.u32 %v4543_v17, 16 }
 0x2c9   : > { %v836_v40 = vrot.slane %v834_v50, 7  ;;  %v548_v39 = vmax.f32 %v508_v35, 0.0  ;;  %v7134_v9 = vadd.f32 %v8002_v61, %v8001_v34  ;;  %v973_v0 = vshll.u32 %v4559_v31, 16  ;;  %v8005_v50 = vld [vmem:[#allocation51_spill] sm:$0xff]  ;;  %v7141_v61 = vld [vmem:[#allocation2 + $0xcc] sm:$0xf] }
 0x2ca   : > { %v972_v15 = vrot.slane %v970_v20, 7  ;;  %v819_v11 = vrot.slane %v817_v18, 7  ;;  %v820_v51 = vshll.u32 %v4541_v57, 16  ;;  %v7137_v21 = vadd.f32 %v8004_v45, %v2770_v42  ;;  %8006 = vst [vmem:[#allocation27_spill] sm:$0xff] %v7141_v61 }
 0x2cb   : > { %8003 = vst [vmem:[#allocation38_spill] sm:$0xff] %v7134_v9  ;;  %v839_v32 = vor.u32 %v837_v13, %v836_v40  ;;  %v841_v24 = vrot.slane %v836_v40, 4  ;;  %v2786_v17 = vadd.f32 %v8005_v50, %v6970_v8  ;;  %v8007_v31 = vrot.slane %v6938_v47, 4 }
 0x2cc   : > { %v975_v35 = vor.u32 %v973_v0, %v972_v15  ;;  %v977_v48 = vrot.slane %v972_v15, 4  ;;  %v822_v5 = vor.u32 %v820_v51, %v819_v11  ;;  %v824_v34 = vrot.slane %v819_v11, 4  ;;  %v7165_v51 = vld [vmem:[#allocation2 + $0xd0] sm:$0xf] }
 0x2cd   : > { %v840_v57 = vsel %vm5111_vm13, %v8007_v31, %v839_v32  ;;  %v1086_v40 = vsel %vm5118_vm14, %v841_v24, %v1085_v33  ;;  %v7149_v13 = vpack.c.bf16 %v548_v39, %v548_v39  ;;  %v3163_v45 = vunpack.c.l.bf16 %v7141_v61  ;;  %8012 = vst [vmem:[#allocation33_spill] sm:$0xff] %v7165_v51 }
 0x2ce   : > { %1084 = vst.msk [vmem:[#allocation2 + $0x64] sm:$0xf] %vm567_vm1, %v840_v57  ;;  %1087 = vst [vmem:[#allocation2 + $0x68] sm:$0x1] %v1086_v40  ;;  %v8010_v0 = vrot.slane %v6951_v62, 4  ;;  %v1142_v15 = vsel %vm5118_vm14, %v977_v48, %v1141_v2  ;;  %v8011_v11 = vrot.slane %v6961_v19, 4  ;;  %v1079_v33 = vsel %vm5118_vm14, %v824_v34, %v1078_v14 }
 0x2cf   : > { %v1174_v42 = vld [vmem:[#allocation2 + $0xb4] sm:$0xf]  ;;  %1143 = vst [vmem:[#allocation2 + $0xc8] sm:$0x1] %v1142_v15  ;;  %1080 = vst [vmem:[#allocation2 + $0x5c] sm:$0x1] %v1079_v33 }
 0x2d0   : > { %v2153_v8 = vld [vmem:[#allocation2 + $0xb4] sm:$0xf]  ;;  %v976_v47 = vsel %vm5111_vm13, %v8010_v0, %v975_v35  ;;  %v823_v39 = vsel %vm5111_vm13, %v8011_v11, %v822_v5  ;;  %v1657_v32 = vshrl.u32 %v1174_v42, 16  ;;  %v1660_v24 = vshll.u32 %v1174_v42, 16  ;;  %v8013_v62 = vld [vmem:[#allocation54_spill] sm:$0xff] }
 0x2d1   : > { %1140 = vst.msk [vmem:[#allocation2 + $0xc4] sm:$0xf] %vm567_vm1, %v976_v47  ;;  %1077 = vst.msk [vmem:[#allocation2 + $0x58] sm:$0xf] %vm567_vm1, %v823_v39  ;;  %v7170_v2 = vadd.f32 %v8013_v62, %v2786_v17  ;;  %v1206_v50 = vunpack.c.l.bf16 %v1174_v42  ;;  %v7173_v35 = vld [vmem:[#allocation2 + $0xb4] sm:$0xe]  ;;  %v2185_v48 = vunpack.c.l.bf16 %v2153_v8 }
 0x2d2   : > { %8015 = vst [vmem:[#allocation32_spill] sm:$0xff] %v7173_v35  ;;  %v2611_v14 = vshrl.u32 %v2153_v8, 16  ;;  %v2614_v5 = vshll.u32 %v2153_v8, 16  ;;  %v3127_v34 = vld [vmem:[#allocation2 + $0xb4] sm:$0xf]  ;;  %v1659_v31 = vrot.slane %v1657_v32, 4 }
 0x2d3   : > { %8014 = vst [vmem:[#allocation16_spill] sm:$0xff] %v7170_v2  ;;  %v1662_v57 = vrot.slane %v1660_v24, 5  ;;  %v7175_v40 = vld [vmem:[#allocation2 + $0xb4] sm:$0xe]  ;;  %v3159_v0 = vunpack.c.l.bf16 %v3127_v34  ;;  %v953_v47 = vshrl.u32 %v7149_v13, 16  ;;  %v3563_v17 = vshrl.u32 %v3127_v34, 16 }
 0x2d4   : > { %8016 = vst [vmem:[#allocation30_spill] sm:$0xff] %v7175_v40  ;;  %v2613_v15 = vrot.slane %v2611_v14, 4  ;;  %v2616_v11 = vrot.slane %v2614_v5, 5  ;;  %v7178_v39 = vld [vmem:[#allocation2 + $0xb4] sm:$0xe]  ;;  %v2222_v8 = vmul.f32 %v6889_v41, %v2185_v48  ;;  %v3566_v19 = vshll.u32 %v3127_v34, 16 }
 0x2d5   : > { %8017 = vst [vmem:[#allocation26_spill] sm:$0xff] %v7178_v39  ;;  %v1663_v33 = vor.u32 %v1662_v57, %v1659_v31  ;;  %v7184_v32 = vmul.f32 %v6758_v36, %v1206_v50  ;;  %v3196_v2 = vmul.f32 %v6907_v16, %v3159_v0  ;;  %v3565_v14 = vrot.slane %v3563_v17, 4  ;;  %v1161_v57 = vld [vmem:[#allocation2 + $0x64] sm:$0xf]  ;;  %v1285_v62 = vld [vmem:[#allocation2 + $0x68] sm:$0x1] }
 0x2d6   : > { %v7189_v5 = vadd.f32 %v2222_v8, %v7114_v43  ;;  %v2617_v9 = vor.u32 %v2616_v11, %v2613_v15  ;;  %v3568_v51 = vrot.slane %v3566_v19, 5  ;;  %v1193_v42 = vunpack.c.l.bf16 %v1161_v57  ;;  %v2140_v8 = vld [vmem:[#allocation2 + $0x64] sm:$0xf] }
 0x2d7   : > { %8018 = vst [vmem:[#allocation12_spill] sm:$0xff] %v7184_v32  ;;  %v1498_v48 = vshll.u32 %v1161_v57, 16  ;;  %v1502_v34 = vshrl.u32 %v1161_v57, 16  ;;  %v7192_v35 = vrot.slane %v953_v47, 7  ;;  %v7194_v50 = vrot.slane %v1663_v33, 4  ;;  %v8032_v40 = vld [vmem:[#allocation23_spill] sm:$0xff] }
 0x2d8   : > { %8019 = vst [vmem:[#allocation60_spill] sm:$0xff] %v7189_v5  ;;  %v7197_v24 = vadd.f32 %v3196_v2, %v7126_v38  ;;  %v1938_v0 = vrot.slane %v1161_v57, 5  ;;  %v7200_v43 = vmul.f32 %v6907_v16, %v3163_v45  ;;  %v3569_v15 = vor.u32 %v3568_v51, %v3565_v14  ;;  %v2265_v57 = vld [vmem:[#allocation2 + $0x68] sm:$0x1] }
 0x2d9   : > { %8020 = vst [vmem:[#allocation28_spill] sm:$0xff] %v7194_v50  ;;  %v1500_v19 = vrot.slane %v1498_v48, 5  ;;  %v1504_v11 = vrot.slane %v1502_v34, 4  ;;  %v1508_v17 = vshll.u32 %v1285_v62, 16  ;;  %v7202_v31 = vrot.slane %v2617_v9, 4  ;;  %v8038_v32 = vld [vmem:[#allocation44_spill] sm:$0xff] }
 0x2da   : > { %8021 = vst [vmem:[#allocation7_spill] sm:$0xff] %v7197_v24  ;;  %8022 = vst [vmem:[#allocation62_spill] sm:$0xff] %v7200_v43  ;;  %v8024_v39 = vrot.slane %v7014_v49, 9  ;;  %v1940_v33 = vrot.slane %v1938_v0, 4  ;;  %v1941_v5 = vrot.slane %v1285_v62, 5  ;;  %v1230_v38 = vmul.f32 %v6758_v36, %v1193_v42 }
 0x2db   : > { %8023 = vst [vmem:[#allocation39_spill] sm:$0xff] %v7202_v31  ;;  %v1501_v45 = vsel %vm5023_vm5, %v7059_v7, %v1500_v19  ;;  %v1505_v51 = vor.u32 %v1504_v11, %v1500_v19  ;;  %v2452_v48 = vshll.u32 %v2140_v8, 16  ;;  %v2456_v49 = vshrl.u32 %v2140_v8, 16 }
 0x2dc   : > { %v1939_v47 = vsel %vm5029_vm8, %v8024_v39, %v1938_v0  ;;  %v1728_v14 = vunpack.c.l.bf16 %v1501_v45  ;;  %v1942_v9 = vsel %vm5029_vm8, %v1940_v33, %v1941_v5  ;;  %v7214_v34 = vrot.slane %v3569_v15, 4  ;;  %v7222_v5 = vld [vmem:[%s7652_s3 + $0x2] ss:$0 sm:$0xff] }
 0x2dd   : > { %v2040_v2 = vunpack.c.l.bf16 %v1939_v47  ;;  %v1506_v39 = vrot.slane %v1505_v51, 4  ;;  %v1510_v0 = vrot.slane %v1508_v17, 5  ;;  %v2172_v62 = vunpack.c.l.bf16 %v2140_v8  ;;  %v3114_v47 = vld [vmem:[#allocation2 + $0x64] sm:$0xf] }
 0x2de   : > { %8025 = vst [vmem:[#allocation46_spill] sm:$0xff] %v7214_v34  ;;  %v1765_v36 = vmul.f32 %v6779_v46, %v1728_v14  ;;  %v2454_v42 = vrot.slane %v2452_v48, 5  ;;  %v2458_v24 = vrot.slane %v2456_v49, 4  ;;  %v2906_v43 = vrot.slane %v2140_v8, 5 }
 0x2df   : > { %v1511_v7 = vsel %vm5023_vm5, %v1506_v39, %v1510_v0  ;;  %v2041_v19 = vunpack.c.l.bf16 %v1942_v9  ;;  %v2077_v15 = vmul.f32 %v7222_v5, %v2040_v2  ;;  %v2462_v11 = vshll.u32 %v2265_v57, 16 }
 0x2e0   : > { %v1729_v17 = vunpack.c.l.bf16 %v1511_v7  ;;  %v1797_v33 = vadd.f32 %v1765_v36, %v7039_v54  ;;  %v2455_v8 = vsel %vm5023_vm5, %v7062_v6, %v2454_v42  ;;  %v2459_v45 = vor.u32 %v2458_v24, %v2454_v42 }
 0x2e1   : > { %v2704_v51 = vunpack.c.l.bf16 %v2455_v8  ;;  %v8026_v14 = vrot.slane %v7021_v26, 9  ;;  %v2908_v48 = vrot.slane %v2906_v43, 4  ;;  %v2909_v49 = vrot.slane %v2265_v57, 5  ;;  %v8027_v8 = vld [vmem:[#allocation21_spill] sm:$0xff]  ;;  %v3240_v57 = vld [vmem:[#allocation2 + $0x68] sm:$0x1] }
 0x2e2   : > { %v1766_v2 = vmul.f32 %v6779_v46, %v1729_v17  ;;  %v2109_v39 = vadd.f32 %v2077_v15, %v1797_v33  ;;  %v2460_v0 = vrot.slane %v2459_v45, 4  ;;  %v3146_v7 = vunpack.c.l.bf16 %v3114_v47  ;;  %v8028_v33 = vld [vmem:[#allocation11_spill] sm:$0xff] }
 0x2e3   : > { %v2907_v9 = vsel %vm5029_vm8, %v8026_v14, %v2906_v43  ;;  %v7235_v54 = vmul.f32 %v6889_v41, %v2172_v62  ;;  %v2464_v36 = vrot.slane %v2462_v11, 5  ;;  %v2910_v6 = vsel %vm5029_vm8, %v2908_v48, %v2909_v49  ;;  %v7246_v62 = vld [vmem:[%s7652_s3 + $0x4] ss:$0 sm:$0xff] }
 0x2e4   : > { %v3404_v24 = vshll.u32 %v3114_v47, 16  ;;  %v1798_v42 = vadd.f32 %v1766_v2, %v1230_v38  ;;  %v2078_v26 = vmul.f32 %v7222_v5, %v2041_v19  ;;  %v2242_v14 = vadd.f32 %v8027_v8, %v2109_v39  ;;  %v8030_v8 = vld [vmem:[#allocation25_spill] sm:$0xff] }
 0x2e5   : > { %v3013_v43 = vunpack.c.l.bf16 %v2907_v9  ;;  %v2465_v46 = vsel %vm5023_vm5, %v2460_v0, %v2464_v36  ;;  %v7249_v15 = vmul.f32 %v7246_v62, %v2704_v51  ;;  %v3408_v17 = vshrl.u32 %v3114_v47, 16  ;;  %v8029_v0 = vld [vmem:[#allocation17_spill] sm:$0xff] }
 0x2e6   : > { %v3406_v11 = vrot.slane %v3404_v24, 5  ;;  %v2110_v38 = vadd.f32 %v2078_v26, %v1798_v42  ;;  %v2775_v19 = vadd.f32 %v8028_v33, %v2242_v14  ;;  %v3014_v45 = vunpack.c.l.bf16 %v2910_v6  ;;  %v2156_v42 = vld [vmem:[#allocation2 + $0xc4] sm:$0xf] }
 0x2e7   : > { %v7253_v9 = vmul.f32 %v6907_v16, %v3146_v7  ;;  %v3410_v49 = vrot.slane %v3408_v17, 4  ;;  %v3414_v2 = vshll.u32 %v3240_v57, 16  ;;  %v3875_v39 = vrot.slane %v3114_v47, 5  ;;  %v7268_v47 = vld [vmem:[%s7652_s3 + $0x5] ss:$0 sm:$0xff] }
 0x2e8   : > { %v3407_v48 = vsel %vm5023_vm5, %v7072_v63, %v3406_v11  ;;  %v2243_v36 = vadd.f32 %v8029_v0, %v2110_v38  ;;  %v2705_v51 = vunpack.c.l.bf16 %v2465_v46  ;;  %v3084_v24 = vadd.f32 %v8030_v8, %v2775_v19  ;;  %v8035_v0 = vld [vmem:[#allocation41_spill] sm:$0xff]  ;;  %v2273_v8 = vld [vmem:[#allocation2 + $0xc8] sm:$0x1] }
 0x2e9   : > { %v3678_v34 = vunpack.c.l.bf16 %v3407_v48  ;;  %v3411_v26 = vor.u32 %v3410_v49, %v3406_v11  ;;  %v8031_v6 = vrot.slane %v7042_v28, 9  ;;  %v3877_v14 = vrot.slane %v3875_v39, 4  ;;  %v8033_v11 = vld [vmem:[#allocation15_spill] sm:$0xff] }
 0x2ea   : > { %v3878_v33 = vrot.slane %v3240_v57, 5  ;;  %v2776_v63 = vadd.f32 %v8032_v40, %v2243_v36  ;;  %v7271_v46 = vmul.f32 %v7268_v47, %v3013_v43  ;;  %v7274_v17 = vmul.f32 %v7268_v47, %v3014_v45  ;;  %v8034_v49 = vld [vmem:[#allocation19_spill] sm:$0xff] }
 0x2eb   : > { %v3876_v7 = vsel %vm5029_vm8, %v8031_v6, %v3875_v39  ;;  %v3218_v28 = vadd.f32 %v8033_v11, %v3084_v24  ;;  %v3412_v38 = vrot.slane %v3411_v26, 4  ;;  %v3416_v19 = vrot.slane %v3414_v2, 5  ;;  %v7289_v2 = vld [vmem:[%s7652_s3 + $0x7] ss:$0 sm:$0xff]  ;;  %v8036_v6 = vld [vmem:[#allocation40_spill] sm:$0xff] }
 0x2ec   : > { %v3879_v57 = vsel %vm5029_vm8, %v3877_v14, %v3878_v33  ;;  %v2644_v48 = vshll.u32 %v2156_v42, 16  ;;  %v7280_v40 = vmul.f32 %v7246_v62, %v2705_v51  ;;  %v3085_v39 = vadd.f32 %v8034_v49, %v2776_v63  ;;  %v8037_v63 = vld [vmem:[#allocation42_spill] sm:$0xff] }
 0x2ed   : > { %v3751_v36 = vadd.f32 %v8035_v0, %v3218_v28  ;;  %v3987_v43 = vunpack.c.l.bf16 %v3876_v7  ;;  %v3417_v45 = vsel %vm5023_vm5, %v3412_v38, %v3416_v19  ;;  %v7292_v24 = vmul.f32 %v7289_v2, %v3678_v34  ;;  %v7303_v34 = vld [vmem:[%s7652_s3 + $0x8] ss:$0 sm:$0xff] }
 0x2ee   : > { %v2646_v26 = vrot.slane %v2644_v48, 5  ;;  %v2648_v51 = vshrl.u32 %v2156_v42, 16  ;;  %v3219_v14 = vadd.f32 %v8036_v6, %v3085_v39  ;;  %v3988_v33 = vunpack.c.l.bf16 %v3879_v57  ;;  %v3130_v39 = vld [vmem:[#allocation2 + $0xc4] sm:$0xf] }
 0x2ef   : > { %v4060_v11 = vadd.f32 %v8037_v63, %v3751_v36  ;;  %v2188_v7 = vunpack.c.l.bf16 %v2156_v42  ;;  %v2654_v19 = vshll.u32 %v2273_v8, 16  ;;  %v2962_v49 = vrot.slane %v2156_v42, 5 }
 0x2f0   : > { %v2647_v28 = vsel %vm5023_vm5, %v7080_v58, %v2646_v26  ;;  %v2650_v38 = vrot.slane %v2648_v51, 4  ;;  %v3679_v0 = vunpack.c.l.bf16 %v3417_v45  ;;  %v3752_v31 = vadd.f32 %v8038_v32, %v3219_v14  ;;  %v8040_v32 = vld [vmem:[#allocation43_spill] sm:$0xff] }
 0x2f1   : > { %v7306_v57 = vmul.f32 %v7303_v34, %v3987_v43  ;;  %v4099_v48 = vadd.f32 %v6845_v52, %v4060_v11  ;;  %v2720_v6 = vunpack.c.l.bf16 %v2647_v28  ;;  %v8039_v58 = vrot.slane %v7054_v56, 9 }
 0x2f2   : > { %v2651_v36 = vor.u32 %v2650_v38, %v2646_v26  ;;  %v2964_v45 = vrot.slane %v2962_v49, 4  ;;  %v4061_v51 = vadd.f32 %v8040_v32, %v3752_v31  ;;  %v7315_v63 = vmul.f32 %v6889_v41, %v2188_v7  ;;  %v3248_v38 = vld [vmem:[#allocation2 + $0xc8] sm:$0x1]  ;;  %v1159_v32 = vld [vmem:[#allocation2 + $0x58] sm:$0xf] }
 0x2f3   : > { %v2963_v42 = vsel %vm5029_vm8, %v8039_v58, %v2962_v49  ;;  %v4131_v14 = vmax.f32 %v4099_v48, 0.0  ;;  %v2965_v43 = vrot.slane %v2273_v8, 5  ;;  %v2656_v61 = vrot.slane %v2654_v19, 5 }
 0x2f4   : > { %8041 = vst [vmem:[#allocation52_spill] sm:$0xff] %v7315_v63  ;;  %v2652_v50 = vrot.slane %v2651_v36, 4  ;;  %v3029_v11 = vunpack.c.l.bf16 %v2963_v42  ;;  %v3596_v18 = vshll.u32 %v3130_v39, 16  ;;  %v4100_v26 = vadd.f32 %v6845_v52, %v4061_v51 }
 0x2f5   : > { %v4576_v28 = vpack.c.bf16 %v4131_v14, %v4131_v14  ;;  %v2966_v56 = vsel %vm5029_vm8, %v2964_v45, %v2965_v43  ;;  %v3600_v49 = vshrl.u32 %v3130_v39, 16  ;;  %v7321_v31 = vmul.f32 %v7289_v2, %v3679_v0 }
 0x2f6   : > { %v7324_v7 = vmul.f32 %v7303_v34, %v3988_v33  ;;  %v2657_v8 = vsel %vm5023_vm5, %v2652_v50, %v2656_v61  ;;  %v7329_v19 = vmul.f32 %v7246_v62, %v2720_v6  ;;  %v4132_v48 = vmax.f32 %v4100_v26, 0.0  ;;  %v1284_v6 = vld [vmem:[#allocation2 + $0x5c] sm:$0x1] }
 0x2f7   : > { %4291 = vst.msk [vmem:[%s5559_s28 + $0x40] sm:$0xf] %vm567_vm1, %v4576_v28  ;;  %v3162_v52 = vunpack.c.l.bf16 %v3130_v39  ;;  %v3598_v36 = vrot.slane %v3596_v18, 5  ;;  %v3602_v58 = vrot.slane %v3600_v49, 4  ;;  %v3030_v42 = vunpack.c.l.bf16 %v2966_v56 }
 0x2f8   : > { %8042 = vst [vmem:[#allocation65_spill] sm:$0xff] %v7329_v19  ;;  %v7334_v0 = vmul.f32 %v7268_v47, %v3029_v11  ;;  %v3606_v45 = vshll.u32 %v3248_v38, 16  ;;  %v3931_v33 = vrot.slane %v3130_v39, 5  ;;  %v4577_v51 = vpack.c.bf16 %v4132_v48, %v4132_v48 }
 0x2f9   : > { %v2721_v14 = vunpack.c.l.bf16 %v2657_v8  ;;  %v3599_v61 = vsel %vm5023_vm5, %v7090_v27, %v3598_v36  ;;  %v3603_v50 = vor.u32 %v3602_v58, %v3598_v36  ;;  %v8044_v18 = vrot.slane %v7057_v4, 9  ;;  %v2138_v58 = vld [vmem:[#allocation2 + $0x58] sm:$0xf] }
 0x2fa   : > { %8043 = vst [vmem:[#allocation6_spill] sm:$0xff] %v7334_v0  ;;  %v3694_v43 = vunpack.c.l.bf16 %v3599_v61  ;;  %v3933_v11 = vrot.slane %v3931_v33, 4  ;;  %v3934_v28 = vrot.slane %v3248_v38, 5  ;;  %4292 = vst.msk [vmem:[%s5559_s28 + $0x44] sm:$0xf] %vm567_vm1, %v4577_v51  ;;  %v7348_v39 = vmul.f32 %v6907_v16, %v3162_v52 }
 0x2fb   : > { %v7343_v26 = vsel %vm5029_vm8, %v8044_v18, %v3931_v33  ;;  %v7350_v56 = vrot.slane %v3603_v50, 4  ;;  %v1191_v49 = vunpack.c.l.bf16 %v1159_v32  ;;  %v1474_v27 = vshll.u32 %v1159_v32, 16 }
 0x2fc   : > { %8045 = vst [vmem:[#allocation37_spill] sm:$0xff] %v7348_v39  ;;  %v7352_v8 = vrot.slane %v3606_v45, 5  ;;  %v7356_v4 = vsel %vm5029_vm8, %v3933_v11, %v3934_v28  ;;  %v1478_v48 = vshrl.u32 %v1159_v32, 16  ;;  %v1484_v36 = vshll.u32 %v1284_v6, 16  ;;  %v2264_v39 = vld [vmem:[#allocation2 + $0x5c] sm:$0x1] }
 0x2fd   : > { %v7359_v38 = vmul.f32 %v7246_v62, %v2721_v14  ;;  %v7362_v33 = vmul.f32 %v7268_v47, %v3030_v42  ;;  %v7365_v52 = vmul.f32 %v7289_v2, %v3694_v43  ;;  %v1476_v50 = vrot.slane %v1474_v27, 5  ;;  %v7376_v14 = vld [vmem:[%s7652_s3] ss:$0 sm:$0xff] }
 0x2fe   : > { %v1480_v18 = vrot.slane %v1478_v48, 4  ;;  %v1228_v42 = vmul.f32 %v7376_v14, %v1191_v49  ;;  %v1486_v43 = vrot.slane %v1484_v36, 5  ;;  %v1931_v11 = vrot.slane %v1159_v32, 5 }
 0x2ff   : > { %8046 = vst [vmem:[#allocation49_spill] sm:$0xff] %v7359_v38  ;;  %8047 = vst [vmem:[#allocation53_spill] sm:$0xff] %v7362_v33  ;;  %v2170_v28 = vunpack.c.l.bf16 %v2138_v58  ;;  %v1477_v51 = vsel %vm5023_vm5, %v7099_v44, %v1476_v50  ;;  %v1934_v45 = vrot.slane %v1284_v6, 5  ;;  %v2428_v61 = vshll.u32 %v2138_v58, 16  ;;  %v7390_v44 = vld [vmem:[%s7652_s3 + $0x1] ss:$0 sm:$0xff] }
 0x300   : > { %8048 = vst [vmem:[#allocation47_spill] sm:$0xff] %v7365_v52  ;;  %v1481_v52 = vor.u32 %v1480_v18, %v1476_v50  ;;  %v1726_v27 = vunpack.c.l.bf16 %v1477_v51  ;;  %v8049_v48 = vrot.slane %v7070_v12, 9  ;;  %v1933_v38 = vrot.slane %v1931_v11, 4  ;;  %v3112_v18 = vld [vmem:[#allocation2 + $0x58] sm:$0xf] }
 0x301   : > { %v2207_v49 = vmul.f32 %v6889_v41, %v2170_v28  ;;  %v2430_v0 = vrot.slane %v2428_v61, 5  ;;  %v2432_v63 = vshrl.u32 %v2138_v58, 16  ;;  %v2438_v50 = vshll.u32 %v2264_v39, 16 }
 0x302   : > { %v1932_v33 = vsel %vm5029_vm8, %v8049_v48, %v1931_v11  ;;  %v1482_v36 = vrot.slane %v1481_v52, 4  ;;  %v1763_v6 = vmul.f32 %v7390_v44, %v1726_v27  ;;  %v1935_v12 = vsel %vm5029_vm8, %v1933_v38, %v1934_v45 }
 0x303   : > { %v2038_v32 = vunpack.c.l.bf16 %v1932_v33  ;;  %v2239_v51 = vadd.f32 %v2207_v49, %v7130_v22  ;;  %v2039_v52 = vunpack.c.l.bf16 %v1935_v12  ;;  %v2431_v61 = vsel %vm5023_vm5, %v7108_v29, %v2430_v0 }
 0x304   : > { %v1487_v41 = vsel %vm5023_vm5, %v1482_v36, %v1486_v43  ;;  %v1795_v28 = vadd.f32 %v1763_v6, %v7076_v59  ;;  %v2434_v27 = vrot.slane %v2432_v63, 4  ;;  %v2440_v48 = vrot.slane %v2438_v50, 5 }
 0x305   : > { %v2075_v33 = vmul.f32 %v7222_v5, %v2038_v32  ;;  %v1727_v11 = vunpack.c.l.bf16 %v1487_v41  ;;  %v2076_v38 = vmul.f32 %v7222_v5, %v2039_v52  ;;  %v2702_v22 = vunpack.c.l.bf16 %v2431_v61 }
 0x306   : > { %v2899_v45 = vrot.slane %v2138_v58, 5  ;;  %v2902_v49 = vrot.slane %v2264_v39, 5  ;;  %v2435_v12 = vor.u32 %v2434_v27, %v2430_v0  ;;  %v3144_v32 = vunpack.c.l.bf16 %v3112_v18 }
 0x307   : > { %v1764_v43 = vmul.f32 %v7390_v44, %v1727_v11  ;;  %v2107_v36 = vadd.f32 %v2075_v33, %v1795_v28  ;;  %v2739_v19 = vmul.f32 %v7246_v62, %v2702_v22  ;;  %v8050_v29 = vrot.slane %v7078_v55, 9 }
 0x308   : > { %v2901_v59 = vrot.slane %v2899_v45, 4  ;;  %v3380_v63 = vshll.u32 %v3112_v18, 16  ;;  %v2436_v52 = vrot.slane %v2435_v12, 4  ;;  %v3181_v33 = vmul.f32 %v6907_v16, %v3144_v32  ;;  %v8051_v32 = vld [vmem:[#allocation22_spill] sm:$0xff] }
 0x309   : > { %v2900_v41 = vsel %vm5029_vm8, %v8050_v29, %v2899_v45  ;;  %v1796_v6 = vadd.f32 %v1764_v43, %v1228_v42  ;;  %v2240_v50 = vadd.f32 %v7049_v25, %v2107_v36  ;;  %v2771_v39 = vadd.f32 %v2739_v19, %v7093_v30  ;;  %v3239_v42 = vld [vmem:[#allocation2 + $0x5c] sm:$0x1] }
 0x30a   : > { %v3011_v58 = vunpack.c.l.bf16 %v2900_v41  ;;  %v2903_v0 = vsel %vm5029_vm8, %v2901_v59, %v2902_v49  ;;  %v3382_v61 = vrot.slane %v3380_v63, 5  ;;  %v2441_v55 = vsel %vm5023_vm5, %v2436_v52, %v2440_v48 }
 0x30b   : > { %v2108_v11 = vadd.f32 %v2076_v38, %v1796_v6  ;;  %v2773_v28 = vadd.f32 %v7249_v15, %v2240_v50  ;;  %v3012_v27 = vunpack.c.l.bf16 %v2903_v0  ;;  %v2703_v22 = vunpack.c.l.bf16 %v2441_v55  ;;  %v8052_v50 = vld [vmem:[#allocation18_spill] sm:$0xff] }
 0x30c   : > { %v3048_v25 = vmul.f32 %v7268_v47, %v3011_v58  ;;  %v3213_v45 = vadd.f32 %v3181_v33, %v7137_v21  ;;  %v3383_v30 = vsel %vm5023_vm5, %v7119_v1, %v3382_v61  ;;  %v3384_v48 = vshrl.u32 %v3112_v18, 16 }
 0x30d   : > { %v2241_v16 = vadd.f32 %v7235_v54, %v2108_v11  ;;  %v3049_v19 = vmul.f32 %v7268_v47, %v3012_v27  ;;  %v3082_v38 = vadd.f32 %v7271_v46, %v2773_v28  ;;  %v2740_v15 = vmul.f32 %v7246_v62, %v2703_v22  ;;  %v8055_v27 = vld [vmem:[#allocation24_spill] sm:$0xff] }
 0x30e   : > { %v3080_v49 = vadd.f32 %v3048_v25, %v2771_v39  ;;  %v3390_v43 = vshll.u32 %v3239_v42, 16  ;;  %v3676_v36 = vunpack.c.l.bf16 %v3383_v30  ;;  %v3386_v29 = vrot.slane %v3384_v48, 4 }
 0x30f   : > { %v2774_v12 = vadd.f32 %v7280_v40, %v2241_v16  ;;  %v3216_v21 = vadd.f32 %v8051_v32, %v3082_v38  ;;  %v3868_v41 = vrot.slane %v3112_v18, 5  ;;  %v2772_v59 = vadd.f32 %v2740_v15, %v2239_v51  ;;  %v7456_v38 = vld [vmem:[%s7653_s4] ss:$0 sm:$0xff]  ;;  %v8058_v15 = vld [vmem:[#allocation20_spill] sm:$0xff] }
 0x310   : > { %v3214_v1 = vadd.f32 %v7052_v53, %v3080_v49  ;;  %v3392_v54 = vrot.slane %v3390_v43, 5  ;;  %v3713_v63 = vmul.f32 %v7289_v2, %v3676_v36  ;;  %v3387_v6 = vor.u32 %v3386_v29, %v3382_v61  ;;  %v8054_v53 = vld [vmem:[#allocation34_spill] sm:$0xff] }
 0x311   : > { %v3083_v46 = vadd.f32 %v7274_v17, %v2774_v12  ;;  %v3749_v52 = vadd.f32 %v8052_v50, %v3216_v21  ;;  %v8053_v58 = vrot.slane %v7087_v10, 9  ;;  %v3081_v39 = vadd.f32 %v3049_v19, %v2772_v59  ;;  %v1134_v59 = vld [vmem:[#allocation2 + $0xbc] sm:$0x1] }
 0x312   : > { %v3745_v0 = vadd.f32 %v3713_v63, %v7110_v37  ;;  %v3747_v51 = vadd.f32 %v7292_v24, %v3214_v1  ;;  %v3870_v18 = vrot.slane %v3868_v41, 4  ;;  %v3388_v11 = vrot.slane %v3387_v6, 4  ;;  %v8057_v24 = vld [vmem:[#allocation45_spill] sm:$0xff] }
 0x313   : > { %v3869_v40 = vsel %vm5029_vm8, %v8053_v58, %v3868_v41  ;;  %v3217_v33 = vadd.f32 %v8054_v53, %v3083_v46  ;;  %v3871_v55 = vrot.slane %v3239_v42, 5  ;;  %v3215_v17 = vadd.f32 %v7253_v9, %v3081_v39 }
 0x314   : > { %v3985_v28 = vunpack.c.l.bf16 %v3869_v40  ;;  %v4056_v61 = vadd.f32 %v7306_v57, %v3747_v51  ;;  %v4058_v10 = vadd.f32 %v8055_v27, %v3749_v52  ;;  %v8056_v22 = vshll.u32 %v7149_v13, 16 }
 0x315   : > { %v3393_v37 = vsel %vm5023_vm5, %v3388_v11, %v3392_v54  ;;  %v3750_v30 = vadd.f32 %v8057_v24, %v3217_v33  ;;  %v3872_v16 = vsel %vm5029_vm8, %v3870_v18, %v3871_v55  ;;  %v3748_v9 = vadd.f32 %v7321_v31, %v3215_v17 }
 0x316   : > { %v958_v25 = vor.u32 %v8056_v22, %v7192_v35  ;;  %v4022_v42 = vmul.f32 %v7303_v34, %v3985_v28  ;;  %v3677_v19 = vunpack.c.l.bf16 %v3393_v37  ;;  %v3986_v57 = vunpack.c.l.bf16 %v3872_v16 }
 0x317   : > { %v4095_v13 = vadd.f32 %v7456_v38, %v4056_v61  ;;  %v4059_v49 = vadd.f32 %v8058_v15, %v3750_v30  ;;  %v4097_v43 = vadd.f32 %v7456_v38, %v4058_v10  ;;  %v8059_v36 = vrot.slane %v7096_v23, 4  ;;  %v8065_v61 = vld [vmem:[#allocation33_spill] sm:$0xff] }
 0x318   : > { %v4054_v48 = vadd.f32 %v4022_v42, %v3745_v0  ;;  %v8060_v31 = vsel %vm5023_vm5, %v7350_v56, %v7352_v8  ;;  %v3714_v21 = vmul.f32 %v7289_v2, %v3677_v19  ;;  %v4057_v29 = vadd.f32 %v7324_v7, %v3748_v9 }
 0x319   : > { %v959_v12 = vsel %vm5111_vm13, %v8059_v36, %v958_v25  ;;  %v3695_v32 = vunpack.c.l.bf16 %v8060_v31  ;;  %v4127_v41 = vmax.f32 %v4095_v13, 0.0  ;;  %v4098_v20 = vadd.f32 %v7456_v38, %v4059_v49  ;;  %v7509_v25 = vld [vmem:[%s7652_s3 + $0x6] ss:$0 sm:$0xff] }
 0x31a   : > { %1133 = vst.msk [vmem:[#allocation2 + $0xb8] sm:$0xf] %vm567_vm1, %v959_v12  ;;  %v4093_v23 = vadd.f32 %v7456_v38, %v4054_v48  ;;  %v4129_v1 = vmax.f32 %v4097_v43, 0.0  ;;  %v960_v54 = vrot.slane %v7192_v35, 4  ;;  %v3746_v63 = vadd.f32 %v3714_v21, %v3213_v45  ;;  %v8062_v35 = vld [vmem:[#allocation27_spill] sm:$0xff]  ;;  %v8067_v21 = vld [vmem:[#allocation32_spill] sm:$0xff] }
 0x31b   : > { %v4023_v56 = vmul.f32 %v7303_v34, %v3986_v57  ;;  %v4096_v8 = vadd.f32 %v7456_v38, %v4057_v29  ;;  %v4572_v46 = vpack.c.bf16 %v4127_v41, %v4127_v41  ;;  %v4130_v6 = vmax.f32 %v4098_v20, 0.0 }
 0x31c   : > { %v4125_v7 = vmax.f32 %v4093_v23, 0.0  ;;  %v4574_v50 = vpack.c.bf16 %v4129_v1, %v4129_v1  ;;  %v1135_v58 = vsel %vm5118_vm14, %v960_v54, %v1134_v59  ;;  %v3611_v45 = vshrl.u32 %v8062_v35, 16  ;;  %v4725_v23 = vld [vmem:[%s7652_s3 + $0x3] ss:$0 sm:$0xff]  ;;  %v8069_v54 = vld [vmem:[#allocation28_spill] sm:$0xff] }
 0x31d   : > { %v4055_v40 = vadd.f32 %v4023_v56, %v3746_v63  ;;  %v4128_v39 = vmax.f32 %v4096_v8, 0.0  ;;  %4287 = vst.msk [vmem:[%s5559_s28 + $0x30] sm:$0xf] %vm567_vm1, %v4572_v46  ;;  %1136 = vst [vmem:[#allocation2 + $0xbc] sm:$0x1] %v1135_v58  ;;  %v3614_v0 = vshll.u32 %v8062_v35, 16  ;;  %v8063_v51 = vunpack.c.l.bf16 %v7343_v26 }
 0x31e   : > { %v8064_v53 = vunpack.c.l.bf16 %v7356_v4  ;;  %v4570_v11 = vpack.c.bf16 %v4125_v7, %v4125_v7  ;;  %v4575_v55 = vpack.c.bf16 %v4130_v6, %v4130_v6  ;;  %4289 = vst.msk [vmem:[%s5559_s28 + $0x38] sm:$0xf] %vm567_vm1, %v4574_v50  ;;  %v3620_v27 = vshll.u32 %v8065_v61, 16  ;;  %v8070_v50 = vld [vmem:[#allocation38_spill] sm:$0xff]  ;;  %v8071_v58 = vld [vmem:[#allocation39_spill] sm:$0xff] }
 0x31f   : > { %v7487_v18 = vmul.f32 %v7303_v34, %v8063_v51  ;;  %v4094_v28 = vadd.f32 %v7456_v38, %v4055_v40  ;;  %v4573_v17 = vpack.c.bf16 %v4128_v39, %v4128_v39  ;;  %v3624_v26 = vshrl.u32 %v8065_v61, 16 }
 0x320   : > { %v7492_v33 = vmul.f32 %v7303_v34, %v8064_v53  ;;  %v7500_v10 = vmul.f32 %v7289_v2, %v3695_v32  ;;  %4285 = vst.msk [vmem:[%s5559_s28 + $0x28] sm:$0xf] %vm567_vm1, %v4570_v11  ;;  %4290 = vst.msk [vmem:[%s5559_s28 + $0x3c] sm:$0xf] %vm567_vm1, %v4575_v55  ;;  %v8066_v37 = vunpack.c.l.bf16 %v8065_v61  ;;  %v7516_v30 = vrot.slane %v3611_v45, 4 }
 0x321   : > { %v1175_v4 = vld [vmem:[#allocation2 + $0xb8] sm:$0xf]  ;;  %v7518_v16 = vrot.slane %v3614_v0, 5  ;;  %v4126_v42 = vmax.f32 %v4094_v28, 0.0  ;;  %4288 = vst.msk [vmem:[%s5559_s28 + $0x34] sm:$0xf] %vm567_vm1, %v4573_v17 }
 0x322   : > { %v2154_v22 = vld [vmem:[#allocation2 + $0xb8] sm:$0xf]  ;;  %v7514_v24 = vmul.f32 %v7509_v25, %v8066_v37  ;;  %v1207_v19 = vunpack.c.l.bf16 %v1175_v4  ;;  %v1666_v9 = vshll.u32 %v1175_v4, 16  ;;  %v1670_v57 = vshrl.u32 %v1175_v4, 16 }
 0x323   : > { %v1987_v13 = vrot.slane %v1175_v4, 5  ;;  %v2186_v48 = vunpack.c.l.bf16 %v2154_v22  ;;  %v2620_v15 = vshll.u32 %v2154_v22, 16  ;;  %v2624_v49 = vshrl.u32 %v2154_v22, 16 }
 0x324   : > { %v4571_v43 = vpack.c.bf16 %v4126_v42, %v4126_v42  ;;  %v1244_v36 = vmul.f32 %v7376_v14, %v1207_v19  ;;  %v1668_v12 = vrot.slane %v1666_v9, 5  ;;  %v1672_v31 = vrot.slane %v1670_v57, 4  ;;  %v1292_v32 = vld [vmem:[#allocation2 + $0xbc] sm:$0x1]  ;;  %v8072_v19 = vld [vmem:[#allocation12_spill] sm:$0xff] }
 0x325   : > { %v8068_v29 = vrot.slane %v8067_v21, 9  ;;  %v1989_v59 = vrot.slane %v1987_v13, 4  ;;  %v2223_v20 = vmul.f32 %v4725_v23, %v2186_v48  ;;  %v2622_v1 = vrot.slane %v2620_v15, 5  ;;  %v2272_v46 = vld [vmem:[#allocation2 + $0xbc] sm:$0x1] }
 0x326   : > { %4286 = vst.msk [vmem:[%s5559_s28 + $0x2c] sm:$0xf] %vm567_vm1, %v4571_v43  ;;  %v1669_v14 = vsel %vm5023_vm5, %v8069_v54, %v1668_v12  ;;  %v1673_v63 = vor.u32 %v1672_v31, %v1668_v12  ;;  %v1676_v56 = vshll.u32 %v1292_v32, 16  ;;  %v1990_v8 = vrot.slane %v1292_v32, 5  ;;  %v7547_v48 = vld [vmem:[#allocation2 + $0xb8] sm:$0xf] }
 0x327   : > { %v1988_v41 = vsel %vm5029_vm8, %v8068_v29, %v1987_v13  ;;  %v1742_v7 = vunpack.c.l.bf16 %v1669_v14  ;;  %v2255_v52 = vadd.f32 %v2223_v20, %v8070_v50  ;;  %v2623_v40 = vsel %vm5023_vm5, %v8071_v58, %v2622_v1  ;;  %v8073_v43 = vld [vmem:[#allocation30_spill] sm:$0xff]  ;;  %v8076_v14 = vld [vmem:[#allocation64_spill] sm:$0xff] }
 0x328   : > { %v2054_v6 = vunpack.c.l.bf16 %v1988_v41  ;;  %v1674_v39 = vrot.slane %v1673_v63, 4  ;;  %v1678_v35 = vrot.slane %v1676_v56, 5  ;;  %v1991_v45 = vsel %vm5029_vm8, %v1989_v59, %v1990_v8  ;;  %v8075_v59 = vld [vmem:[#allocation60_spill] sm:$0xff] }
 0x329   : > { %v2626_v0 = vrot.slane %v2624_v49, 4  ;;  %v1779_v51 = vmul.f32 %v7390_v44, %v1742_v7  ;;  %v2055_v53 = vunpack.c.l.bf16 %v1991_v45  ;;  %v2630_v55 = vshll.u32 %v2272_v46, 16 }
 0x32a   : > { %v2091_v11 = vmul.f32 %v7222_v5, %v2054_v6  ;;  %v1679_v28 = vsel %vm5023_vm5, %v1674_v39, %v1678_v35  ;;  %v2718_v4 = vunpack.c.l.bf16 %v2623_v40  ;;  %v2955_v37 = vrot.slane %v2154_v22, 5  ;;  %v8077_v40 = vld [vmem:[#allocation65_spill] sm:$0xff]  ;;  %v3247_v35 = vld [vmem:[#allocation2 + $0xbc] sm:$0x1] }
 0x32b   : > { %v2627_v17 = vor.u32 %v2626_v0, %v2622_v1  ;;  %v1743_v42 = vunpack.c.l.bf16 %v1679_v28  ;;  %v1811_v9 = vadd.f32 %v1779_v51, %v8072_v19  ;;  %v2092_v57 = vmul.f32 %v7222_v5, %v2055_v53  ;;  %v8078_v51 = vld [vmem:[#allocation16_spill] sm:$0xff]  ;;  %v8082_v19 = vld [vmem:[#allocation63_spill] sm:$0xff] }
 0x32c   : > { %v2632_v13 = vrot.slane %v2630_v55, 5  ;;  %v2755_v49 = vmul.f32 %v7246_v62, %v2718_v4  ;;  %v8074_v12 = vrot.slane %v8073_v43, 9  ;;  %v2957_v32 = vrot.slane %v2955_v37, 4  ;;  %v8080_v28 = vld [vmem:[#allocation52_spill] sm:$0xff]  ;;  %v8081_v4 = vld [vmem:[#allocation6_spill] sm:$0xff] }
 0x32d   : > { %v2628_v15 = vrot.slane %v2627_v17, 4  ;;  %v1780_v21 = vmul.f32 %v7390_v44, %v1743_v42  ;;  %v2123_v22 = vadd.f32 %v2091_v11, %v1811_v9  ;;  %v2958_v29 = vrot.slane %v2272_v46, 5  ;;  %v8079_v11 = vld [vmem:[#allocation46_spill] sm:$0xff] }
 0x32e   : > { %v2956_v31 = vsel %vm5029_vm8, %v8074_v12, %v2955_v37  ;;  %v2787_v23 = vadd.f32 %v2755_v49, %v8075_v59  ;;  %v3160_v20 = vunpack.c.l.bf16 %v7547_v48  ;;  %v3572_v1 = vshll.u32 %v7547_v48, 16  ;;  %v8084_v12 = vld [vmem:[#allocation62_spill] sm:$0xff]  ;;  %v8086_v59 = vld [vmem:[#allocation37_spill] sm:$0xff] }
 0x32f   : > { %v3027_v41 = vunpack.c.l.bf16 %v2956_v31  ;;  %v2633_v5 = vsel %vm5023_vm5, %v2628_v15, %v2632_v13  ;;  %v1812_v54 = vadd.f32 %v1780_v21, %v1244_v36  ;;  %v2256_v63 = vadd.f32 %v8076_v14, %v2123_v22  ;;  %v8083_v15 = vld [vmem:[#allocation49_spill] sm:$0xff] }
 0x330   : > { %v2719_v56 = vunpack.c.l.bf16 %v2633_v5  ;;  %v2959_v8 = vsel %vm5029_vm8, %v2957_v32, %v2958_v29  ;;  %v3197_v7 = vmul.f32 %v7509_v25, %v3160_v20  ;;  %v3574_v6 = vrot.slane %v3572_v1, 5 }
 0x331   : > { %v3028_v44 = vunpack.c.l.bf16 %v2959_v8  ;;  %v3064_v46 = vmul.f32 %v7268_v47, %v3027_v41  ;;  %v2124_v50 = vadd.f32 %v2092_v57, %v1812_v54  ;;  %v2789_v39 = vadd.f32 %v8077_v40, %v2256_v63  ;;  %v8085_v41 = vld [vmem:[#allocation53_spill] sm:$0xff]  ;;  %v8087_v54 = vld [vmem:[#allocation47_spill] sm:$0xff]  ;;  %v3782_v63 = vld [vmem:[#allocation2 + $0xcc] sm:$0xe] }
 0x332   : > { %v2756_v58 = vmul.f32 %v7246_v62, %v2719_v56  ;;  %v3576_v36 = vshrl.u32 %v7547_v48, 16  ;;  %v3229_v53 = vadd.f32 %v3197_v7, %v8078_v51  ;;  %v3575_v55 = vsel %vm5023_vm5, %v8079_v11, %v3574_v6  ;;  %v3249_v62 = vld [vmem:[#allocation2 + $0xd4] sm:$0x1]  ;;  %v8088_v40 = vld [vmem:[#allocation7_spill] sm:$0xff]  ;;  %v8089_v51 = vld [vmem:[#allocation26_spill] sm:$0xff] }
 0x333   : > { %v3065_v45 = vmul.f32 %v7268_v47, %v3028_v44  ;;  %v3096_v0 = vadd.f32 %v3064_v46, %v2787_v23  ;;  %v2257_v25 = vadd.f32 %v8080_v28, %v2124_v50  ;;  %v3098_v37 = vadd.f32 %v8081_v4, %v2789_v39 }
 0x334   : > { %v2788_v17 = vadd.f32 %v2756_v58, %v2255_v52  ;;  %v3578_v42 = vrot.slane %v3576_v36, 4  ;;  %v3582_v57 = vshll.u32 %v3247_v35, 16  ;;  %v3617_v47 = vor.u32 %v7518_v16, %v7516_v30 }
 0x335   : > { %v3230_v9 = vadd.f32 %v8082_v19, %v3096_v0  ;;  %v3622_v13 = vrot.slane %v3620_v27, 5  ;;  %v2790_v49 = vadd.f32 %v8083_v15, %v2257_v25  ;;  %v3232_v31 = vadd.f32 %v8084_v12, %v3098_v37 }
 0x336   : > { %v3097_v43 = vadd.f32 %v3065_v45, %v2788_v17  ;;  %v3579_v32 = vor.u32 %v3578_v42, %v3574_v6  ;;  %v3584_v52 = vrot.slane %v3582_v57, 5  ;;  %v3618_v21 = vrot.slane %v3617_v47, 4 }
 0x337   : > { %v3626_v22 = vrot.slane %v3624_v26, 4  ;;  %v3630_v29 = vshll.u32 %v3249_v62, 16  ;;  %v3099_v5 = vadd.f32 %v8085_v41, %v2790_v49  ;;  %v3692_v16 = vunpack.c.l.bf16 %v3575_v55 }
 0x338   : > { %v3231_v23 = vadd.f32 %v8086_v59, %v3097_v43  ;;  %v3580_v30 = vrot.slane %v3579_v32, 4  ;;  %v3623_v27 = vsel %vm5023_vm5, %v3618_v21, %v3622_v13  ;;  %v3763_v14 = vadd.f32 %v8087_v54, %v3230_v9 }
 0x339   : > { %v3627_v20 = vor.u32 %v3626_v22, %v3622_v13  ;;  %v3632_v1 = vrot.slane %v3630_v29, 5  ;;  %v3233_v56 = vadd.f32 %v7514_v24, %v3099_v5  ;;  %v3696_v8 = vunpack.c.l.bf16 %v3623_v27 }
 0x33a   : > { %v3585_v26 = vsel %vm5023_vm5, %v3580_v30, %v3584_v52  ;;  %v3729_v44 = vmul.f32 %v7289_v2, %v3692_v16  ;;  %v3764_v6 = vadd.f32 %v7500_v10, %v3231_v23  ;;  %v3924_v50 = vrot.slane %v7547_v48, 5 }
 0x33b   : > { %v3628_v46 = vrot.slane %v3627_v20, 4  ;;  %v3693_v7 = vunpack.c.l.bf16 %v3585_v26  ;;  %v3733_v58 = vmul.f32 %v7289_v2, %v3696_v8  ;;  %v3927_v36 = vrot.slane %v3247_v35, 5 }
 0x33c   : > { %v3761_v39 = vadd.f32 %v3729_v44, %v8088_v40  ;;  %v4489_v45 = vrot.slane %v3782_v63, 9  ;;  %v8090_v11 = vrot.slane %v8089_v51, 9  ;;  %v3926_v28 = vrot.slane %v3924_v50, 4 }
 0x33d   : > { %v3633_v24 = vsel %vm5023_vm5, %v3628_v46, %v3632_v1  ;;  %v3730_v0 = vmul.f32 %v7289_v2, %v3693_v7  ;;  %v3765_v25 = vadd.f32 %v3733_v58, %v3232_v31  ;;  %v3938_v48 = vrot.slane %v8065_v61, 5 }
 0x33e   : > { %v3925_v55 = vsel %vm5029_vm8, %v8090_v11, %v3924_v50  ;;  %v3697_v10 = vunpack.c.l.bf16 %v3633_v24  ;;  %v3941_v17 = vrot.slane %v3249_v62, 5  ;;  %v3928_v35 = vsel %vm5029_vm8, %v3926_v28, %v3927_v36 }
 0x33f   : > { %v3762_v4 = vadd.f32 %v3730_v0, %v3229_v53  ;;  %v4001_v37 = vunpack.c.l.bf16 %v3925_v55  ;;  %v4072_v60 = vadd.f32 %v7487_v18, %v3763_v14  ;;  %v3939_v19 = vsel %vm5029_vm8, %v4489_v45, %v3938_v48 }
 0x340   : > { %v3734_v42 = vmul.f32 %v7289_v2, %v3697_v10  ;;  %v3940_v9 = vrot.slane %v3938_v48, 4  ;;  %v4002_v57 = vunpack.c.l.bf16 %v3928_v35  ;;  %v4005_v47 = vunpack.c.l.bf16 %v3939_v19 }
 0x341   : > { %v4038_v13 = vmul.f32 %v7303_v34, %v4001_v37  ;;  %v4073_v61 = vadd.f32 %v7492_v33, %v3764_v6  ;;  %v4111_v53 = vadd.f32 %v7456_v38, %v4072_v60 }
 0x342   : > { %v3766_v62 = vadd.f32 %v3734_v42, %v3233_v56  ;;  %v3942_v15 = vsel %vm5029_vm8, %v3940_v9, %v3941_v17  ;;  %v4039_v18 = vmul.f32 %v7303_v34, %v4002_v57  ;;  %v4042_v2 = vmul.f32 %v7303_v34, %v4005_v47 }
 0x343   : > { %v4006_v49 = vunpack.c.l.bf16 %v3942_v15  ;;  %v4070_v43 = vadd.f32 %v4038_v13, %v3761_v39  ;;  %v4112_v12 = vadd.f32 %v7456_v38, %v4073_v61  ;;  %v4143_v32 = vmax.f32 %v4111_v53, 0.0 }
 0x344   : > { %v4071_v31 = vadd.f32 %v4039_v18, %v3762_v4  ;;  %v4074_v52 = vadd.f32 %v4042_v2, %v3765_v25 }
 0x345   : > { %v4043_v33 = vmul.f32 %v7303_v34, %v4006_v49  ;;  %v4109_v21 = vadd.f32 %v7456_v38, %v4070_v43  ;;  %v4144_v22 = vmax.f32 %v4112_v12, 0.0  ;;  %v4588_v29 = vpack.c.bf16 %v4143_v32, %v4143_v32 }
 0x346   : > { %v4110_v3 = vadd.f32 %v7456_v38, %v4071_v31  ;;  %v4113_v5 = vadd.f32 %v7456_v38, %v4074_v52 }
 0x347   : > { %v4075_v41 = vadd.f32 %v4043_v33, %v3766_v62  ;;  %v4141_v59 = vmax.f32 %v4109_v21, 0.0  ;;  %v4589_v23 = vpack.c.bf16 %v4144_v22, %v4144_v22  ;;  %4303 = vst.msk [vmem:[%s5559_s28 + $0x70] sm:$0xf] %vm567_vm1, %v4588_v29 }
 0x348   : > { %v4142_v30 = vmax.f32 %v4110_v3, 0.0  ;;  %v4145_v16 = vmax.f32 %v4113_v5, 0.0 }
 0x349   : > { %v4114_v34 = vadd.f32 %v7456_v38, %v4075_v41  ;;  %v4586_v27 = vpack.c.bf16 %v4141_v59, %v4141_v59  ;;  %4304 = vst.msk [vmem:[%s5559_s28 + $0x74] sm:$0xf] %vm567_vm1, %v4589_v23 }
 0x34a   : > { %v4587_v20 = vpack.c.bf16 %v4142_v30, %v4142_v30  ;;  %v4590_v54 = vpack.c.bf16 %v4145_v16, %v4145_v16 }
 0x34b   : > { %v4146_v1 = vmax.f32 %v4114_v34, 0.0  ;;  %4301 = vst.msk [vmem:[%s5559_s28 + $0x68] sm:$0xf] %vm567_vm1, %v4586_v27 }
 0x34c   : > { %4302 = vst.msk [vmem:[%s5559_s28 + $0x6c] sm:$0xf] %vm567_vm1, %v4587_v20  ;;  %4305 = vst.msk [vmem:[%s5559_s28 + $0x78] sm:$0xf] %vm567_vm1, %v4590_v54 }
 0x34d   : > { %v4591_v14 = vpack.c.bf16 %v4146_v1, %v4146_v1 }
 0x34f   : > { %4306 = vst.msk [vmem:[%s5559_s28 + $0x7c] sm:$0xf] %vm567_vm1, %v4591_v14 }
 0x350 PF: > { %p15_p8 = scmp.ge.s32.totalorder %s4848_s23, 4   ;;  %s8091_s18 = smov %s4782_s19 }
 0x351   : > { %s8092_s19 = smov %s4786_s20  ;;  %s8093_s20 = smov %s4858_s26 }
 0x352   : > { %s8094_s21 = smov %s4848_s23  ;;  %17 = sbr.rel (!%p15_p8) target bundleno = 3 (0x3), region = 82 }
 0x359   :  { %4328 = vsyncpa [#allocation4], 1 }
 0x35a   :  { %4330 = vsyncpa [#allocation4 + $0x1], 1 }

</bundles_post_ra>
